<compile_context>
chip_gen: v5e
topology: v5e:2x2
jax: 0.10.0
libtpu: 0.0.40
codegen_flags: <defaults>
</compile_context>

<pallas_src>
import functools

import numpy as np
import jax
import jax.numpy as jnp
from jax.experimental import pallas as pl
from jax.experimental.pallas import tpu as pltpu


_BLOCK_B = 8  # images per conv-stage grid step

_COMPILER_PARAMS = pltpu.CompilerParams(dimension_semantics=("parallel",))


# ---------------------------------------------------------------------------
# Kernel 1: conv (im2col GEMM, flipped orientation) + bias + tanh + avg-pool,
#           for a block of `block_b` images per grid step.
# ---------------------------------------------------------------------------
def _conv_stage_kernel(cols_ref, w_ref, b_ref, p_ref, o_ref, *, block_b):
    # cols_ref: (B, Kp, OHW) bf16    w_ref: (Cp, Kp) bf16    b_ref: (Cp, 1) f32
    # p_ref:   (OHW, PHW)    bf16    o_ref: (B, Cp, PHW) bf16
    w = w_ref[...]
    b = b_ref[...]
    p = p_ref[...]
    for i in range(block_b):  # short static unroll over the image block
        h = jnp.dot(w, cols_ref[i], preferred_element_type=jnp.float32)   # (Cp, OHW)
        h = jnp.tanh(h + b)                                               # f32 epilogue
        pooled = jnp.dot(h.astype(jnp.bfloat16), p,
                         preferred_element_type=jnp.float32)              # (Cp, PHW)
        o_ref[i] = pooled.astype(o_ref.dtype)


# ---------------------------------------------------------------------------
# Kernel 2: classifier tail (conv3-as-dense + tanh + fc1 + tanh + fc2 + softmax)
# ---------------------------------------------------------------------------
def _tail_kernel(x_ref, w3_ref, b3_ref, w4_ref, b4_ref, w5_ref, b5_ref, o_ref,
                 *, n_classes):
    h = jnp.dot(x_ref[...], w3_ref[...], preferred_element_type=jnp.float32)
    h = jnp.tanh(h + b3_ref[...])
    h = jnp.dot(h.astype(jnp.bfloat16), w4_ref[...],
                preferred_element_type=jnp.float32)
    h = jnp.tanh(h + b4_ref[...])
    logits = jnp.dot(h.astype(jnp.bfloat16), w5_ref[...],
                     preferred_element_type=jnp.float32)
    logits = logits + b5_ref[...]
    # Mask the lane padding so softmax only covers the real classes.
    col = jax.lax.broadcasted_iota(jnp.int32, logits.shape, 1)
    logits = jnp.where(col < n_classes, logits, jnp.float32(-1e30))
    m = jnp.max(logits, axis=-1, keepdims=True)
    e = jnp.exp(logits - m)
    o_ref[...] = (e / jnp.sum(e, axis=-1, keepdims=True)).astype(o_ref.dtype)


# ---------------------------------------------------------------------------
# Plain-JAX glue (layout plumbing only; all compute lives in the kernels)
# ---------------------------------------------------------------------------
def _im2col_t(x, k):
    """x: (N, C, H, W) -> (N, C*k*k, OH*OW); K index = c*k*k + di*k + dj."""
    n, c, h, w = x.shape
    oh, ow = h - k + 1, w - k + 1
    patches = [x[:, :, di:di + oh, dj:dj + ow]
               for di in range(k) for dj in range(k)]
    p = jnp.stack(patches, axis=2)                       # (N, C, k*k, OH, OW)
    return p.reshape(n, c * k * k, oh * ow), oh, ow


@functools.lru_cache(maxsize=None)
def _pool_matrix(oh, ow):
    """(OH*OW, PH*PW) bf16 matrix implementing 2x2 average pooling over
    row-major flattened (OH, OW); 0.25 is exact in bf16."""
    assert oh % 2 == 0 and ow % 2 == 0, "AvgPool2d(2) here requires even H/W"
    ph, pw = oh // 2, ow // 2
    p = np.zeros((oh * ow, ph * pw), np.float32)
    for pi in range(ph):
        for pj in range(pw):
            q = pi * pw + pj
            for di in range(2):
                for dj in range(2):
                    p[(2 * pi + di) * ow + (2 * pj + dj), q] = 0.25
    return jnp.asarray(p, dtype=jnp.bfloat16)


def _pad2(x, rows, cols):
    return jnp.pad(x, ((0, rows - x.shape[0]), (0, cols - x.shape[1])))


def conv_tanh_pool(x, w_packed, b_packed):
    """Conv2d(k=5, s=1, p=0) + Tanh + AvgPool2d(2).

    x: (N, C, H, W) with N a multiple of _BLOCK_B.
    Returns ((N, Cp, PH*PW) bf16 channel-major output, PH, PW)."""
    n, c, h, w = x.shape
    k = 5
    cp, kp = w_packed.shape                     # Cp (mult of 8), Kp (mult of 8)
    cols, oh, ow = _im2col_t(x, k)              # (N, C*25, OH*OW)
    kdim = c * k * k
    cols = jnp.pad(cols, ((0, 0), (0, kp - kdim), (0, 0))).astype(jnp.bfloat16)
    ph, pw = oh // 2, ow // 2
    pmat = _pool_matrix(oh, ow)                 # (OH*OW, PH*PW) bf16

    out = pl.pallas_call(
        functools.partial(_conv_stage_kernel, block_b=_BLOCK_B),
        out_shape=jax.ShapeDtypeStruct((n, cp, ph * pw), jnp.bfloat16),
        grid=(n // _BLOCK_B,),
        in_specs=[
            pl.BlockSpec((_BLOCK_B, kp, oh * ow), lambda i: (i, 0, 0)),
            pl.BlockSpec((cp, kp), lambda i: (0, 0)),
            pl.BlockSpec((cp, 1), lambda i: (0, 0)),
            pl.BlockSpec((oh * ow, ph * pw), lambda i: (0, 0)),
        ],
        out_specs=pl.BlockSpec((_BLOCK_B, cp, ph * pw), lambda i: (i, 0, 0)),
        compiler_params=_COMPILER_PARAMS,
    )(cols, w_packed, b_packed, pmat)
    return out, ph, pw


def classifier_tail(feats, packed, n_classes):
    """tanh(x@W3+b3) -> tanh(@W4+b4) -> @W5+b5 -> softmax, all in one kernel."""
    n, kdim = feats.shape                       # kdim == 400, n multiple of 8
    tm = 512 if n >= 512 else n
    mp = ((n + tm - 1) // tm) * tm
    x = jnp.pad(feats, ((0, mp - n), (0, 0))).astype(jnp.bfloat16)

    out = pl.pallas_call(
        functools.partial(_tail_kernel, n_classes=n_classes),
        out_shape=jax.ShapeDtypeStruct((mp, 128), jnp.float32),
        grid=(mp // tm,),
        in_specs=[
            pl.BlockSpec((tm, kdim), lambda i: (i, 0)),
            pl.BlockSpec((kdim, 128), lambda i: (0, 0)),
            pl.BlockSpec((1, 128), lambda i: (0, 0)),
            pl.BlockSpec((128, 128), lambda i: (0, 0)),
            pl.BlockSpec((1, 128), lambda i: (0, 0)),
            pl.BlockSpec((128, 128), lambda i: (0, 0)),
            pl.BlockSpec((1, 128), lambda i: (0, 0)),
        ],
        out_specs=pl.BlockSpec((tm, 128), lambda i: (i, 0)),
        compiler_params=_COMPILER_PARAMS,
    )(x, packed["w3"], packed["b3"], packed["w4"], packed["b4"],
      packed["w5"], packed["b5"])
    return out


# ---------------------------------------------------------------------------
# LeNet-5 forward + parameter packing
# ---------------------------------------------------------------------------
def pack_params(params):
    """One-time pad-to-8-multiples + bf16 cast of all weights (hoisted)."""
    f32, bf16 = jnp.float32, jnp.bfloat16
    w1 = params["conv1_w"].reshape(6, 25)                  # (oc, K)  K = di*5+dj
    w2 = params["conv2_w"].reshape(16, 150)                # (oc, K)  K = ic*25+di*5+dj
    w3 = params["conv3_w"].reshape(120, 400).T             # (400, 120)
    w4 = params["fc1_w"].T                                 # (120, 84)
    w5 = params["fc2_w"].T                                 # (84, n_classes)
    return {
        "w1": _pad2(w1, 8, 32).astype(bf16),
        "b1": _pad2(params["conv1_b"].reshape(-1, 1), 8, 1).astype(f32),
        "w2": _pad2(w2, 16, 152).astype(bf16),
        "b2": params["conv2_b"].reshape(16, 1).astype(f32),
        "w3": _pad2(w3, 400, 128).astype(bf16),
        "b3": _pad2(params["conv3_b"].reshape(1, -1), 1, 128).astype(f32),
        "w4": _pad2(w4, 128, 128).astype(bf16),
        "b4": _pad2(params["fc1_b"].reshape(1, -1), 1, 128).astype(f32),
        "w5": _pad2(w5, 128, 128).astype(bf16),
        "b5": _pad2(params["fc2_b"].reshape(1, -1), 1, 128).astype(f32),
    }


def lenet5_forward(packed, x, n_classes):
    n = x.shape[0]
    np_ = ((n + _BLOCK_B - 1) // _BLOCK_B) * _BLOCK_B       # pad batch once
    x = jnp.pad(x, ((0, np_ - n), (0, 0), (0, 0), (0, 0)))

    h1, ph1, pw1 = conv_tanh_pool(x, packed["w1"], packed["b1"])   # (Np, 8, 196)
    h1 = h1[:, :6, :].reshape(np_, 6, ph1, pw1)                    # (Np, 6, 14, 14) bf16
    h2, ph2, pw2 = conv_tanh_pool(h1, packed["w2"], packed["b2"])  # (Np, 16, 25)
    feats = h2.reshape(np_, 16 * ph2 * pw2)                        # (Np, 400), (c,i,j) order
    probs = classifier_tail(feats, packed, n_classes)              # (Mp, 128)
    return probs[:n, :n_classes]


def init_params(key, n_classes):
    def uniform(k, shape, fan_in):
        bound = 1.0 / float(fan_in) ** 0.5
        return jax.random.uniform(k, shape, jnp.float32, -bound, bound)

    keys = jax.random.split(key, 10)
    return {
        "conv1_w": uniform(keys[0], (6, 1, 5, 5), 1 * 5 * 5),
        "conv1_b": uniform(keys[1], (6,), 1 * 5 * 5),
        "conv2_w": uniform(keys[2], (16, 6, 5, 5), 6 * 5 * 5),
        "conv2_b": uniform(keys[3], (16,), 6 * 5 * 5),
        "conv3_w": uniform(keys[4], (120, 16, 5, 5), 16 * 5 * 5),
        "conv3_b": uniform(keys[5], (120,), 16 * 5 * 5),
        "fc1_w": uniform(keys[6], (84, 120), 120),
        "fc1_b": uniform(keys[7], (84,), 120),
        "fc2_w": uniform(keys[8], (n_classes, 84), 84),
        "fc2_b": uniform(keys[9], (n_classes,), 84),
    }


def lenet5_reference(params, x):
    """Pure-JAX f32 reference for a numerical sanity check."""
    def conv(h, w, b):
        y = jax.lax.conv_general_dilated(
            h, w, (1, 1), "VALID", dimension_numbers=("NCHW", "OIHW", "NCHW"))
        return jnp.tanh(y + b.reshape(1, -1, 1, 1))

    def pool(h):
        return jax.lax.reduce_window(
            h, 0.0, jax.lax.add, (1, 1, 2, 2), (1, 1, 2, 2), "VALID") * 0.25

    h = pool(conv(x, params["conv1_w"], params["conv1_b"]))
    h = pool(conv(h, params["conv2_w"], params["conv2_b"]))
    h = conv(h, params["conv3_w"], params["conv3_b"])           # (N, 120, 1, 1)
    h = h.reshape(x.shape[0], -1)
    h = jnp.tanh(h @ params["fc1_w"].T + params["fc1_b"])
    logits = h @ params["fc2_w"].T + params["fc2_b"]
    return jax.nn.softmax(logits, axis=1)


if __name__ == "__main__":
    n_classes = 10
    key = jax.random.PRNGKey(0)
    k_params, k_x = jax.random.split(key)
    params = init_params(k_params, n_classes)
    packed = pack_params(params)

    # Classic LeNet-5 expects 32x32 single-channel inputs (conv3 yields 1x1).
    x = jax.random.normal(k_x, (2, 1, 32, 32), dtype=jnp.float32)

    fwd = jax.jit(functools.partial(lenet5_forward, n_classes=n_classes))
    probs = jax.block_until_ready(fwd(packed, x))

    ref = lenet5_reference(params, x)

    assert probs.shape == (2, n_classes)
    assert bool(jnp.all(jnp.abs(jnp.sum(probs, axis=1) - 1.0) < 1e-4))
    assert bool(jnp.max(jnp.abs(probs - ref)) < 5e-2)   # bf16 GEMMs vs f32 ref
    print("KERNEL_OK")
</pallas_src>

<mosaic_0001>
module attributes {stable_mosaic.version = 11 : i64} {
  func.func @_conv_stage_kernel(%arg0: i32, %arg1: memref<8x32x784xbf16, #tpu.memory_space<vmem>>, %arg2: memref<8x32xbf16, #tpu.memory_space<vmem>>, %arg3: memref<8x1xf32, #tpu.memory_space<vmem>>, %arg4: memref<784x196xbf16, #tpu.memory_space<vmem>>, %arg5: memref<8x8x196xbf16, #tpu.memory_space<vmem>>) attributes {dimension_semantics = [#tpu.dimension_semantics<parallel>], iteration_bounds = array<i64: 1>, scalar_prefetch = 0 : i64, scratch_operands = 0 : i64, tpu.core_type = #tpu.core_type<tc>, window_params = [{transform_indices = @transform_0, window_bounds = array<i64: 8, 32, 784>}, {pipeline_mode = #tpu.pipeline_mode<synchronous>, transform_indices = @transform_1, window_bounds = array<i64: 8, 32>}, {pipeline_mode = #tpu.pipeline_mode<synchronous>, transform_indices = @transform_2, window_bounds = array<i64: 8, 1>}, {pipeline_mode = #tpu.pipeline_mode<synchronous>, transform_indices = @transform_3, window_bounds = array<i64: 784, 196>}, {transform_indices = @transform_4, window_bounds = array<i64: 8, 8, 196>}]} {
    %c0 = arith.constant 0 : index
    %c0_0 = arith.constant 0 : index
    %0 = vector.load %arg2[%c0, %c0_0] : memref<8x32xbf16, #tpu.memory_space<vmem>>, vector<8x32xbf16>
    %c0_1 = arith.constant 0 : index
    %c0_2 = arith.constant 0 : index
    %1 = vector.load %arg3[%c0_1, %c0_2] : memref<8x1xf32, #tpu.memory_space<vmem>>, vector<8x1xf32>
    %c0_3 = arith.constant 0 : index
    %c0_4 = arith.constant 0 : index
    %2 = vector.load %arg4[%c0_3, %c0_4] : memref<784x196xbf16, #tpu.memory_space<vmem>>, vector<784x196xbf16>
    %c0_5 = arith.constant 0 : index
    %c0_6 = arith.constant 0 : index
    %c0_7 = arith.constant 0 : index
    %3 = vector.load %arg1[%c0_5, %c0_6, %c0_7] : memref<8x32x784xbf16, #tpu.memory_space<vmem>>, vector<1x32x784xbf16>
    %4 = vector.shape_cast %3 : vector<1x32x784xbf16> to vector<32x784xbf16>
    %cst = arith.constant dense<0.000000e+00> : vector<8x784xf32>
    %5 = tpu.matmul %0, %4, %cst {dimension_numbers = #tpu.dot_dimension_numbers<[1], [0], [0], [1], [0, 0, 1, 1], [], []>} : vector<8x32xbf16>, vector<32x784xbf16>, vector<8x784xf32> -> vector<8x784xf32>
    %6 = vector.broadcast %1 : vector<8x1xf32> to vector<8x784xf32>
    %7 = arith.addf %5, %6 : vector<8x784xf32>
    %8 = math.tanh %7 : vector<8x784xf32>
    %9 = arith.truncf %8 : vector<8x784xf32> to vector<8x784xbf16>
    %cst_8 = arith.constant dense<0.000000e+00> : vector<8x196xf32>
    %10 = tpu.matmul %9, %2, %cst_8 {dimension_numbers = #tpu.dot_dimension_numbers<[1], [0], [0], [1], [0, 0, 1, 1], [], []>} : vector<8x784xbf16>, vector<784x196xbf16>, vector<8x196xf32> -> vector<8x196xf32>
    %11 = arith.truncf %10 : vector<8x196xf32> to vector<8x196xbf16>
    %c0_9 = arith.constant 0 : index
    %c0_10 = arith.constant 0 : index
    %c0_11 = arith.constant 0 : index
    %12 = vector.load %arg5[%c0_9, %c0_10, %c0_11] : memref<8x8x196xbf16, #tpu.memory_space<vmem>>, vector<1x8x196xbf16>
    %13 = vector.shape_cast %12 : vector<1x8x196xbf16> to vector<8x196xbf16>
    %14 = vector.shape_cast %11 : vector<8x196xbf16> to vector<1x8x196xbf16>
    tpu.vector_store %arg5[%c0_9, %c0_10, %c0_11], %14 {strides = array<i32>} : memref<8x8x196xbf16, #tpu.memory_space<vmem>>, vector<1x8x196xbf16>,
    %c1 = arith.constant 1 : index
    %c0_12 = arith.constant 0 : index
    %c0_13 = arith.constant 0 : index
    %15 = vector.load %arg1[%c1, %c0_12, %c0_13] : memref<8x32x784xbf16, #tpu.memory_space<vmem>>, vector<1x32x784xbf16>
    %16 = vector.shape_cast %15 : vector<1x32x784xbf16> to vector<32x784xbf16>
    %cst_14 = arith.constant dense<0.000000e+00> : vector<8x784xf32>
    %17 = tpu.matmul %0, %16, %cst_14 {dimension_numbers = #tpu.dot_dimension_numbers<[1], [0], [0], [1], [0, 0, 1, 1], [], []>} : vector<8x32xbf16>, vector<32x784xbf16>, vector<8x784xf32> -> vector<8x784xf32>
    %18 = vector.broadcast %1 : vector<8x1xf32> to vector<8x784xf32>
    %19 = arith.addf %17, %18 : vector<8x784xf32>
    %20 = math.tanh %19 : vector<8x784xf32>
    %21 = arith.truncf %20 : vector<8x784xf32> to vector<8x784xbf16>
    %cst_15 = arith.constant dense<0.000000e+00> : vector<8x196xf32>
    %22 = tpu.matmul %21, %2, %cst_15 {dimension_numbers = #tpu.dot_dimension_numbers<[1], [0], [0], [1], [0, 0, 1, 1], [], []>} : vector<8x784xbf16>, vector<784x196xbf16>, vector<8x196xf32> -> vector<8x196xf32>
    %23 = arith.truncf %22 : vector<8x196xf32> to vector<8x196xbf16>
    %c1_16 = arith.constant 1 : index
    %c0_17 = arith.constant 0 : index
    %c0_18 = arith.constant 0 : index
    %24 = vector.load %arg5[%c1_16, %c0_17, %c0_18] : memref<8x8x196xbf16, #tpu.memory_space<vmem>>, vector<1x8x196xbf16>
    %25 = vector.shape_cast %24 : vector<1x8x196xbf16> to vector<8x196xbf16>
    %26 = vector.shape_cast %23 : vector<8x196xbf16> to vector<1x8x196xbf16>
    tpu.vector_store %arg5[%c1_16, %c0_17, %c0_18], %26 {strides = array<i32>} : memref<8x8x196xbf16, #tpu.memory_space<vmem>>, vector<1x8x196xbf16>,
    %c2 = arith.constant 2 : index
    %c0_19 = arith.constant 0 : index
    %c0_20 = arith.constant 0 : index
    %27 = vector.load %arg1[%c2, %c0_19, %c0_20] : memref<8x32x784xbf16, #tpu.memory_space<vmem>>, vector<1x32x784xbf16>
    %28 = vector.shape_cast %27 : vector<1x32x784xbf16> to vector<32x784xbf16>
    %cst_21 = arith.constant dense<0.000000e+00> : vector<8x784xf32>
    %29 = tpu.matmul %0, %28, %cst_21 {dimension_numbers = #tpu.dot_dimension_numbers<[1], [0], [0], [1], [0, 0, 1, 1], [], []>} : vector<8x32xbf16>, vector<32x784xbf16>, vector<8x784xf32> -> vector<8x784xf32>
    %30 = vector.broadcast %1 : vector<8x1xf32> to vector<8x784xf32>
    %31 = arith.addf %29, %30 : vector<8x784xf32>
    %32 = math.tanh %31 : vector<8x784xf32>
    %33 = arith.truncf %32 : vector<8x784xf32> to vector<8x784xbf16>
    %cst_22 = arith.constant dense<0.000000e+00> : vector<8x196xf32>
    %34 = tpu.matmul %33, %2, %cst_22 {dimension_numbers = #tpu.dot_dimension_numbers<[1], [0], [0], [1], [0, 0, 1, 1], [], []>} : vector<8x784xbf16>, vector<784x196xbf16>, vector<8x196xf32> -> vector<8x196xf32>
    %35 = arith.truncf %34 : vector<8x196xf32> to vector<8x196xbf16>
    %c2_23 = arith.constant 2 : index
    %c0_24 = arith.constant 0 : index
    %c0_25 = arith.constant 0 : index
    %36 = vector.load %arg5[%c2_23, %c0_24, %c0_25] : memref<8x8x196xbf16, #tpu.memory_space<vmem>>, vector<1x8x196xbf16>
    %37 = vector.shape_cast %36 : vector<1x8x196xbf16> to vector<8x196xbf16>
    %38 = vector.shape_cast %35 : vector<8x196xbf16> to vector<1x8x196xbf16>
    tpu.vector_store %arg5[%c2_23, %c0_24, %c0_25], %38 {strides = array<i32>} : memref<8x8x196xbf16, #tpu.memory_space<vmem>>, vector<1x8x196xbf16>,
    %c3 = arith.constant 3 : index
    %c0_26 = arith.constant 0 : index
    %c0_27 = arith.constant 0 : index
    %39 = vector.load %arg1[%c3, %c0_26, %c0_27] : memref<8x32x784xbf16, #tpu.memory_space<vmem>>, vector<1x32x784xbf16>
    %40 = vector.shape_cast %39 : vector<1x32x784xbf16> to vector<32x784xbf16>
    %cst_28 = arith.constant dense<0.000000e+00> : vector<8x784xf32>
    %41 = tpu.matmul %0, %40, %cst_28 {dimension_numbers = #tpu.dot_dimension_numbers<[1], [0], [0], [1], [0, 0, 1, 1], [], []>} : vector<8x32xbf16>, vector<32x784xbf16>, vector<8x784xf32> -> vector<8x784xf32>
    %42 = vector.broadcast %1 : vector<8x1xf32> to vector<8x784xf32>
    %43 = arith.addf %41, %42 : vector<8x784xf32>
    %44 = math.tanh %43 : vector<8x784xf32>
    %45 = arith.truncf %44 : vector<8x784xf32> to vector<8x784xbf16>
    %cst_29 = arith.constant dense<0.000000e+00> : vector<8x196xf32>
    %46 = tpu.matmul %45, %2, %cst_29 {dimension_numbers = #tpu.dot_dimension_numbers<[1], [0], [0], [1], [0, 0, 1, 1], [], []>} : vector<8x784xbf16>, vector<784x196xbf16>, vector<8x196xf32> -> vector<8x196xf32>
    %47 = arith.truncf %46 : vector<8x196xf32> to vector<8x196xbf16>
    %c3_30 = arith.constant 3 : index
    %c0_31 = arith.constant 0 : index
    %c0_32 = arith.constant 0 : index
    %48 = vector.load %arg5[%c3_30, %c0_31, %c0_32] : memref<8x8x196xbf16, #tpu.memory_space<vmem>>, vector<1x8x196xbf16>
    %49 = vector.shape_cast %48 : vector<1x8x196xbf16> to vector<8x196xbf16>
    %50 = vector.shape_cast %47 : vector<8x196xbf16> to vector<1x8x196xbf16>
    tpu.vector_store %arg5[%c3_30, %c0_31, %c0_32], %50 {strides = array<i32>} : memref<8x8x196xbf16, #tpu.memory_space<vmem>>, vector<1x8x196xbf16>,
    %c4 = arith.constant 4 : index
    %c0_33 = arith.constant 0 : index
    %c0_34 = arith.constant 0 : index
    %51 = vector.load %arg1[%c4, %c0_33, %c0_34] : memref<8x32x784xbf16, #tpu.memory_space<vmem>>, vector<1x32x784xbf16>
    %52 = vector.shape_cast %51 : vector<1x32x784xbf16> to vector<32x784xbf16>
    %cst_35 = arith.constant dense<0.000000e+00> : vector<8x784xf32>
    %53 = tpu.matmul %0, %52, %cst_35 {dimension_numbers = #tpu.dot_dimension_numbers<[1], [0], [0], [1], [0, 0, 1, 1], [], []>} : vector<8x32xbf16>, vector<32x784xbf16>, vector<8x784xf32> -> vector<8x784xf32>
    %54 = vector.broadcast %1 : vector<8x1xf32> to vector<8x784xf32>
    %55 = arith.addf %53, %54 : vector<8x784xf32>
    %56 = math.tanh %55 : vector<8x784xf32>
    %57 = arith.truncf %56 : vector<8x784xf32> to vector<8x784xbf16>
    %cst_36 = arith.constant dense<0.000000e+00> : vector<8x196xf32>
    %58 = tpu.matmul %57, %2, %cst_36 {dimension_numbers = #tpu.dot_dimension_numbers<[1], [0], [0], [1], [0, 0, 1, 1], [], []>} : vector<8x784xbf16>, vector<784x196xbf16>, vector<8x196xf32> -> vector<8x196xf32>
    %59 = arith.truncf %58 : vector<8x196xf32> to vector<8x196xbf16>
    %c4_37 = arith.constant 4 : index
    %c0_38 = arith.constant 0 : index
    %c0_39 = arith.constant 0 : index
    %60 = vector.load %arg5[%c4_37, %c0_38, %c0_39] : memref<8x8x196xbf16, #tpu.memory_space<vmem>>, vector<1x8x196xbf16>
    %61 = vector.shape_cast %60 : vector<1x8x196xbf16> to vector<8x196xbf16>
    %62 = vector.shape_cast %59 : vector<8x196xbf16> to vector<1x8x196xbf16>
    tpu.vector_store %arg5[%c4_37, %c0_38, %c0_39], %62 {strides = array<i32>} : memref<8x8x196xbf16, #tpu.memory_space<vmem>>, vector<1x8x196xbf16>,
    %c5 = arith.constant 5 : index
    %c0_40 = arith.constant 0 : index
    %c0_41 = arith.constant 0 : index
    %63 = vector.load %arg1[%c5, %c0_40, %c0_41] : memref<8x32x784xbf16, #tpu.memory_space<vmem>>, vector<1x32x784xbf16>
    %64 = vector.shape_cast %63 : vector<1x32x784xbf16> to vector<32x784xbf16>
    %cst_42 = arith.constant dense<0.000000e+00> : vector<8x784xf32>
    %65 = tpu.matmul %0, %64, %cst_42 {dimension_numbers = #tpu.dot_dimension_numbers<[1], [0], [0], [1], [0, 0, 1, 1], [], []>} : vector<8x32xbf16>, vector<32x784xbf16>, vector<8x784xf32> -> vector<8x784xf32>
    %66 = vector.broadcast %1 : vector<8x1xf32> to vector<8x784xf32>
    %67 = arith.addf %65, %66 : vector<8x784xf32>
    %68 = math.tanh %67 : vector<8x784xf32>
    %69 = arith.truncf %68 : vector<8x784xf32> to vector<8x784xbf16>
    %cst_43 = arith.constant dense<0.000000e+00> : vector<8x196xf32>
    %70 = tpu.matmul %69, %2, %cst_43 {dimension_numbers = #tpu.dot_dimension_numbers<[1], [0], [0], [1], [0, 0, 1, 1], [], []>} : vector<8x784xbf16>, vector<784x196xbf16>, vector<8x196xf32> -> vector<8x196xf32>
    %71 = arith.truncf %70 : vector<8x196xf32> to vector<8x196xbf16>
    %c5_44 = arith.constant 5 : index
    %c0_45 = arith.constant 0 : index
    %c0_46 = arith.constant 0 : index
    %72 = vector.load %arg5[%c5_44, %c0_45, %c0_46] : memref<8x8x196xbf16, #tpu.memory_space<vmem>>, vector<1x8x196xbf16>
    %73 = vector.shape_cast %72 : vector<1x8x196xbf16> to vector<8x196xbf16>
    %74 = vector.shape_cast %71 : vector<8x196xbf16> to vector<1x8x196xbf16>
    tpu.vector_store %arg5[%c5_44, %c0_45, %c0_46], %74 {strides = array<i32>} : memref<8x8x196xbf16, #tpu.memory_space<vmem>>, vector<1x8x196xbf16>,
    %c6 = arith.constant 6 : index
    %c0_47 = arith.constant 0 : index
    %c0_48 = arith.constant 0 : index
    %75 = vector.load %arg1[%c6, %c0_47, %c0_48] : memref<8x32x784xbf16, #tpu.memory_space<vmem>>, vector<1x32x784xbf16>
    %76 = vector.shape_cast %75 : vector<1x32x784xbf16> to vector<32x784xbf16>
    %cst_49 = arith.constant dense<0.000000e+00> : vector<8x784xf32>
    %77 = tpu.matmul %0, %76, %cst_49 {dimension_numbers = #tpu.dot_dimension_numbers<[1], [0], [0], [1], [0, 0, 1, 1], [], []>} : vector<8x32xbf16>, vector<32x784xbf16>, vector<8x784xf32> -> vector<8x784xf32>
    %78 = vector.broadcast %1 : vector<8x1xf32> to vector<8x784xf32>
    %79 = arith.addf %77, %78 : vector<8x784xf32>
    %80 = math.tanh %79 : vector<8x784xf32>
    %81 = arith.truncf %80 : vector<8x784xf32> to vector<8x784xbf16>
    %cst_50 = arith.constant dense<0.000000e+00> : vector<8x196xf32>
    %82 = tpu.matmul %81, %2, %cst_50 {dimension_numbers = #tpu.dot_dimension_numbers<[1], [0], [0], [1], [0, 0, 1, 1], [], []>} : vector<8x784xbf16>, vector<784x196xbf16>, vector<8x196xf32> -> vector<8x196xf32>
    %83 = arith.truncf %82 : vector<8x196xf32> to vector<8x196xbf16>
    %c6_51 = arith.constant 6 : index
    %c0_52 = arith.constant 0 : index
    %c0_53 = arith.constant 0 : index
    %84 = vector.load %arg5[%c6_51, %c0_52, %c0_53] : memref<8x8x196xbf16, #tpu.memory_space<vmem>>, vector<1x8x196xbf16>
    %85 = vector.shape_cast %84 : vector<1x8x196xbf16> to vector<8x196xbf16>
    %86 = vector.shape_cast %83 : vector<8x196xbf16> to vector<1x8x196xbf16>
    tpu.vector_store %arg5[%c6_51, %c0_52, %c0_53], %86 {strides = array<i32>} : memref<8x8x196xbf16, #tpu.memory_space<vmem>>, vector<1x8x196xbf16>,
    %c7 = arith.constant 7 : index
    %c0_54 = arith.constant 0 : index
    %c0_55 = arith.constant 0 : index
    %87 = vector.load %arg1[%c7, %c0_54, %c0_55] : memref<8x32x784xbf16, #tpu.memory_space<vmem>>, vector<1x32x784xbf16>
    %88 = vector.shape_cast %87 : vector<1x32x784xbf16> to vector<32x784xbf16>
    %cst_56 = arith.constant dense<0.000000e+00> : vector<8x784xf32>
    %89 = tpu.matmul %0, %88, %cst_56 {dimension_numbers = #tpu.dot_dimension_numbers<[1], [0], [0], [1], [0, 0, 1, 1], [], []>} : vector<8x32xbf16>, vector<32x784xbf16>, vector<8x784xf32> -> vector<8x784xf32>
    %90 = vector.broadcast %1 : vector<8x1xf32> to vector<8x784xf32>
    %91 = arith.addf %89, %90 : vector<8x784xf32>
    %92 = math.tanh %91 : vector<8x784xf32>
    %93 = arith.truncf %92 : vector<8x784xf32> to vector<8x784xbf16>
    %cst_57 = arith.constant dense<0.000000e+00> : vector<8x196xf32>
    %94 = tpu.matmul %93, %2, %cst_57 {dimension_numbers = #tpu.dot_dimension_numbers<[1], [0], [0], [1], [0, 0, 1, 1], [], []>} : vector<8x784xbf16>, vector<784x196xbf16>, vector<8x196xf32> -> vector<8x196xf32>
    %95 = arith.truncf %94 : vector<8x196xf32> to vector<8x196xbf16>
    %c7_58 = arith.constant 7 : index
    %c0_59 = arith.constant 0 : index
    %c0_60 = arith.constant 0 : index
    %96 = vector.load %arg5[%c7_58, %c0_59, %c0_60] : memref<8x8x196xbf16, #tpu.memory_space<vmem>>, vector<1x8x196xbf16>
    %97 = vector.shape_cast %96 : vector<1x8x196xbf16> to vector<8x196xbf16>
    %98 = vector.shape_cast %95 : vector<8x196xbf16> to vector<1x8x196xbf16>
    tpu.vector_store %arg5[%c7_58, %c0_59, %c0_60], %98 {strides = array<i32>} : memref<8x8x196xbf16, #tpu.memory_space<vmem>>, vector<1x8x196xbf16>,
    return
  }
  func.func @transform_0(%arg0: i32) -> (i32, i32, i32) {
    %c0_i32 = arith.constant 0 : i32
    %c0_i32_0 = arith.constant 0 : i32
    %c0_i32_1 = arith.constant 0 : i32
    return %arg0, %c0_i32, %c0_i32_0 : i32, i32, i32
  }
  func.func @transform_1(%arg0: i32) -> (i32, i32) {
    %c0_i32 = arith.constant 0 : i32
    %c0_i32_0 = arith.constant 0 : i32
    %c0_i32_1 = arith.constant 0 : i32
    return %c0_i32, %c0_i32_0 : i32, i32
  }
  func.func @transform_2(%arg0: i32) -> (i32, i32) {
    %c0_i32 = arith.constant 0 : i32
    %c0_i32_0 = arith.constant 0 : i32
    %c0_i32_1 = arith.constant 0 : i32
    return %c0_i32, %c0_i32_0 : i32, i32
  }
  func.func @transform_3(%arg0: i32) -> (i32, i32) {
    %c0_i32 = arith.constant 0 : i32
    %c0_i32_0 = arith.constant 0 : i32
    %c0_i32_1 = arith.constant 0 : i32
    return %c0_i32, %c0_i32_0 : i32, i32
  }
  func.func @transform_4(%arg0: i32) -> (i32, i32, i32) {
    %c0_i32 = arith.constant 0 : i32
    %c0_i32_0 = arith.constant 0 : i32
    %c0_i32_1 = arith.constant 0 : i32
    return %arg0, %c0_i32, %c0_i32_0 : i32, i32, i32
  }
}

module attributes {stable_mosaic.version = 11 : i64} {
  func.func @_conv_stage_kernel(%arg0: i32, %arg1: memref<8x152x100xbf16, #tpu.memory_space<vmem>>, %arg2: memref<16x152xbf16, #tpu.memory_space<vmem>>, %arg3: memref<16x1xf32, #tpu.memory_space<vmem>>, %arg4: memref<100x25xbf16, #tpu.memory_space<vmem>>, %arg5: memref<8x16x25xbf16, #tpu.memory_space<vmem>>) attributes {dimension_semantics = [#tpu.dimension_semantics<parallel>], iteration_bounds = array<i64: 1>, scalar_prefetch = 0 : i64, scratch_operands = 0 : i64, tpu.core_type = #tpu.core_type<tc>, window_params = [{transform_indices = @transform_0, window_bounds = array<i64: 8, 152, 100>}, {pipeline_mode = #tpu.pipeline_mode<synchronous>, transform_indices = @transform_1, window_bounds = array<i64: 16, 152>}, {pipeline_mode = #tpu.pipeline_mode<synchronous>, transform_indices = @transform_2, window_bounds = array<i64: 16, 1>}, {pipeline_mode = #tpu.pipeline_mode<synchronous>, transform_indices = @transform_3, window_bounds = array<i64: 100, 25>}, {transform_indices = @transform_4, window_bounds = array<i64: 8, 16, 25>}]} {
    %c0 = arith.constant 0 : index
    %c0_0 = arith.constant 0 : index
    %0 = vector.load %arg2[%c0, %c0_0] : memref<16x152xbf16, #tpu.memory_space<vmem>>, vector<16x152xbf16>
    %c0_1 = arith.constant 0 : index
    %c0_2 = arith.constant 0 : index
    %1 = vector.load %arg3[%c0_1, %c0_2] : memref<16x1xf32, #tpu.memory_space<vmem>>, vector<16x1xf32>
    %c0_3 = arith.constant 0 : index
    %c0_4 = arith.constant 0 : index
    %2 = vector.load %arg4[%c0_3, %c0_4] : memref<100x25xbf16, #tpu.memory_space<vmem>>, vector<100x25xbf16>
    %c0_5 = arith.constant 0 : index
    %c0_6 = arith.constant 0 : index
    %c0_7 = arith.constant 0 : index
    %3 = vector.load %arg1[%c0_5, %c0_6, %c0_7] : memref<8x152x100xbf16, #tpu.memory_space<vmem>>, vector<1x152x100xbf16>
    %4 = vector.shape_cast %3 : vector<1x152x100xbf16> to vector<152x100xbf16>
    %cst = arith.constant dense<0.000000e+00> : vector<16x100xf32>
    %5 = tpu.matmul %0, %4, %cst {dimension_numbers = #tpu.dot_dimension_numbers<[1], [0], [0], [1], [0, 0, 1, 1], [], []>} : vector<16x152xbf16>, vector<152x100xbf16>, vector<16x100xf32> -> vector<16x100xf32>
    %6 = vector.broadcast %1 : vector<16x1xf32> to vector<16x100xf32>
    %7 = arith.addf %5, %6 : vector<16x100xf32>
    %8 = math.tanh %7 : vector<16x100xf32>
    %9 = arith.truncf %8 : vector<16x100xf32> to vector<16x100xbf16>
    %cst_8 = arith.constant dense<0.000000e+00> : vector<16x25xf32>
    %10 = tpu.matmul %9, %2, %cst_8 {dimension_numbers = #tpu.dot_dimension_numbers<[1], [0], [0], [1], [0, 0, 1, 1], [], []>} : vector<16x100xbf16>, vector<100x25xbf16>, vector<16x25xf32> -> vector<16x25xf32>
    %11 = arith.truncf %10 : vector<16x25xf32> to vector<16x25xbf16>
    %c0_9 = arith.constant 0 : index
    %c0_10 = arith.constant 0 : index
    %c0_11 = arith.constant 0 : index
    %12 = vector.load %arg5[%c0_9, %c0_10, %c0_11] : memref<8x16x25xbf16, #tpu.memory_space<vmem>>, vector<1x16x25xbf16>
    %13 = vector.shape_cast %12 : vector<1x16x25xbf16> to vector<16x25xbf16>
    %14 = vector.shape_cast %11 : vector<16x25xbf16> to vector<1x16x25xbf16>
    tpu.vector_store %arg5[%c0_9, %c0_10, %c0_11], %14 {strides = array<i32>} : memref<8x16x25xbf16, #tpu.memory_space<vmem>>, vector<1x16x25xbf16>,
    %c1 = arith.constant 1 : index
    %c0_12 = arith.constant 0 : index
    %c0_13 = arith.constant 0 : index
    %15 = vector.load %arg1[%c1, %c0_12, %c0_13] : memref<8x152x100xbf16, #tpu.memory_space<vmem>>, vector<1x152x100xbf16>
    %16 = vector.shape_cast %15 : vector<1x152x100xbf16> to vector<152x100xbf16>
    %cst_14 = arith.constant dense<0.000000e+00> : vector<16x100xf32>
    %17 = tpu.matmul %0, %16, %cst_14 {dimension_numbers = #tpu.dot_dimension_numbers<[1], [0], [0], [1], [0, 0, 1, 1], [], []>} : vector<16x152xbf16>, vector<152x100xbf16>, vector<16x100xf32> -> vector<16x100xf32>
    %18 = vector.broadcast %1 : vector<16x1xf32> to vector<16x100xf32>
    %19 = arith.addf %17, %18 : vector<16x100xf32>
    %20 = math.tanh %19 : vector<16x100xf32>
    %21 = arith.truncf %20 : vector<16x100xf32> to vector<16x100xbf16>
    %cst_15 = arith.constant dense<0.000000e+00> : vector<16x25xf32>
    %22 = tpu.matmul %21, %2, %cst_15 {dimension_numbers = #tpu.dot_dimension_numbers<[1], [0], [0], [1], [0, 0, 1, 1], [], []>} : vector<16x100xbf16>, vector<100x25xbf16>, vector<16x25xf32> -> vector<16x25xf32>
    %23 = arith.truncf %22 : vector<16x25xf32> to vector<16x25xbf16>
    %c1_16 = arith.constant 1 : index
    %c0_17 = arith.constant 0 : index
    %c0_18 = arith.constant 0 : index
    %24 = vector.load %arg5[%c1_16, %c0_17, %c0_18] : memref<8x16x25xbf16, #tpu.memory_space<vmem>>, vector<1x16x25xbf16>
    %25 = vector.shape_cast %24 : vector<1x16x25xbf16> to vector<16x25xbf16>
    %26 = vector.shape_cast %23 : vector<16x25xbf16> to vector<1x16x25xbf16>
    tpu.vector_store %arg5[%c1_16, %c0_17, %c0_18], %26 {strides = array<i32>} : memref<8x16x25xbf16, #tpu.memory_space<vmem>>, vector<1x16x25xbf16>,
    %c2 = arith.constant 2 : index
    %c0_19 = arith.constant 0 : index
    %c0_20 = arith.constant 0 : index
    %27 = vector.load %arg1[%c2, %c0_19, %c0_20] : memref<8x152x100xbf16, #tpu.memory_space<vmem>>, vector<1x152x100xbf16>
    %28 = vector.shape_cast %27 : vector<1x152x100xbf16> to vector<152x100xbf16>
    %cst_21 = arith.constant dense<0.000000e+00> : vector<16x100xf32>
    %29 = tpu.matmul %0, %28, %cst_21 {dimension_numbers = #tpu.dot_dimension_numbers<[1], [0], [0], [1], [0, 0, 1, 1], [], []>} : vector<16x152xbf16>, vector<152x100xbf16>, vector<16x100xf32> -> vector<16x100xf32>
    %30 = vector.broadcast %1 : vector<16x1xf32> to vector<16x100xf32>
    %31 = arith.addf %29, %30 : vector<16x100xf32>
    %32 = math.tanh %31 : vector<16x100xf32>
    %33 = arith.truncf %32 : vector<16x100xf32> to vector<16x100xbf16>
    %cst_22 = arith.constant dense<0.000000e+00> : vector<16x25xf32>
    %34 = tpu.matmul %33, %2, %cst_22 {dimension_numbers = #tpu.dot_dimension_numbers<[1], [0], [0], [1], [0, 0, 1, 1], [], []>} : vector<16x100xbf16>, vector<100x25xbf16>, vector<16x25xf32> -> vector<16x25xf32>
    %35 = arith.truncf %34 : vector<16x25xf32> to vector<16x25xbf16>
    %c2_23 = arith.constant 2 : index
    %c0_24 = arith.constant 0 : index
    %c0_25 = arith.constant 0 : index
    %36 = vector.load %arg5[%c2_23, %c0_24, %c0_25] : memref<8x16x25xbf16, #tpu.memory_space<vmem>>, vector<1x16x25xbf16>
    %37 = vector.shape_cast %36 : vector<1x16x25xbf16> to vector<16x25xbf16>
    %38 = vector.shape_cast %35 : vector<16x25xbf16> to vector<1x16x25xbf16>
    tpu.vector_store %arg5[%c2_23, %c0_24, %c0_25], %38 {strides = array<i32>} : memref<8x16x25xbf16, #tpu.memory_space<vmem>>, vector<1x16x25xbf16>,
    %c3 = arith.constant 3 : index
    %c0_26 = arith.constant 0 : index
    %c0_27 = arith.constant 0 : index
    %39 = vector.load %arg1[%c3, %c0_26, %c0_27] : memref<8x152x100xbf16, #tpu.memory_space<vmem>>, vector<1x152x100xbf16>
    %40 = vector.shape_cast %39 : vector<1x152x100xbf16> to vector<152x100xbf16>
    %cst_28 = arith.constant dense<0.000000e+00> : vector<16x100xf32>
    %41 = tpu.matmul %0, %40, %cst_28 {dimension_numbers = #tpu.dot_dimension_numbers<[1], [0], [0], [1], [0, 0, 1, 1], [], []>} : vector<16x152xbf16>, vector<152x100xbf16>, vector<16x100xf32> -> vector<16x100xf32>
    %42 = vector.broadcast %1 : vector<16x1xf32> to vector<16x100xf32>
    %43 = arith.addf %41, %42 : vector<16x100xf32>
    %44 = math.tanh %43 : vector<16x100xf32>
    %45 = arith.truncf %44 : vector<16x100xf32> to vector<16x100xbf16>
    %cst_29 = arith.constant dense<0.000000e+00> : vector<16x25xf32>
    %46 = tpu.matmul %45, %2, %cst_29 {dimension_numbers = #tpu.dot_dimension_numbers<[1], [0], [0], [1], [0, 0, 1, 1], [], []>} : vector<16x100xbf16>, vector<100x25xbf16>, vector<16x25xf32> -> vector<16x25xf32>
    %47 = arith.truncf %46 : vector<16x25xf32> to vector<16x25xbf16>
    %c3_30 = arith.constant 3 : index
    %c0_31 = arith.constant 0 : index
    %c0_32 = arith.constant 0 : index
    %48 = vector.load %arg5[%c3_30, %c0_31, %c0_32] : memref<8x16x25xbf16, #tpu.memory_space<vmem>>, vector<1x16x25xbf16>
    %49 = vector.shape_cast %48 : vector<1x16x25xbf16> to vector<16x25xbf16>
    %50 = vector.shape_cast %47 : vector<16x25xbf16> to vector<1x16x25xbf16>
    tpu.vector_store %arg5[%c3_30, %c0_31, %c0_32], %50 {strides = array<i32>} : memref<8x16x25xbf16, #tpu.memory_space<vmem>>, vector<1x16x25xbf16>,
    %c4 = arith.constant 4 : index
    %c0_33 = arith.constant 0 : index
    %c0_34 = arith.constant 0 : index
    %51 = vector.load %arg1[%c4, %c0_33, %c0_34] : memref<8x152x100xbf16, #tpu.memory_space<vmem>>, vector<1x152x100xbf16>
    %52 = vector.shape_cast %51 : vector<1x152x100xbf16> to vector<152x100xbf16>
    %cst_35 = arith.constant dense<0.000000e+00> : vector<16x100xf32>
    %53 = tpu.matmul %0, %52, %cst_35 {dimension_numbers = #tpu.dot_dimension_numbers<[1], [0], [0], [1], [0, 0, 1, 1], [], []>} : vector<16x152xbf16>, vector<152x100xbf16>, vector<16x100xf32> -> vector<16x100xf32>
    %54 = vector.broadcast %1 : vector<16x1xf32> to vector<16x100xf32>
    %55 = arith.addf %53, %54 : vector<16x100xf32>
    %56 = math.tanh %55 : vector<16x100xf32>
    %57 = arith.truncf %56 : vector<16x100xf32> to vector<16x100xbf16>
    %cst_36 = arith.constant dense<0.000000e+00> : vector<16x25xf32>
    %58 = tpu.matmul %57, %2, %cst_36 {dimension_numbers = #tpu.dot_dimension_numbers<[1], [0], [0], [1], [0, 0, 1, 1], [], []>} : vector<16x100xbf16>, vector<100x25xbf16>, vector<16x25xf32> -> vector<16x25xf32>
    %59 = arith.truncf %58 : vector<16x25xf32> to vector<16x25xbf16>
    %c4_37 = arith.constant 4 : index
    %c0_38 = arith.constant 0 : index
    %c0_39 = arith.constant 0 : index
    %60 = vector.load %arg5[%c4_37, %c0_38, %c0_39] : memref<8x16x25xbf16, #tpu.memory_space<vmem>>, vector<1x16x25xbf16>
    %61 = vector.shape_cast %60 : vector<1x16x25xbf16> to vector<16x25xbf16>
    %62 = vector.shape_cast %59 : vector<16x25xbf16> to vector<1x16x25xbf16>
    tpu.vector_store %arg5[%c4_37, %c0_38, %c0_39], %62 {strides = array<i32>} : memref<8x16x25xbf16, #tpu.memory_space<vmem>>, vector<1x16x25xbf16>,
    %c5 = arith.constant 5 : index
    %c0_40 = arith.constant 0 : index
    %c0_41 = arith.constant 0 : index
    %63 = vector.load %arg1[%c5, %c0_40, %c0_41] : memref<8x152x100xbf16, #tpu.memory_space<vmem>>, vector<1x152x100xbf16>
    %64 = vector.shape_cast %63 : vector<1x152x100xbf16> to vector<152x100xbf16>
    %cst_42 = arith.constant dense<0.000000e+00> : vector<16x100xf32>
    %65 = tpu.matmul %0, %64, %cst_42 {dimension_numbers = #tpu.dot_dimension_numbers<[1], [0], [0], [1], [0, 0, 1, 1], [], []>} : vector<16x152xbf16>, vector<152x100xbf16>, vector<16x100xf32> -> vector<16x100xf32>
    %66 = vector.broadcast %1 : vector<16x1xf32> to vector<16x100xf32>
    %67 = arith.addf %65, %66 : vector<16x100xf32>
    %68 = math.tanh %67 : vector<16x100xf32>
    %69 = arith.truncf %68 : vector<16x100xf32> to vector<16x100xbf16>
    %cst_43 = arith.constant dense<0.000000e+00> : vector<16x25xf32>
    %70 = tpu.matmul %69, %2, %cst_43 {dimension_numbers = #tpu.dot_dimension_numbers<[1], [0], [0], [1], [0, 0, 1, 1], [], []>} : vector<16x100xbf16>, vector<100x25xbf16>, vector<16x25xf32> -> vector<16x25xf32>
    %71 = arith.truncf %70 : vector<16x25xf32> to vector<16x25xbf16>
    %c5_44 = arith.constant 5 : index
    %c0_45 = arith.constant 0 : index
    %c0_46 = arith.constant 0 : index
    %72 = vector.load %arg5[%c5_44, %c0_45, %c0_46] : memref<8x16x25xbf16, #tpu.memory_space<vmem>>, vector<1x16x25xbf16>
    %73 = vector.shape_cast %72 : vector<1x16x25xbf16> to vector<16x25xbf16>
    %74 = vector.shape_cast %71 : vector<16x25xbf16> to vector<1x16x25xbf16>
    tpu.vector_store %arg5[%c5_44, %c0_45, %c0_46], %74 {strides = array<i32>} : memref<8x16x25xbf16, #tpu.memory_space<vmem>>, vector<1x16x25xbf16>,
    %c6 = arith.constant 6 : index
    %c0_47 = arith.constant 0 : index
    %c0_48 = arith.constant 0 : index
    %75 = vector.load %arg1[%c6, %c0_47, %c0_48] : memref<8x152x100xbf16, #tpu.memory_space<vmem>>, vector<1x152x100xbf16>
    %76 = vector.shape_cast %75 : vector<1x152x100xbf16> to vector<152x100xbf16>
    %cst_49 = arith.constant dense<0.000000e+00> : vector<16x100xf32>
    %77 = tpu.matmul %0, %76, %cst_49 {dimension_numbers = #tpu.dot_dimension_numbers<[1], [0], [0], [1], [0, 0, 1, 1], [], []>} : vector<16x152xbf16>, vector<152x100xbf16>, vector<16x100xf32> -> vector<16x100xf32>
    %78 = vector.broadcast %1 : vector<16x1xf32> to vector<16x100xf32>
    %79 = arith.addf %77, %78 : vector<16x100xf32>
    %80 = math.tanh %79 : vector<16x100xf32>
    %81 = arith.truncf %80 : vector<16x100xf32> to vector<16x100xbf16>
    %cst_50 = arith.constant dense<0.000000e+00> : vector<16x25xf32>
    %82 = tpu.matmul %81, %2, %cst_50 {dimension_numbers = #tpu.dot_dimension_numbers<[1], [0], [0], [1], [0, 0, 1, 1], [], []>} : vector<16x100xbf16>, vector<100x25xbf16>, vector<16x25xf32> -> vector<16x25xf32>
    %83 = arith.truncf %82 : vector<16x25xf32> to vector<16x25xbf16>
    %c6_51 = arith.constant 6 : index
    %c0_52 = arith.constant 0 : index
    %c0_53 = arith.constant 0 : index
    %84 = vector.load %arg5[%c6_51, %c0_52, %c0_53] : memref<8x16x25xbf16, #tpu.memory_space<vmem>>, vector<1x16x25xbf16>
    %85 = vector.shape_cast %84 : vector<1x16x25xbf16> to vector<16x25xbf16>
    %86 = vector.shape_cast %83 : vector<16x25xbf16> to vector<1x16x25xbf16>
    tpu.vector_store %arg5[%c6_51, %c0_52, %c0_53], %86 {strides = array<i32>} : memref<8x16x25xbf16, #tpu.memory_space<vmem>>, vector<1x16x25xbf16>,
    %c7 = arith.constant 7 : index
    %c0_54 = arith.constant 0 : index
    %c0_55 = arith.constant 0 : index
    %87 = vector.load %arg1[%c7, %c0_54, %c0_55] : memref<8x152x100xbf16, #tpu.memory_space<vmem>>, vector<1x152x100xbf16>
    %88 = vector.shape_cast %87 : vector<1x152x100xbf16> to vector<152x100xbf16>
    %cst_56 = arith.constant dense<0.000000e+00> : vector<16x100xf32>
    %89 = tpu.matmul %0, %88, %cst_56 {dimension_numbers = #tpu.dot_dimension_numbers<[1], [0], [0], [1], [0, 0, 1, 1], [], []>} : vector<16x152xbf16>, vector<152x100xbf16>, vector<16x100xf32> -> vector<16x100xf32>
    %90 = vector.broadcast %1 : vector<16x1xf32> to vector<16x100xf32>
    %91 = arith.addf %89, %90 : vector<16x100xf32>
    %92 = math.tanh %91 : vector<16x100xf32>
    %93 = arith.truncf %92 : vector<16x100xf32> to vector<16x100xbf16>
    %cst_57 = arith.constant dense<0.000000e+00> : vector<16x25xf32>
    %94 = tpu.matmul %93, %2, %cst_57 {dimension_numbers = #tpu.dot_dimension_numbers<[1], [0], [0], [1], [0, 0, 1, 1], [], []>} : vector<16x100xbf16>, vector<100x25xbf16>, vector<16x25xf32> -> vector<16x25xf32>
    %95 = arith.truncf %94 : vector<16x25xf32> to vector<16x25xbf16>
    %c7_58 = arith.constant 7 : index
    %c0_59 = arith.constant 0 : index
    %c0_60 = arith.constant 0 : index
    %96 = vector.load %arg5[%c7_58, %c0_59, %c0_60] : memref<8x16x25xbf16, #tpu.memory_space<vmem>>, vector<1x16x25xbf16>
    %97 = vector.shape_cast %96 : vector<1x16x25xbf16> to vector<16x25xbf16>
    %98 = vector.shape_cast %95 : vector<16x25xbf16> to vector<1x16x25xbf16>
    tpu.vector_store %arg5[%c7_58, %c0_59, %c0_60], %98 {strides = array<i32>} : memref<8x16x25xbf16, #tpu.memory_space<vmem>>, vector<1x16x25xbf16>,
    return
  }
  func.func @transform_0(%arg0: i32) -> (i32, i32, i32) {
    %c0_i32 = arith.constant 0 : i32
    %c0_i32_0 = arith.constant 0 : i32
    %c0_i32_1 = arith.constant 0 : i32
    return %arg0, %c0_i32, %c0_i32_0 : i32, i32, i32
  }
  func.func @transform_1(%arg0: i32) -> (i32, i32) {
    %c0_i32 = arith.constant 0 : i32
    %c0_i32_0 = arith.constant 0 : i32
    %c0_i32_1 = arith.constant 0 : i32
    return %c0_i32, %c0_i32_0 : i32, i32
  }
  func.func @transform_2(%arg0: i32) -> (i32, i32) {
    %c0_i32 = arith.constant 0 : i32
    %c0_i32_0 = arith.constant 0 : i32
    %c0_i32_1 = arith.constant 0 : i32
    return %c0_i32, %c0_i32_0 : i32, i32
  }
  func.func @transform_3(%arg0: i32) -> (i32, i32) {
    %c0_i32 = arith.constant 0 : i32
    %c0_i32_0 = arith.constant 0 : i32
    %c0_i32_1 = arith.constant 0 : i32
    return %c0_i32, %c0_i32_0 : i32, i32
  }
  func.func @transform_4(%arg0: i32) -> (i32, i32, i32) {
    %c0_i32 = arith.constant 0 : i32
    %c0_i32_0 = arith.constant 0 : i32
    %c0_i32_1 = arith.constant 0 : i32
    return %arg0, %c0_i32, %c0_i32_0 : i32, i32, i32
  }
}

module attributes {stable_mosaic.version = 11 : i64} {
  func.func @_tail_kernel(%arg0: i32, %arg1: memref<8x400xbf16, #tpu.memory_space<vmem>>, %arg2: memref<400x128xbf16, #tpu.memory_space<vmem>>, %arg3: memref<1x128xf32, #tpu.memory_space<vmem>>, %arg4: memref<128x128xbf16, #tpu.memory_space<vmem>>, %arg5: memref<1x128xf32, #tpu.memory_space<vmem>>, %arg6: memref<128x128xbf16, #tpu.memory_space<vmem>>, %arg7: memref<1x128xf32, #tpu.memory_space<vmem>>, %arg8: memref<8x128xf32, #tpu.memory_space<vmem>>) attributes {dimension_semantics = [#tpu.dimension_semantics<parallel>], iteration_bounds = array<i64: 1>, scalar_prefetch = 0 : i64, scratch_operands = 0 : i64, tpu.core_type = #tpu.core_type<tc>, window_params = [{transform_indices = @transform_0, window_bounds = array<i64: 8, 400>}, {pipeline_mode = #tpu.pipeline_mode<synchronous>, transform_indices = @transform_1, window_bounds = array<i64: 400, 128>}, {pipeline_mode = #tpu.pipeline_mode<synchronous>, transform_indices = @transform_2, window_bounds = array<i64: 1, 128>}, {pipeline_mode = #tpu.pipeline_mode<synchronous>, transform_indices = @transform_3, window_bounds = array<i64: 128, 128>}, {pipeline_mode = #tpu.pipeline_mode<synchronous>, transform_indices = @transform_4, window_bounds = array<i64: 1, 128>}, {pipeline_mode = #tpu.pipeline_mode<synchronous>, transform_indices = @transform_5, window_bounds = array<i64: 128, 128>}, {pipeline_mode = #tpu.pipeline_mode<synchronous>, transform_indices = @transform_6, window_bounds = array<i64: 1, 128>}, {transform_indices = @transform_7, window_bounds = array<i64: 8, 128>}]} {
    %c0 = arith.constant 0 : index
    %c0_0 = arith.constant 0 : index
    %0 = vector.load %arg1[%c0, %c0_0] : memref<8x400xbf16, #tpu.memory_space<vmem>>, vector<8x400xbf16>
    %c0_1 = arith.constant 0 : index
    %c0_2 = arith.constant 0 : index
    %1 = vector.load %arg2[%c0_1, %c0_2] : memref<400x128xbf16, #tpu.memory_space<vmem>>, vector<400x128xbf16>
    %cst = arith.constant dense<0.000000e+00> : vector<8x128xf32>
    %2 = tpu.matmul %0, %1, %cst {dimension_numbers = #tpu.dot_dimension_numbers<[1], [0], [0], [1], [0, 0, 1, 1], [], []>} : vector<8x400xbf16>, vector<400x128xbf16>, vector<8x128xf32> -> vector<8x128xf32>
    %c0_3 = arith.constant 0 : index
    %c0_4 = arith.constant 0 : index
    %3 = vector.load %arg3[%c0_3, %c0_4] : memref<1x128xf32, #tpu.memory_space<vmem>>, vector<1x128xf32>
    %4 = vector.broadcast %3 : vector<1x128xf32> to vector<8x128xf32>
    %5 = arith.addf %2, %4 : vector<8x128xf32>
    %6 = math.tanh %5 : vector<8x128xf32>
    %7 = arith.truncf %6 : vector<8x128xf32> to vector<8x128xbf16>
    %c0_5 = arith.constant 0 : index
    %c0_6 = arith.constant 0 : index
    %8 = vector.load %arg4[%c0_5, %c0_6] : memref<128x128xbf16, #tpu.memory_space<vmem>>, vector<128x128xbf16>
    %cst_7 = arith.constant dense<0.000000e+00> : vector<8x128xf32>
    %9 = tpu.matmul %7, %8, %cst_7 {dimension_numbers = #tpu.dot_dimension_numbers<[1], [0], [0], [1], [0, 0, 1, 1], [], []>} : vector<8x128xbf16>, vector<128x128xbf16>, vector<8x128xf32> -> vector<8x128xf32>
    %c0_8 = arith.constant 0 : index
    %c0_9 = arith.constant 0 : index
    %10 = vector.load %arg5[%c0_8, %c0_9] : memref<1x128xf32, #tpu.memory_space<vmem>>, vector<1x128xf32>
    %11 = vector.broadcast %10 : vector<1x128xf32> to vector<8x128xf32>
    %12 = arith.addf %9, %11 : vector<8x128xf32>
    %13 = math.tanh %12 : vector<8x128xf32>
    %14 = arith.truncf %13 : vector<8x128xf32> to vector<8x128xbf16>
    %c0_10 = arith.constant 0 : index
    %c0_11 = arith.constant 0 : index
    %15 = vector.load %arg6[%c0_10, %c0_11] : memref<128x128xbf16, #tpu.memory_space<vmem>>, vector<128x128xbf16>
    %cst_12 = arith.constant dense<0.000000e+00> : vector<8x128xf32>
    %16 = tpu.matmul %14, %15, %cst_12 {dimension_numbers = #tpu.dot_dimension_numbers<[1], [0], [0], [1], [0, 0, 1, 1], [], []>} : vector<8x128xbf16>, vector<128x128xbf16>, vector<8x128xf32> -> vector<8x128xf32>
    %c0_13 = arith.constant 0 : index
    %c0_14 = arith.constant 0 : index
    %17 = vector.load %arg7[%c0_13, %c0_14] : memref<1x128xf32, #tpu.memory_space<vmem>>, vector<1x128xf32>
    %18 = vector.broadcast %17 : vector<1x128xf32> to vector<8x128xf32>
    %19 = arith.addf %16, %18 : vector<8x128xf32>
    %20 = tpu.iota {dimensions = array<i32: 1>} : vector<8x128xi32>
    %c10_i32 = arith.constant 10 : i32
    %21 = vector.broadcast %c10_i32 : i32 to vector<8x128xi32>
    %22 = arith.cmpi slt, %20, %21 : vector<8x128xi32>
    %cst_15 = arith.constant -1.000000e+30 : f32
    %23 = vector.broadcast %cst_15 : f32 to vector<8x128xf32>
    %24 = arith.select %22, %19, %23 : vector<8x128xi1>, vector<8x128xf32>
    %cst_16 = arith.constant dense<0xFF800000> : vector<8xf32>
    %25 = vector.multi_reduction <maximumf>, %24, %cst_16 [1] : vector<8x128xf32> to vector<8xf32>
    %26 = vector.shape_cast %25 : vector<8xf32> to vector<8x1xf32>
    %27 = vector.broadcast %26 : vector<8x1xf32> to vector<8x128xf32>
    %28 = arith.subf %24, %27 : vector<8x128xf32>
    %29 = math.exp %28 : vector<8x128xf32>
    %cst_17 = arith.constant dense<0.000000e+00> : vector<8xf32>
    %30 = vector.multi_reduction <add>, %29, %cst_17 [1] : vector<8x128xf32> to vector<8xf32>
    %31 = vector.shape_cast %30 : vector<8xf32> to vector<8x1xf32>
    %32 = vector.broadcast %31 : vector<8x1xf32> to vector<8x128xf32>
    %33 = arith.divf %29, %32 : vector<8x128xf32>
    %c0_18 = arith.constant 0 : index
    %c0_19 = arith.constant 0 : index
    %34 = vector.load %arg8[%c0_18, %c0_19] : memref<8x128xf32, #tpu.memory_space<vmem>>, vector<8x128xf32>
    tpu.vector_store %arg8[%c0_18, %c0_19], %33 {strides = array<i32>} : memref<8x128xf32, #tpu.memory_space<vmem>>, vector<8x128xf32>,
    return
  }
  func.func @transform_0(%arg0: i32) -> (i32, i32) {
    %c0_i32 = arith.constant 0 : i32
    %c0_i32_0 = arith.constant 0 : i32
    return %arg0, %c0_i32 : i32, i32
  }
  func.func @transform_1(%arg0: i32) -> (i32, i32) {
    %c0_i32 = arith.constant 0 : i32
    %c0_i32_0 = arith.constant 0 : i32
    %c0_i32_1 = arith.constant 0 : i32
    return %c0_i32, %c0_i32_0 : i32, i32
  }
  func.func @transform_2(%arg0: i32) -> (i32, i32) {
    %c0_i32 = arith.constant 0 : i32
    %c0_i32_0 = arith.constant 0 : i32
    %c0_i32_1 = arith.constant 0 : i32
    return %c0_i32, %c0_i32_0 : i32, i32
  }
  func.func @transform_3(%arg0: i32) -> (i32, i32) {
    %c0_i32 = arith.constant 0 : i32
    %c0_i32_0 = arith.constant 0 : i32
    %c0_i32_1 = arith.constant 0 : i32
    return %c0_i32, %c0_i32_0 : i32, i32
  }
  func.func @transform_4(%arg0: i32) -> (i32, i32) {
    %c0_i32 = arith.constant 0 : i32
    %c0_i32_0 = arith.constant 0 : i32
    %c0_i32_1 = arith.constant 0 : i32
    return %c0_i32, %c0_i32_0 : i32, i32
  }
  func.func @transform_5(%arg0: i32) -> (i32, i32) {
    %c0_i32 = arith.constant 0 : i32
    %c0_i32_0 = arith.constant 0 : i32
    %c0_i32_1 = arith.constant 0 : i32
    return %c0_i32, %c0_i32_0 : i32, i32
  }
  func.func @transform_6(%arg0: i32) -> (i32, i32) {
    %c0_i32 = arith.constant 0 : i32
    %c0_i32_0 = arith.constant 0 : i32
    %c0_i32_1 = arith.constant 0 : i32
    return %c0_i32, %c0_i32_0 : i32, i32
  }
  func.func @transform_7(%arg0: i32) -> (i32, i32) {
    %c0_i32 = arith.constant 0 : i32
    %c0_i32_0 = arith.constant 0 : i32
    return %arg0, %c0_i32 : i32, i32
  }
}

</mosaic_0001>

<bundles_post_ra>
// kernel: lenet5_forward.3
= control target key start
LH: loop header
LB: loop body
LE: loop exit
PB: predicated region body
PF: predicated region fallthrough
CT: control target
= control target key end

     0   :  { %v5038_v3 = vmov 0   ;;  %vm211_vm0 = vcmask 261120   ;;  %vm810_vm1 = vcmask 130048   ;;  %vm997_vm2 = vcmask 1043456   ;;  %s7707_s0 = inlined_call_operand.vmem [shape: bf16[8,32,784], index: 0, kind: input, shape index: {}]   ;;  %s7708_s1 = inlined_call_operand.vmem [shape: bf16[8,32], index: 1, kind: input, shape index: {}]   ;;  %s7709_s2 = inlined_call_operand.vmem [shape: f32[8,1], index: 2, kind: input, shape index: {}]   ;;  %s7710_s3 = inlined_call_operand.vmem [shape: bf16[784,196], index: 3, kind: input, shape index: {}]   ;;  %s7711_s4 = inlined_call_operand.vmem [shape: bf16[8,8,196], index: 4, kind: output, shape index: {}]  }
   0x1   :  { %v3709_v0 = vld [vmem:[%s7707_s0 + $0x38] sm:$0xf]  ;;  %v4818_v1 = vld [vmem:[%s7707_s0 + $0x50] sm:$0xf0]  ;;  %v4815_v2 = vld [vmem:[%s7707_s0 + $0x3c] sm:$0xf]  ;;  %4921 = vset.pattern.permute.xlu0 %v5038_v3 }
   0x2   :  { %v3710_v4 = vor.u32 %v4818_v1, %v3709_v0  ;;  %v3711_v5 = vld [vmem:[%s7707_s0 + $0x54] sm:$0xf0]  ;;  %v3717_v6 = vld [vmem:[%s7707_s0 + $0x40] sm:$0xf]  ;;  %v4819_v7 = vld [vmem:[%s7707_s0 + $0x58] sm:$0xf0] }
   0x3   :  { %v3714_v8 = vor.u32 %v4815_v2, %v3711_v5  ;;  %v3718_v9 = vor.u32 %v4819_v7, %v3717_v6  ;;  %v3681_v10 = vld [vmem:[%s7707_s0] sm:$0xf]  ;;  %v4811_v11 = vld [vmem:[%s7707_s0 + $0x18] sm:$0xf0]  ;;  %v4808_v12 = vld [vmem:[%s7707_s0 + $0x4] sm:$0xf] }
   0x4   :  { %221 = vmatpush.bf16.msra.mxu3 %v3710_v4  ;;  %v3682_v13 = vor.u32 %v4811_v11, %v3681_v10  ;;  %v3683_v14 = vld [vmem:[%s7707_s0 + $0x1c] sm:$0xf0]  ;;  %v3689_v15 = vld [vmem:[%s7707_s0 + $0x8] sm:$0xf]  ;;  %v4812_v16 = vld [vmem:[%s7707_s0 + $0x20] sm:$0xf0] }
   0x5   :  { %234 = vmatpush.bf16.msra.mxu1 %v3714_v8  ;;  %247 = vmatpush.bf16.msra.mxu2 %v3718_v9  ;;  %v3686_v17 = vor.u32 %v4808_v12, %v3683_v14  ;;  %v3690_v18 = vor.u32 %v4812_v16, %v3689_v15  ;;  %v3725_v19 = vld [vmem:[%s7707_s0 + $0x48] sm:$0xf]  ;;  %v4820_v20 = vld [vmem:[%s7707_s0 + $0x60] sm:$0xf0]  ;;  %v5109_v22 = vld [vmem:[%s7708_s1] sm:$0xf] }
   0x6   :  { %v3726_v21 = vor.u32 %v4820_v20, %v3725_v19  ;;  %v3697_v23 = vld [vmem:[%s7707_s0 + $0x10] sm:$0xf]  ;;  %v4813_v24 = vld [vmem:[%s7707_s0 + $0x28] sm:$0xf0]  ;;  %v4816_v25 = vld [vmem:[%s7707_s0 + $0x44] sm:$0xf] }
   0x7   :  { %v3719_v26 = vld [vmem:[%s7707_s0 + $0x5c] sm:$0xf0]  ;;  %v4817_v27 = vld [vmem:[%s7707_s0 + $0x4c] sm:$0xf]  ;;  %v3727_v28 = vld [vmem:[%s7707_s0 + $0x64] sm:$0xf0]  ;;  %v3698_v34 = vor.u32 %v4813_v24, %v3697_v23 }
   0x8   :  { %222 = vmatpush.bf16.msra.mxu3 %v3682_v13  ;;  %273 = vmatpush.bf16.msra.mxu0 %v3726_v21  ;;  %v3722_v29 = vor.u32 %v4816_v25, %v3719_v26  ;;  %v3730_v30 = vor.u32 %v4817_v27, %v3727_v28  ;;  %v3733_v31 = vld [vmem:[%s7707_s0 + $0x50] sm:$0xf]  ;;  %v4821_v32 = vld [vmem:[%s7707_s0 + $0x68] sm:$0xf0]  ;;  %v19_v33 = vld [vmem:[%s7709_s2] sm:$0xff]  ;;  %vm998_vm3 = vcmask 556036  }
   0x9   :  { %235 = vmatpush.bf16.msra.mxu1 %v3686_v17  ;;  %248 = vmatpush.bf16.msra.mxu2 %v3690_v18  ;;  %v3734_v35 = vor.u32 %v4821_v32, %v3733_v31  ;;  %v4809_v36 = vld [vmem:[%s7707_s0 + $0xc] sm:$0xf]  ;;  %v3691_v37 = vld [vmem:[%s7707_s0 + $0x24] sm:$0xf0]  ;;  %v4810_v38 = vld [vmem:[%s7707_s0 + $0x14] sm:$0xf] }
   0xa   :  { %v3694_v39 = vor.u32 %v4809_v36, %v3691_v37  ;;  %v3699_v40 = vld [vmem:[%s7707_s0 + $0x2c] sm:$0xf0]  ;;  %v3705_v41 = vld [vmem:[%s7707_s0 + $0x18] sm:$0xf]  ;;  %v4814_v42 = vld [vmem:[%s7707_s0 + $0x30] sm:$0xf0]  ;;  %136 = vperm.xlu0 %4921, %v19_v33  }
   0xb   :  { %3735 = vmatmul.msk.bf16.vlgmr.msra.gmra.mxu3 %vm211_vm0, %v5109_v22  ;;  %v3702_v43 = vor.u32 %v4810_v38, %v3699_v40  ;;  %v3706_v44 = vor.u32 %v4814_v42, %v3705_v41  ;;  %v3864_v45 = vld [vmem:[%s7710_s3 + $0xf0] sm:$0xf]  ;;  %v4741_v46 = vld [vmem:[%s7710_s3 + $0xf4] sm:$0xf0]  ;;  %v3856_v47 = vld [vmem:[%s7710_s3 + $0xe0] sm:$0xf] }
   0xc   :  { %260 = vmatpush.bf16.msrb.mxu3 %v3722_v29  ;;  %3736 = vmatmul.msk.bf16.vlgmr.msra.gmra.mxu1 %vm211_vm0, %v5109_v22  ;;  %v5171_v48 = vor.u32 %v4741_v46, %v3864_v45  ;;  %v4739_v49 = vld [vmem:[%s7710_s3 + $0xe4] sm:$0xf0]  ;;  %v3800_v50 = vld [vmem:[%s7710_s3 + $0x70] sm:$0xf]  ;;  %v4725_v51 = vld [vmem:[%s7710_s3 + $0x74] sm:$0xf0] }
   0xd   :  { %286 = vmatpush.bf16.msrb.mxu1 %v3730_v30  ;;  %299 = vmatpush.bf16.msrb.mxu2 %v3734_v35  ;;  %v5182_v52 = vor.u32 %v4725_v51, %v3800_v50  ;;  %v3792_v53 = vld [vmem:[%s7710_s3 + $0x60] sm:$0xf]  ;;  %v4723_v54 = vld [vmem:[%s7710_s3 + $0x64] sm:$0xf0]  ;;  %v5191_v55 = vor.u32 %v4739_v49, %v3856_v47  ;;  %v3848_v56 = vld [vmem:[%s7710_s3 + $0xd0] sm:$0xf] }
   0xe   :  { %3737 = vmatmul.msk.bf16.vlgmr.msra.gmra.mxu2 %vm211_vm0, %v5109_v22  ;;  %7923 = vst [vmem:[#allocation2_spill] sm:$0xff] %v5171_v48  ;;  %274 = vmatpush.bf16.msra.mxu0 %v3698_v34  ;;  %v4737_v57 = vld [vmem:[%s7710_s3 + $0xd4] sm:$0xf0]  ;;  %v5202_v58 = vor.u32 %v4723_v54, %v3792_v53  ;;  %v3784_v59 = vld [vmem:[%s7710_s3 + $0x50] sm:$0xf]  ;;  %vm6259_vm4 = vmor %vm998_vm3, %vm997_vm2 }
   0xf   :  { %7924 = vst [vmem:[#allocation3_spill] sm:$0xff] %v5182_v52  ;;  %v4721_v60 = vld [vmem:[%s7710_s3 + $0x54] sm:$0xf0]  ;;  %v3992_v61 = vld [vmem:[%s7710_s3 + $0x1f0] sm:$0xf]  ;;  %v5217_v63 = vor.u32 %v4737_v57, %v3848_v56 }
  0x10   :  { %261 = vmatpush.bf16.msrb.mxu3 %v3694_v39  ;;  %7925 = vst [vmem:[#allocation4_spill] sm:$0xff] %v5191_v55  ;;  %v4773_v62 = vld [vmem:[%s7710_s3 + $0x1f4] sm:$0xf0]  ;;  %v3840_v0 = vld [vmem:[%s7710_s3 + $0xc0] sm:$0xf]  ;;  %v5228_v3 = vor.u32 %v4721_v60, %v3784_v59 }
  0x11   :  { %287 = vmatpush.bf16.msrb.mxu1 %v3702_v43  ;;  %300 = vmatpush.bf16.msrb.mxu2 %v3706_v44  ;;  %7926 = vst [vmem:[#allocation5_spill] sm:$0xff] %v5217_v63  ;;  %v5222_v1 = vor.u32 %v4773_v62, %v3992_v61  ;;  %v4735_v2 = vld [vmem:[%s7710_s3 + $0xc4] sm:$0xf0]  ;;  %v3984_v4 = vld [vmem:[%s7710_s3 + $0x1e0] sm:$0xf] }
  0x12   :  { %827 = vmatpush.bf16.msrb.mxu0 %v5171_v48  ;;  %7928 = vst [vmem:[#allocation7_spill] sm:$0xff] %v5228_v3  ;;  %v4771_v5 = vld [vmem:[%s7710_s3 + $0x1e4] sm:$0xf0]  ;;  %v3776_v7 = vld [vmem:[%s7710_s3 + $0x40] sm:$0xf]  ;;  %v5246_v9 = vor.u32 %v4735_v2, %v3840_v0 }
  0x13   :  { %3739 = vmatmul.msk.bf16.vlgmr.msra.gmra.mxu0 %vm211_vm0, %v5109_v22  ;;  %7927 = vst [vmem:[#allocation6_spill] sm:$0xff] %v5222_v1  ;;  %v5237_v6 = vor.u32 %v4771_v5, %v3984_v4  ;;  %v4719_v8 = vld [vmem:[%s7710_s3 + $0x44] sm:$0xf0]  ;;  %v3976_v10 = vld [vmem:[%s7710_s3 + $0x1d0] sm:$0xf] }
  0x14   :  { %814 = vmatpush.bf16.msra.mxu3 %v5182_v52  ;;  %7930 = vst [vmem:[#allocation9_spill] sm:$0xff] %v5246_v9  ;;  %v4769_v11 = vld [vmem:[%s7710_s3 + $0x1d4] sm:$0xf0]  ;;  %v3928_v12 = vld [vmem:[%s7710_s3 + $0x170] sm:$0xf]  ;;  %v5267_v16 = vor.u32 %v4719_v8, %v3776_v7 }
  0x15   :  { %853 = vmatpush.bf16.msra.mxu2 %v5222_v1  ;;  %7929 = vst [vmem:[#allocation8_spill] sm:$0xff] %v5237_v6  ;;  %v3832_v13 = vld [vmem:[%s7710_s3 + $0xb0] sm:$0xf]  ;;  %v4733_v14 = vld [vmem:[%s7710_s3 + $0xb4] sm:$0xf0]  ;;  %v5273_v18 = vor.u32 %v4769_v11, %v3976_v10 }
  0x16   :  { %828 = vmatpush.bf16.msrb.mxu0 %v5191_v55  ;;  %v4757_v15 = vld [vmem:[%s7710_s3 + $0x174] sm:$0xf0]  ;;  %7931 = vst [vmem:[#allocation10_spill] sm:$0xff] %v5267_v16  ;;  %v3768_v17 = vld [vmem:[%s7710_s3 + $0x30] sm:$0xf]  ;;  %v5289_v24 = vor.u32 %v4733_v14, %v3832_v13 }
  0x17   :  { %7932 = vst [vmem:[#allocation11_spill] sm:$0xff] %v5273_v18  ;;  %v4717_v19 = vld [vmem:[%s7710_s3 + $0x34] sm:$0xf0]  ;;  %v5278_v20 = vor.u32 %v4757_v15, %v3928_v12  ;;  %v3968_v21 = vld [vmem:[%s7710_s3 + $0x1c0] sm:$0xf] }
  0x18   :  { %815 = vmatpush.bf16.msra.mxu3 %v5202_v58  ;;  %v4767_v23 = vld [vmem:[%s7710_s3 + $0x1c4] sm:$0xf0]  ;;  %7934 = vst [vmem:[#allocation13_spill] sm:$0xff] %v5289_v24  ;;  %v3920_v25 = vld [vmem:[%s7710_s3 + $0x160] sm:$0xf]  ;;  %v5308_v29 = vor.u32 %v4717_v19, %v3768_v17 }
  0x19   :  { %854 = vmatpush.bf16.msra.mxu2 %v5237_v6  ;;  %7933 = vst [vmem:[#allocation12_spill] sm:$0xff] %v5278_v20  ;;  %v4755_v26 = vld [vmem:[%s7710_s3 + $0x164] sm:$0xf0]  ;;  %v3824_v27 = vld [vmem:[%s7710_s3 + $0xa0] sm:$0xf]  ;;  %v5314_v31 = vor.u32 %v4767_v23, %v3968_v21  ;;  %840 = vmatpush.bf16.msra.mxu1 %v5278_v20 }
  0x1a   :  { %829 = vmatpush.bf16.msrb.mxu0 %v5217_v63  ;;  %v4731_v28 = vld [vmem:[%s7710_s3 + $0xa4] sm:$0xf0]  ;;  %7935 = vst [vmem:[#allocation14_spill] sm:$0xff] %v5308_v29  ;;  %v3760_v30 = vld [vmem:[%s7710_s3 + $0x20] sm:$0xf]  ;;  %v5320_v33 = vor.u32 %v4755_v26, %v3920_v25 }
  0x1b   :  { %3738 = vmatmul.msk.bf16.vlgmr.msrb.gmra.mxu3 %vm211_vm0, %v5109_v22  ;;  %7936 = vst [vmem:[#allocation15_spill] sm:$0xff] %v5314_v31  ;;  %v4715_v32 = vld [vmem:[%s7710_s3 + $0x24] sm:$0xf0]  ;;  %v3960_v34 = vld [vmem:[%s7710_s3 + $0x1b0] sm:$0xf]  ;;  %v5329_v36 = vor.u32 %v4731_v28, %v3824_v27 }
  0x1c   :  { %816 = vmatpush.bf16.msra.mxu3 %v5228_v3  ;;  %3740 = vmatmul.msk.bf16.vlgmr.msrb.gmra.mxu1 %vm211_vm0, %v5109_v22  ;;  %7937 = vst [vmem:[#allocation16_spill] sm:$0xff] %v5320_v33  ;;  %v4765_v35 = vld [vmem:[%s7710_s3 + $0x1b4] sm:$0xf0]  ;;  %v3912_v37 = vld [vmem:[%s7710_s3 + $0x150] sm:$0xf]  ;;  %v5344_v41 = vor.u32 %v4715_v32, %v3760_v30 }
  0x1d   :  { %855 = vmatpush.bf16.msra.mxu2 %v5273_v18  ;;  %7938 = vst [vmem:[#allocation17_spill] sm:$0xff] %v5329_v36  ;;  %v4753_v38 = vld [vmem:[%s7710_s3 + $0x154] sm:$0xf0]  ;;  %v3816_v39 = vld [vmem:[%s7710_s3 + $0x90] sm:$0xf]  ;;  %v5350_v43 = vor.u32 %v4765_v35, %v3960_v34  ;;  %841 = vmatpush.bf16.msra.mxu1 %v5320_v33 }
  0x1e   :  { %830 = vmatpush.bf16.msrb.mxu0 %v5246_v9  ;;  %3741 = vmatmul.msk.bf16.vlgmr.msrb.gmra.mxu2 %vm211_vm0, %v5109_v22  ;;  %v4729_v40 = vld [vmem:[%s7710_s3 + $0x94] sm:$0xf0]  ;;  %7939 = vst [vmem:[#allocation18_spill] sm:$0xff] %v5344_v41  ;;  %v3752_v42 = vld [vmem:[%s7710_s3 + $0x10] sm:$0xf]  ;;  %v5356_v45 = vor.u32 %v4753_v38, %v3912_v37 }
  0x1f   :  { %7940 = vst [vmem:[#allocation19_spill] sm:$0xff] %v5350_v43  ;;  %v4713_v44 = vld [vmem:[%s7710_s3 + $0x14] sm:$0xf0]  ;;  %v3952_v46 = vld [vmem:[%s7710_s3 + $0x1a0] sm:$0xf]  ;;  %v5365_v49 = vor.u32 %v4729_v40, %v3816_v39 }
  0x20   :  { %817 = vmatpush.bf16.msra.mxu3 %v5267_v16  ;;  %7941 = vst [vmem:[#allocation20_spill] sm:$0xff] %v5356_v45  ;;  %v4763_v47 = vld [vmem:[%s7710_s3 + $0x1a4] sm:$0xf0]  ;;  %v3904_v50 = vld [vmem:[%s7710_s3 + $0x140] sm:$0xf]  ;;  %v5386_v59 = vor.u32 %v4713_v44, %v3752_v42 }
  0x21   :  { %856 = vmatpush.bf16.msra.mxu2 %v5314_v31  ;;  %7942 = vst [vmem:[#allocation21_spill] sm:$0xff] %v5365_v49  ;;  %v4751_v51 = vld [vmem:[%s7710_s3 + $0x144] sm:$0xf0]  ;;  %v3808_v53 = vld [vmem:[%s7710_s3 + $0x80] sm:$0xf]  ;;  %v5389_v60 = vor.u32 %v4763_v47, %v3952_v46  ;;  %842 = vmatpush.bf16.msra.mxu1 %v5356_v45 }
  0x22   :  { %831 = vmatpush.bf16.msrb.mxu0 %v5289_v24  ;;  %v4727_v54 = vld [vmem:[%s7710_s3 + $0x84] sm:$0xf0]  ;;  %v4120_v56 = vld [vmem:[%s7710_s3 + $0x2f0] sm:$0xf]  ;;  %v4805_v57 = vld [vmem:[%s7710_s3 + $0x2f4] sm:$0xf0]  ;;  %v5398_v0 = vor.u32 %v4751_v51, %v3904_v50 }
  0x23   :  { %7943 = vst [vmem:[#allocation22_spill] sm:$0xff] %v5386_v59  ;;  %v3744_v61 = vld [vmem:[%s7710_s3] sm:$0xf]  ;;  %v4711_v62 = vld [vmem:[%s7710_s3 + $0x4] sm:$0xf0]  ;;  %v5401_v2 = vor.u32 %v4727_v54, %v3808_v53  ;;  %v5409_v7 = vor.u32 %v4805_v57, %v4120_v56 }
  0x24   :  { %818 = vmatpush.bf16.msra.mxu3 %v5308_v29  ;;  %7944 = vst [vmem:[#allocation23_spill] sm:$0xff] %v5389_v60  ;;  %v4056_v4 = vld [vmem:[%s7710_s3 + $0x270] sm:$0xf]  ;;  %v4789_v5 = vld [vmem:[%s7710_s3 + $0x274] sm:$0xf0]  ;;  %v5418_v11 = vor.u32 %v4711_v62, %v3744_v61 }
  0x25   :  { %857 = vmatpush.bf16.msra.mxu2 %v5350_v43  ;;  %7945 = vst [vmem:[#allocation24_spill] sm:$0xff] %v5398_v0  ;;  %v4112_v8 = vld [vmem:[%s7710_s3 + $0x2e0] sm:$0xf]  ;;  %v4803_v10 = vld [vmem:[%s7710_s3 + $0x2e4] sm:$0xf0]  ;;  %v5421_v12 = vor.u32 %v4789_v5, %v4056_v4  ;;  %843 = vmatpush.bf16.msra.mxu1 %v5398_v0 }
  0x26   :  { %832 = vmatpush.bf16.msrb.mxu0 %v5329_v36  ;;  %7946 = vst [vmem:[#allocation25_spill] sm:$0xff] %v5401_v2  ;;  %v4048_v13 = vld [vmem:[%s7710_s3 + $0x260] sm:$0xf]  ;;  %v4787_v14 = vld [vmem:[%s7710_s3 + $0x264] sm:$0xf0]  ;;  %v5432_v15 = vor.u32 %v4803_v10, %v4112_v8 }
  0x27   :  { %7947 = vst [vmem:[#allocation26_spill] sm:$0xff] %v5409_v7  ;;  %v4104_v17 = vld [vmem:[%s7710_s3 + $0x2d0] sm:$0xf]  ;;  %v4801_v19 = vld [vmem:[%s7710_s3 + $0x2d4] sm:$0xf0]  ;;  %v5442_v21 = vor.u32 %v4787_v14, %v4048_v13 }
  0x28   :  { %819 = vmatpush.bf16.msra.mxu3 %v5344_v41  ;;  %7948 = vst [vmem:[#allocation27_spill] sm:$0xff] %v5418_v11  ;;  %v4040_v23 = vld [vmem:[%s7710_s3 + $0x250] sm:$0xf]  ;;  %v4785_v25 = vld [vmem:[%s7710_s3 + $0x254] sm:$0xf0]  ;;  %v5451_v26 = vor.u32 %v4801_v19, %v4104_v17 }
  0x29   :  { %858 = vmatpush.bf16.msra.mxu2 %v5389_v60  ;;  %7949 = vst [vmem:[#allocation28_spill] sm:$0xff] %v5421_v12  ;;  %v4096_v27 = vld [vmem:[%s7710_s3 + $0x2c0] sm:$0xf]  ;;  %v4799_v28 = vld [vmem:[%s7710_s3 + $0x2c4] sm:$0xf0]  ;;  %v5460_v30 = vor.u32 %v4785_v25, %v4040_v23 }
  0x2a   :  { %833 = vmatpush.bf16.msrb.mxu0 %v5365_v49  ;;  %7950 = vst [vmem:[#allocation29_spill] sm:$0xff] %v5432_v15  ;;  %v5463_v32 = vor.u32 %v4799_v28, %v4096_v27  ;;  %v4088_v34 = vld [vmem:[%s7710_s3 + $0x2b0] sm:$0xf]  ;;  %v4797_v35 = vld [vmem:[%s7710_s3 + $0x2b4] sm:$0xf0] }
  0x2b   :  { %7951 = vst [vmem:[#allocation30_spill] sm:$0xff] %v5442_v21  ;;  %v5473_v37 = vor.u32 %v4797_v35, %v4088_v34  ;;  %v3944_v38 = vld [vmem:[%s7710_s3 + $0x190] sm:$0xf]  ;;  %v4761_v39 = vld [vmem:[%s7710_s3 + $0x194] sm:$0xf0] }
  0x2c   :  { %820 = vmatpush.bf16.msra.mxu3 %v5386_v59  ;;  %7952 = vst [vmem:[#allocation31_spill] sm:$0xff] %v5451_v26  ;;  %v5481_v40 = vor.u32 %v4761_v39, %v3944_v38  ;;  %v3896_v42 = vld [vmem:[%s7710_s3 + $0x130] sm:$0xf]  ;;  %v4749_v44 = vld [vmem:[%s7710_s3 + $0x134] sm:$0xf0] }
  0x2d   :  { %7953 = vst [vmem:[#allocation32_spill] sm:$0xff] %v5460_v30  ;;  %v4032_v46 = vld [vmem:[%s7710_s3 + $0x240] sm:$0xf]  ;;  %v5493_v47 = vor.u32 %v4749_v44, %v3896_v42  ;;  %v4783_v50 = vld [vmem:[%s7710_s3 + $0x244] sm:$0xf0] }
  0x2e   :  { %834 = vmatpush.bf16.msrb.mxu0 %v5401_v2  ;;  %7954 = vst [vmem:[#allocation33_spill] sm:$0xff] %v5463_v32  ;;  %859 = vmatpush.bf16.msra.mxu2 %v5481_v40  ;;  %v5499_v51 = vor.u32 %v4783_v50, %v4032_v46  ;;  %v4080_v53 = vld [vmem:[%s7710_s3 + $0x2a0] sm:$0xf]  ;;  %v4795_v54 = vld [vmem:[%s7710_s3 + $0x2a4] sm:$0xf0] }
  0x2f   :  { %7955 = vst [vmem:[#allocation34_spill] sm:$0xff] %v5473_v37  ;;  %844 = vmatpush.bf16.msra.mxu1 %v5493_v47  ;;  %v5508_v56 = vor.u32 %v4795_v54, %v4080_v53  ;;  %v3936_v57 = vld [vmem:[%s7710_s3 + $0x180] sm:$0xf]  ;;  %v4759_v61 = vld [vmem:[%s7710_s3 + $0x184] sm:$0xf0] }
  0x30   :  { %821 = vmatpush.bf16.msra.mxu3 %v5418_v11  ;;  %7956 = vst [vmem:[#allocation35_spill] sm:$0xff] %v5481_v40  ;;  %v5517_v62 = vor.u32 %v4759_v61, %v3936_v57  ;;  %v3888_v4 = vld [vmem:[%s7710_s3 + $0x120] sm:$0xf]  ;;  %v4747_v5 = vld [vmem:[%s7710_s3 + $0x124] sm:$0xf0] }
  0x31   :  { %7957 = vst [vmem:[#allocation36_spill] sm:$0xff] %v5493_v47  ;;  %v4024_v8 = vld [vmem:[%s7710_s3 + $0x230] sm:$0xf]  ;;  %v5529_v10 = vor.u32 %v4747_v5, %v3888_v4  ;;  %v4781_v13 = vld [vmem:[%s7710_s3 + $0x234] sm:$0xf0] }
  0x32   :  { %879 = vmatpush.bf16.msra.mxu0 %v5409_v7  ;;  %7958 = vst [vmem:[#allocation37_spill] sm:$0xff] %v5499_v51  ;;  %v4724_v14 = vld [vmem:[%s7710_s3 + $0x74] sm:$0xf]  ;;  %v3802_v17 = vld [vmem:[%s7710_s3 + $0x78] sm:$0xf0]  ;;  %860 = vmatpush.bf16.msra.mxu2 %v5517_v62  ;;  %v5541_v19 = vor.u32 %v4781_v13, %v4024_v8 }
  0x33   :  { %7959 = vst [vmem:[#allocation38_spill] sm:$0xff] %v5508_v56  ;;  %v5543_v23 = vor.u32 %v4724_v14, %v3802_v17  ;;  %v4072_v25 = vld [vmem:[%s7710_s3 + $0x290] sm:$0xf]  ;;  %v4793_v27 = vld [vmem:[%s7710_s3 + $0x294] sm:$0xf0]  ;;  %845 = vmatpush.bf16.msra.mxu1 %v5529_v10 }
  0x34   :  { %866 = vmatpush.bf16.msrb.mxu3 %v5421_v12  ;;  %7960 = vst [vmem:[#allocation39_spill] sm:$0xff] %v5517_v62  ;;  %v5552_v28 = vor.u32 %v4793_v27, %v4072_v25  ;;  %v3880_v34 = vld [vmem:[%s7710_s3 + $0x110] sm:$0xf]  ;;  %v4745_v35 = vld [vmem:[%s7710_s3 + $0x114] sm:$0xf0] }
  0x35   :  { %7961 = vst [vmem:[#allocation40_spill] sm:$0xff] %v5529_v10  ;;  %v4016_v38 = vld [vmem:[%s7710_s3 + $0x220] sm:$0xf]  ;;  %v5566_v39 = vor.u32 %v4745_v35, %v3880_v34  ;;  %v4779_v42 = vld [vmem:[%s7710_s3 + $0x224] sm:$0xf0] }
  0x36   :  { %880 = vmatpush.bf16.msra.mxu0 %v5432_v15  ;;  %7962 = vst [vmem:[#allocation41_spill] sm:$0xff] %v5541_v19  ;;  %905 = vmatpush.bf16.msrb.mxu2 %v5543_v23  ;;  %v4722_v44 = vld [vmem:[%s7710_s3 + $0x64] sm:$0xf]  ;;  %v3794_v46 = vld [vmem:[%s7710_s3 + $0x68] sm:$0xf0]  ;;  %v5577_v50 = vor.u32 %v4779_v42, %v4016_v38 }
  0x37   :  { %7963 = vst [vmem:[#allocation42_spill] sm:$0xff] %v5543_v23  ;;  %v5579_v53 = vor.u32 %v4722_v44, %v3794_v46  ;;  %v4064_v54 = vld [vmem:[%s7710_s3 + $0x280] sm:$0xf]  ;;  %v4791_v57 = vld [vmem:[%s7710_s3 + $0x284] sm:$0xf0]  ;;  %846 = vmatpush.bf16.msra.mxu1 %v5566_v39 }
  0x38   :  { %867 = vmatpush.bf16.msrb.mxu3 %v5442_v21  ;;  %7964 = vst [vmem:[#allocation43_spill] sm:$0xff] %v5552_v28  ;;  %v5588_v61 = vor.u32 %v4791_v57, %v4064_v54  ;;  %v3872_v4 = vld [vmem:[%s7710_s3 + $0x100] sm:$0xf]  ;;  %v4743_v5 = vld [vmem:[%s7710_s3 + $0x104] sm:$0xf0] }
  0x39   :  { %7965 = vst [vmem:[#allocation44_spill] sm:$0xff] %v5566_v39  ;;  %v4008_v8 = vld [vmem:[%s7710_s3 + $0x210] sm:$0xf]  ;;  %v5602_v13 = vor.u32 %v4743_v5, %v3872_v4  ;;  %v4777_v14 = vld [vmem:[%s7710_s3 + $0x214] sm:$0xf0] }
  0x3a   :  { %881 = vmatpush.bf16.msra.mxu0 %v5451_v26  ;;  %7966 = vst [vmem:[#allocation45_spill] sm:$0xff] %v5577_v50  ;;  %906 = vmatpush.bf16.msrb.mxu2 %v5579_v53  ;;  %v4720_v17 = vld [vmem:[%s7710_s3 + $0x54] sm:$0xf]  ;;  %v3786_v25 = vld [vmem:[%s7710_s3 + $0x58] sm:$0xf0]  ;;  %v5613_v27 = vor.u32 %v4777_v14, %v4008_v8 }
  0x3b   :  { %7967 = vst [vmem:[#allocation46_spill] sm:$0xff] %v5579_v53  ;;  %v5615_v34 = vor.u32 %v4720_v17, %v3786_v25  ;;  %847 = vmatpush.bf16.msra.mxu1 %v5602_v13  ;;  %v4128_v35 = vld [vmem:[%s7710_s3 + $0x300] sm:$0xf]  ;;  %v4807_v38 = vld [vmem:[%s7710_s3 + $0x304] sm:$0xf0] }
  0x3c   :  { %868 = vmatpush.bf16.msrb.mxu3 %v5460_v30  ;;  %7968 = vst [vmem:[#allocation47_spill] sm:$0xff] %v5588_v61  ;;  %v5626_v42 = vor.u32 %v4807_v38, %v4128_v35  ;;  %v4000_v44 = vld [vmem:[%s7710_s3 + $0x200] sm:$0xf]  ;;  %v4775_v46 = vld [vmem:[%s7710_s3 + $0x204] sm:$0xf0] }
  0x3d   :  { %7969 = vst [vmem:[#allocation48_spill] sm:$0xff] %v5602_v13  ;;  %v5634_v54 = vor.u32 %v4775_v46, %v4000_v44  ;;  %v4718_v57 = vld [vmem:[%s7710_s3 + $0x44] sm:$0xf]  ;;  %v3778_v4 = vld [vmem:[%s7710_s3 + $0x48] sm:$0xf0] }
  0x3e   :  { %882 = vmatpush.bf16.msra.mxu0 %v5463_v32  ;;  %7970 = vst [vmem:[#allocation49_spill] sm:$0xff] %v5613_v27  ;;  %907 = vmatpush.bf16.msrb.mxu2 %v5615_v34  ;;  %v5643_v5 = vor.u32 %v4718_v57, %v3778_v4  ;;  %v4716_v8 = vld [vmem:[%s7710_s3 + $0x34] sm:$0xf]  ;;  %v3770_v14 = vld [vmem:[%s7710_s3 + $0x38] sm:$0xf0] }
  0x3f   :  { %7971 = vst [vmem:[#allocation50_spill] sm:$0xff] %v5615_v34  ;;  %899 = vmatpush.bf16.msrb.mxu1 %v5626_v42  ;;  %v5653_v17 = vor.u32 %v4716_v8, %v3770_v14  ;;  %v4714_v25 = vld [vmem:[%s7710_s3 + $0x24] sm:$0xf]  ;;  %v3762_v35 = vld [vmem:[%s7710_s3 + $0x28] sm:$0xf0] }
  0x40   :  { %869 = vmatpush.bf16.msrb.mxu3 %v5499_v51  ;;  %7972 = vst [vmem:[#allocation51_spill] sm:$0xff] %v5626_v42  ;;  %v5662_v38 = vor.u32 %v4714_v25, %v3762_v35  ;;  %v4712_v44 = vld [vmem:[%s7710_s3 + $0x14] sm:$0xf]  ;;  %v3754_v46 = vld [vmem:[%s7710_s3 + $0x18] sm:$0xf0] }
  0x41   :  { %7973 = vst [vmem:[#allocation52_spill] sm:$0xff] %v5634_v54  ;;  %v5671_v57 = vor.u32 %v4712_v44, %v3754_v46  ;;  %v4710_v14 = vld [vmem:[%s7710_s3 + $0x4] sm:$0xf]  ;;  %v3746_v25 = vld [vmem:[%s7710_s3 + $0x8] sm:$0xf0] }
  0x42   :  { %883 = vmatpush.bf16.msra.mxu0 %v5473_v37  ;;  %7974 = vst [vmem:[#allocation53_spill] sm:$0xff] %v5643_v5  ;;  %908 = vmatpush.bf16.msrb.mxu2 %v5643_v5  ;;  %v3978_v34 = vld [vmem:[%s7710_s3 + $0x1d8] sm:$0xf0] }
  0x43   :  { %7975 = vst [vmem:[#allocation54_spill] sm:$0xff] %v5653_v17  ;;  %v3962_v53 = vld [vmem:[%s7710_s3 + $0x1b8] sm:$0xf0] }
  0x44   :  { %870 = vmatpush.bf16.msrb.mxu3 %v5541_v19  ;;  %7976 = vst [vmem:[#allocation55_spill] sm:$0xff] %v5662_v38 }
  0x45   :  { %7977 = vst [vmem:[#allocation56_spill] sm:$0xff] %v5671_v57 }
  0x46   :  { %884 = vmatpush.bf16.msra.mxu0 %v5508_v56  ;;  %909 = vmatpush.bf16.msrb.mxu2 %v5653_v17  ;;  %v3994_v56 = vld [vmem:[%s7710_s3 + $0x1f8] sm:$0xf0]  ;;  %v3986_v17 = vld [vmem:[%s7710_s3 + $0x1e8] sm:$0xf0] }
  0x48   :  { %871 = vmatpush.bf16.msrb.mxu3 %v5577_v50 }
  0x4a   :  { %885 = vmatpush.bf16.msra.mxu0 %v5552_v28  ;;  %910 = vmatpush.bf16.msrb.mxu2 %v5662_v38  ;;  %v4772_v38 = vld [vmem:[%s7710_s3 + $0x1f4] sm:$0xf] }
  0x4c   :  { %872 = vmatpush.bf16.msrb.mxu3 %v5613_v27 }
  0x4e   :  { %886 = vmatpush.bf16.msra.mxu0 %v5588_v61  ;;  %911 = vmatpush.bf16.msrb.mxu2 %v5671_v57  ;;  %v5683_v61 = vor.u32 %v4710_v14, %v3746_v25 }
  0x50   :  { %873 = vmatpush.bf16.msrb.mxu3 %v5634_v54  ;;  %7979 = vst [vmem:[#allocation58_spill] sm:$0xff] %v5683_v61  ;;  %v4768_v54 = vld [vmem:[%s7710_s3 + $0x1d4] sm:$0xf] }
  0x52   :  { %912 = vmatpush.bf16.msrb.mxu2 %v5683_v61 }
  0x7c   :  { %v5673_v4 = vpop.permute.xlu0 %136 }
  0x7d   :  { %7978 = vst [vmem:[#allocation57_spill] sm:$0xff] %v5673_v4 }
  0x89   :  { %v237_v8 = vpop.f32.mrf.mxu1 }
  0x8a   :  { %v238_v35 = vadd.f32 %v237_v8, %v5673_v4 }
  0x8c   :  { %4922 = vtanh.f32 %v238_v35  ;;  %v5694_v35 = vor.u32 %v4772_v38, %v3994_v56  ;;  %v4740_v56 = vld [vmem:[%s7710_s3 + $0xf4] sm:$0xf]  ;;  %v3866_v38 = vld [vmem:[%s7710_s3 + $0xf8] sm:$0xf0] }
  0x8e   :  { %v224_v46 = vpop.f32.mrf.mxu3  ;;  %7980 = vst [vmem:[#allocation59_spill] sm:$0xff] %v5694_v35 }
  0x8f   :  { %v225_v57 = vadd.f32 %v224_v46, %v5673_v4  ;;  %v4770_v46 = vld [vmem:[%s7710_s3 + $0x1e4] sm:$0xf] }
  0x90   :  { %v276_v44 = vpop.f32.mrf.mxu0 }
  0x91   :  { %v250_v28 = vpop.f32.mrf.mxu2  ;;  %4924 = vtanh.f32 %v225_v57  ;;  %v239_v14 = vpop.f32.mrf.mxu1  ;;  %v3930_v57 = vld [vmem:[%s7710_s3 + $0x178] sm:$0xf0] }
  0x92   :  { %v251_v8 = vadd.f32 %v250_v28, %v5673_v4  ;;  %v4923_v25 = vpop.eup %4922  ;;  %v4756_v28 = vld [vmem:[%s7710_s3 + $0x174] sm:$0xf] }
  0x93   :  { %v5696_v61 = vpack.c.bf16 %v4923_v25, %v4923_v25  ;;  %v5718_v25 = vor.u32 %v4770_v46, %v3986_v17  ;;  %v5720_v32 = vor.u32 %v4756_v28, %v3930_v57  ;;  %v4754_v17 = vld [vmem:[%s7710_s3 + $0x164] sm:$0xf] }
  0x94   :  { %4926 = vtanh.f32 %v251_v8  ;;  %v4738_v57 = vld [vmem:[%s7710_s3 + $0xe4] sm:$0xf] }
  0x95   :  { %835 = vmatmul.bf16.vlgmr.msrb.gmra.mxu0 %v5696_v61  ;;  %7981 = vst [vmem:[#allocation60_spill] sm:$0xff] %v5718_v25 }
  0x96   :  { %944 = vmatpush.bf16.msrb.mxu0 %v5694_v35  ;;  %v226_v14 = vpop.f32.mrf.mxu3  ;;  %7982 = vst [vmem:[#allocation61_spill] sm:$0xff] %v5720_v32 }
  0x97   :  { %v4925_v37 = vpop.eup %4924  ;;  %v4766_v14 = vld [vmem:[%s7710_s3 + $0x1c4] sm:$0xf] }
  0x98   :  { %v278_v8 = vpop.f32.mrf.mxu0  ;;  %v5728_v27 = vpack.c.bf16 %v4925_v37, %v4925_v37  ;;  %v3858_v37 = vld [vmem:[%s7710_s3 + $0xe8] sm:$0xf0] }
  0x99   :  { %v252_v5 = vpop.f32.mrf.mxu2  ;;  %v5730_v8 = vor.u32 %v4740_v56, %v3866_v38  ;;  %v289_v28 = vpop.f32.mrf.mxu1  ;;  %v5749_v38 = vor.u32 %v4768_v54, %v3978_v34  ;;  %v5763_v34 = vor.u32 %v4738_v57, %v3858_v37  ;;  %v4752_v54 = vld [vmem:[%s7710_s3 + $0x154] sm:$0xf] }
  0x9a   :  { %v4927_v26 = vpop.eup %4926  ;;  %v3922_v5 = vld [vmem:[%s7710_s3 + $0x168] sm:$0xf0]  ;;  %v290_v56 = vadd.f32 %v289_v28, %v5673_v4  ;;  %945 = vmatpush.bf16.msrb.mxu0 %v5718_v25  ;;  %822 = vmatmul.bf16.vlgmr.msra.gmra.mxu3 %v5728_v27  ;;  %v277_v25 = vadd.f32 %v276_v44, %v5673_v4  ;;  %v3850_v44 = vld [vmem:[%s7710_s3 + $0xd8] sm:$0xf0] }
  0x9b   :  { %7983 = vst [vmem:[#allocation62_spill] sm:$0xff] %v5730_v8  ;;  %v5738_v46 = vpack.c.bf16 %v4927_v26, %v4927_v26  ;;  %931 = vmatpush.bf16.msra.mxu3 %v5720_v32  ;;  %v5753_v26 = vor.u32 %v4754_v17, %v3922_v5  ;;  %v3970_v28 = vld [vmem:[%s7710_s3 + $0x1c8] sm:$0xf0]  ;;  %v3914_v17 = vld [vmem:[%s7710_s3 + $0x158] sm:$0xf0] }
  0x9c   :  { %7984 = vst [vmem:[#allocation63_spill] sm:$0xff] %v5749_v38  ;;  %4928 = vtanh.f32 %v290_v56  ;;  %v4736_v5 = vld [vmem:[%s7710_s3 + $0xd4] sm:$0xf]  ;;  %v5778_v37 = vor.u32 %v4766_v14, %v3970_v28  ;;  %v4750_v28 = vld [vmem:[%s7710_s3 + $0x144] sm:$0xf] }
  0x9d   :  { %848 = vmatmul.bf16.vlgmr.msra.gmra.mxu1 %v5738_v46  ;;  %7985 = vst [vmem:[#allocation64_spill] sm:$0xff] %v5753_v26  ;;  %v4764_v32 = vld [vmem:[%s7710_s3 + $0x1b4] sm:$0xf]  ;;  %4930 = vtanh.f32 %v277_v25  ;;  %v5792_v14 = vor.u32 %v4736_v5, %v3850_v44 }
  0x9e   :  { %918 = vmatpush.bf16.msra.mxu1 %v5730_v8  ;;  %7986 = vst [vmem:[#allocation65_spill] sm:$0xff] %v5763_v34  ;;  %946 = vmatpush.bf16.msrb.mxu0 %v5749_v38  ;;  %v263_v57 = vpop.f32.mrf.mxu3  ;;  %v5782_v8 = vor.u32 %v4752_v54, %v3914_v17  ;;  %v3906_v54 = vld [vmem:[%s7710_s3 + $0x148] sm:$0xf0]  ;;  %v4734_v17 = vld [vmem:[%s7710_s3 + $0xc4] sm:$0xf]  ;;  %v5807_v44 = vor.u32 %v4764_v32, %v3962_v53 }
  0x9f   :  { %7987 = vst [vmem:[#allocation66_spill] sm:$0xff] %v5778_v37  ;;  %v264_v56 = vadd.f32 %v263_v57, %v5673_v4  ;;  %932 = vmatpush.bf16.msra.mxu3 %v5753_v26  ;;  %v4732_v32 = vld [vmem:[%s7710_s3 + $0xb4] sm:$0xf]  ;;  %v3834_v53 = vld [vmem:[%s7710_s3 + $0xb8] sm:$0xf0] }
  0xa0   :  { %7988 = vst [vmem:[#allocation67_spill] sm:$0xff] %v5782_v8  ;;  %v4760_v26 = vld [vmem:[%s7710_s3 + $0x194] sm:$0xf]  ;;  %v5855_v15 = vor.u32 %v4732_v32, %v3834_v53  ;;  %v4746_v32 = vld [vmem:[%s7710_s3 + $0x124] sm:$0xf] }
  0xa1   :  { %v302_v35 = vpop.f32.mrf.mxu2  ;;  %7989 = vst [vmem:[#allocation68_spill] sm:$0xff] %v5792_v14  ;;  %4932 = vtanh.f32 %v264_v56  ;;  %v291_v25 = vpop.f32.mrf.mxu1  ;;  %v5812_v56 = vor.u32 %v4750_v28, %v3906_v54  ;;  %v4748_v28 = vld [vmem:[%s7710_s3 + $0x134] sm:$0xf]  ;;  %v3898_v54 = vld [vmem:[%s7710_s3 + $0x138] sm:$0xf0] }
  0xa2   :  { %v303_v38 = vadd.f32 %v302_v35, %v5673_v4  ;;  %919 = vmatpush.bf16.msra.mxu1 %v5763_v34  ;;  %v3842_v35 = vld [vmem:[%s7710_s3 + $0xc8] sm:$0xf0]  ;;  %v4929_v5 = vpop.eup %4928  ;;  %947 = vmatpush.bf16.msrb.mxu0 %v5778_v37  ;;  %7990 = vst [vmem:[#allocation69_spill] sm:$0xff] %v5807_v44  ;;  %v4762_v34 = vld [vmem:[%s7710_s3 + $0x1a4] sm:$0xf] }
  0xa3   :  { %v5809_v57 = vpack.c.bf16 %v4929_v5, %v4929_v5  ;;  %933 = vmatpush.bf16.msra.mxu3 %v5782_v8  ;;  %7991 = vst [vmem:[#allocation70_spill] sm:$0xff] %v5812_v56  ;;  %v3954_v25 = vld [vmem:[%s7710_s3 + $0x1a8] sm:$0xf0]  ;;  %v4788_v5 = vld [vmem:[%s7710_s3 + $0x274] sm:$0xf] }
  0xa4   :  { %4934 = vtanh.f32 %v303_v38  ;;  %v5821_v38 = vor.u32 %v4734_v17, %v3842_v35  ;;  %v4931_v17 = vpop.eup %4930  ;;  %v5837_v35 = vor.u32 %v4762_v34, %v3954_v25  ;;  %v4058_v37 = vld [vmem:[%s7710_s3 + $0x278] sm:$0xf0]  ;;  %7994 = vst [vmem:[#allocation73_spill] sm:$0xff] %v5855_v15  ;;  %v3890_v53 = vld [vmem:[%s7710_s3 + $0x128] sm:$0xf0] }
  0xa5   :  { %887 = vmatmul.bf16.vlgmr.msra.gmra.mxu0 %v5809_v57  ;;  %v3946_v34 = vld [vmem:[%s7710_s3 + $0x198] sm:$0xf0]  ;;  %v5862_v42 = vpack.c.bf16 %v4931_v17, %v4931_v17  ;;  %v5866_v13 = vor.u32 %v4788_v5, %v4058_v37  ;;  %v4786_v37 = vld [vmem:[%s7710_s3 + $0x264] sm:$0xf]  ;;  %v5900_v5 = vor.u32 %v4746_v32, %v3890_v53 }
  0xa6   :  { %920 = vmatpush.bf16.msra.mxu1 %v5792_v14  ;;  %7992 = vst [vmem:[#allocation71_spill] sm:$0xff] %v5821_v38  ;;  %948 = vmatpush.bf16.msrb.mxu0 %v5807_v44  ;;  %v265_v14 = vpop.f32.mrf.mxu3  ;;  %v3882_v32 = vld [vmem:[%s7710_s3 + $0x118] sm:$0xf0] }
  0xa7   :  { %7993 = vst [vmem:[#allocation72_spill] sm:$0xff] %v5837_v35  ;;  %v4933_v8 = vpop.eup %4932  ;;  %934 = vmatpush.bf16.msra.mxu3 %v5812_v56  ;;  %v5857_v14 = vor.u32 %v4748_v28, %v3898_v54  ;;  %v4730_v56 = vld [vmem:[%s7710_s3 + $0xa4] sm:$0xf]  ;;  %v4050_v28 = vld [vmem:[%s7710_s3 + $0x268] sm:$0xf0] }
  0xa8   :  { %v5852_v4 = vpack.c.bf16 %v4933_v8, %v4933_v8  ;;  %7996 = vst [vmem:[#allocation75_spill] sm:$0xff] %v5866_v13  ;;  %v3826_v8 = vld [vmem:[%s7710_s3 + $0xa8] sm:$0xf0]  ;;  %v4758_v54 = vld [vmem:[%s7710_s3 + $0x184] sm:$0xf] }
  0xa9   :  { %v304_v25 = vpop.f32.mrf.mxu2  ;;  %7995 = vst [vmem:[#allocation74_spill] sm:$0xff] %v5857_v14  ;;  %v5898_v17 = vor.u32 %v4730_v56, %v3826_v8  ;;  %v3818_v56 = vld [vmem:[%s7710_s3 + $0x98] sm:$0xf0]  ;;  %v4744_v8 = vld [vmem:[%s7710_s3 + $0x114] sm:$0xf] }
  0xaa   :  { %v4935_v44 = vpop.eup %4934  ;;  %921 = vmatpush.bf16.msra.mxu1 %v5821_v38  ;;  %949 = vmatpush.bf16.msrb.mxu0 %v5837_v35  ;;  %7999 = vst [vmem:[#allocation78_spill] sm:$0xff] %v5900_v5  ;;  %v4182_v25 = vld [vmem:[%s7707_s0 + $0xa8] sm:$0xf]  ;;  %v4832_v35 = vld [vmem:[%s7707_s0 + $0xc0] sm:$0xf0] }
  0xab   :  { %v5864_v50 = vpack.c.bf16 %v4935_v44, %v4935_v44  ;;  %861 = vmatmul.bf16.vlgmr.msra.gmra.mxu2 %v5852_v4  ;;  %v5879_v44 = vor.u32 %v4760_v26, %v3946_v34  ;;  %874 = vmatmul.bf16.vlgmr.msrb.gmra.mxu3 %v5862_v42  ;;  %v3938_v26 = vld [vmem:[%s7710_s3 + $0x188] sm:$0xf0]  ;;  %7998 = vst [vmem:[#allocation77_spill] sm:$0xff] %v5898_v17  ;;  %v4728_v34 = vld [vmem:[%s7710_s3 + $0x94] sm:$0xf] }
  0xac   :  { %935 = vmatpush.bf16.msra.mxu3 %v5857_v14  ;;  %957 = vmatpush.bf16.msra.mxu2 %v5866_v13  ;;  %v5924_v53 = vor.u32 %v4758_v54, %v3938_v26  ;;  %v4726_v38 = vld [vmem:[%s7710_s3 + $0x84] sm:$0xf]  ;;  %v4183_v14 = vor.u32 %v4832_v35, %v4182_v25  ;;  %v5939_v54 = vor.u32 %v4744_v8, %v3882_v32  ;;  %v3810_v26 = vld [vmem:[%s7710_s3 + $0x88] sm:$0xf0]  ;;  %v4154_v13 = vld [vmem:[%s7707_s0 + $0x70] sm:$0xf] }
  0xad   :  { %7997 = vst [vmem:[#allocation76_spill] sm:$0xff] %v5879_v44  ;;  %4134 = vmatmul.msk.bf16.vlgmr.msrb.gmra.mxu1 %vm810_vm1, %v5864_v50  ;;  %v4825_v35 = vld [vmem:[%s7707_s0 + $0x88] sm:$0xf0]  ;;  %v4782_v8 = vld [vmem:[%s7710_s3 + $0x244] sm:$0xf] }
  0xae   :  { %922 = vmatpush.bf16.msra.mxu1 %v5855_v15  ;;  %v5912_v15 = vor.u32 %v4786_v37, %v4050_v28  ;;  %950 = vmatpush.bf16.msrb.mxu0 %v5879_v44  ;;  %8001 = vst [vmem:[#allocation80_spill] sm:$0xff] %v5924_v53  ;;  %v4784_v37 = vld [vmem:[%s7710_s3 + $0x254] sm:$0xf]  ;;  %v4042_v28 = vld [vmem:[%s7710_s3 + $0x258] sm:$0xf0]  ;;  %v5937_v44 = vor.u32 %v4728_v34, %v3818_v56 }
  0xaf   :  { %8003 = vst [vmem:[#allocation82_spill] sm:$0xff] %v5939_v54  ;;  %v5951_v25 = vor.u32 %v4784_v37, %v4042_v28  ;;  %v4742_v34 = vld [vmem:[%s7710_s3 + $0x104] sm:$0xf]  ;;  %v3874_v56 = vld [vmem:[%s7710_s3 + $0x108] sm:$0xf0] }
  0xb0   :  { %8000 = vst [vmem:[#allocation79_spill] sm:$0xff] %v5912_v15  ;;  %936 = vmatpush.bf16.msra.mxu3 %v5900_v5  ;;  %958 = vmatpush.bf16.msra.mxu2 %v5912_v15  ;;  %v4034_v32 = vld [vmem:[%s7710_s3 + $0x248] sm:$0xf0]  ;;  %v4804_v37 = vld [vmem:[%s7710_s3 + $0x2f4] sm:$0xf]  ;;  %v5980_v15 = vor.u32 %v4726_v38, %v3810_v26  ;;  %v5982_v23 = vor.u32 %v4742_v34, %v3874_v56 }
  0xb1   :  { %8002 = vst [vmem:[#allocation81_spill] sm:$0xff] %v5937_v44  ;;  %v4122_v28 = vld [vmem:[%s7710_s3 + $0x2f8] sm:$0xf0]  ;;  %v4806_v5 = vld [vmem:[%s7710_s3 + $0x304] sm:$0xf] }
  0xb2   :  { %923 = vmatpush.bf16.msra.mxu1 %v5898_v17  ;;  %8004 = vst [vmem:[#allocation83_spill] sm:$0xff] %v5951_v25  ;;  %951 = vmatpush.bf16.msrb.mxu0 %v5924_v53  ;;  %v4155_v17 = vor.u32 %v4825_v35, %v4154_v13  ;;  %v4130_v53 = vld [vmem:[%s7710_s3 + $0x308] sm:$0xf0]  ;;  %v4780_v13 = vld [vmem:[%s7710_s3 + $0x234] sm:$0xf]  ;;  %v5992_v35 = vor.u32 %v4782_v8, %v4034_v32 }
  0xb3   :  { %8005 = vst [vmem:[#allocation84_spill] sm:$0xff] %v5980_v15  ;;  %v4192_v38 = vld [vmem:[%s7707_s0 + $0xcc] sm:$0xf0]  ;;  %v4833_v34 = vld [vmem:[%s7707_s0 + $0xc8] sm:$0xf0]  ;;  %v6014_v32 = vor.u32 %v4806_v5, %v4130_v53 }
  0xb4   :  { %937 = vmatpush.bf16.msra.mxu3 %v5939_v54  ;;  %8006 = vst [vmem:[#allocation85_spill] sm:$0xff] %v5982_v23  ;;  %959 = vmatpush.bf16.msra.mxu2 %v5951_v25  ;;  %v4190_v26 = vld [vmem:[%s7707_s0 + $0xb0] sm:$0xf]  ;;  %v4802_v56 = vld [vmem:[%s7710_s3 + $0x2e4] sm:$0xf] }
  0xb5   :  { %952 = vmatmul.bf16.vlgmr.msrb.gmra.mxu0 %v5852_v4  ;;  %8007 = vst [vmem:[#allocation86_spill] sm:$0xff] %v5992_v35  ;;  %v4026_v4 = vld [vmem:[%s7710_s3 + $0x238] sm:$0xf0]  ;;  %v4114_v8 = vld [vmem:[%s7710_s3 + $0x2e8] sm:$0xf0]  ;;  %v4191_v25 = vor.u32 %v4833_v34, %v4190_v26 }
  0xb6   :  { %1096 = vmatpush.bf16.msra.mxu0 %v4183_v14  ;;  %924 = vmatpush.bf16.msra.mxu1 %v5937_v44  ;;  %v4830_v14 = vld [vmem:[%s7707_s0 + $0xb4] sm:$0xf]  ;;  %v5994_v44 = vor.u32 %v4804_v37, %v4122_v28  ;;  %8009 = vst [vmem:[#allocation88_spill] sm:$0xff] %v6014_v32  ;;  %v4778_v37 = vld [vmem:[%s7710_s3 + $0x224] sm:$0xf]  ;;  %v6026_v5 = vor.u32 %v4780_v13, %v4026_v4 }
  0xb7   :  { %v4195_v28 = vor.u32 %v4830_v14, %v4192_v38  ;;  %v4823_v54 = vld [vmem:[%s7707_s0 + $0x7c] sm:$0xf]  ;;  %v4164_v53 = vld [vmem:[%s7707_s0 + $0x94] sm:$0xf0]  ;;  %v4826_v38 = vld [vmem:[%s7707_s0 + $0x90] sm:$0xf0] }
  0xb8   :  { %8008 = vst [vmem:[#allocation87_spill] sm:$0xff] %v5994_v44  ;;  %938 = vmatpush.bf16.msra.mxu3 %v5982_v23  ;;  %960 = vmatpush.bf16.msra.mxu2 %v5992_v35  ;;  %v4162_v14 = vld [vmem:[%s7707_s0 + $0x78] sm:$0xf]  ;;  %v4018_v13 = vld [vmem:[%s7710_s3 + $0x228] sm:$0xf0] }
  0xb9   :  { %8010 = vst [vmem:[#allocation89_spill] sm:$0xff] %v6026_v5  ;;  %v4800_v26 = vld [vmem:[%s7710_s3 + $0x2d4] sm:$0xf]  ;;  %v4106_v34 = vld [vmem:[%s7710_s3 + $0x2d8] sm:$0xf0]  ;;  %v4163_v4 = vor.u32 %v4826_v38, %v4162_v14 }
  0xba   :  { %1097 = vmatpush.bf16.msra.mxu0 %v4155_v17  ;;  %925 = vmatpush.bf16.msra.mxu1 %v5980_v15  ;;  %v6028_v17 = vor.u32 %v4802_v56, %v4114_v8  ;;  %v6054_v56 = vor.u32 %v4778_v37, %v4018_v13  ;;  %v6056_v8 = vor.u32 %v4800_v26, %v4106_v34  ;;  %v4796_v14 = vld [vmem:[%s7710_s3 + $0x2b4] sm:$0xf]  ;;  %v4090_v38 = vld [vmem:[%s7710_s3 + $0x2b8] sm:$0xf0]  ;;  %v4184_v13 = vld [vmem:[%s7707_s0 + $0xc4] sm:$0xf0] }
  0xbb   :  { %913 = vmatmul.bf16.vlgmr.msrb.gmra.mxu2 %v5728_v27  ;;  %939 = vmatmul.bf16.vlgmr.msra.gmra.mxu3 %v5738_v46  ;;  %v4167_v27 = vor.u32 %v4823_v54, %v4164_v53  ;;  %v4798_v46 = vld [vmem:[%s7710_s3 + $0x2c4] sm:$0xf]  ;;  %v4098_v54 = vld [vmem:[%s7710_s3 + $0x2c8] sm:$0xf0]  ;;  %v6098_v34 = vor.u32 %v4796_v14, %v4090_v38  ;;  %v4200_v14 = vld [vmem:[%s7707_s0 + $0xd4] sm:$0xf0] }
  0xbc   :  { %8011 = vst [vmem:[#allocation90_spill] sm:$0xff] %v6028_v17  ;;  %990 = vmatpush.bf16.msrb.mxu3 %v6014_v32  ;;  %961 = vmatpush.bf16.msra.mxu2 %v6026_v5  ;;  %v6074_v37 = vor.u32 %v4798_v46, %v4098_v54  ;;  %v4002_v53 = vld [vmem:[%s7710_s3 + $0x208] sm:$0xf0] }
  0xbd   :  { %926 = vmatmul.bf16.vlgmr.msra.gmra.mxu1 %v5696_v61  ;;  %8012 = vst [vmem:[#allocation91_spill] sm:$0xff] %v6054_v56  ;;  %v4010_v61 = vld [vmem:[%s7710_s3 + $0x218] sm:$0xf0]  ;;  %v4082_v46 = vld [vmem:[%s7710_s3 + $0x2a8] sm:$0xf0] }
  0xbe   :  { %970 = vmatpush.bf16.msrb.mxu1 %v5994_v44  ;;  %1135 = vmatpush.bf16.msrb.mxu0 %v4195_v28  ;;  %8013 = vst [vmem:[#allocation92_spill] sm:$0xff] %v6056_v8  ;;  %v4776_v44 = vld [vmem:[%s7710_s3 + $0x214] sm:$0xf]  ;;  %v4774_v28 = vld [vmem:[%s7710_s3 + $0x204] sm:$0xf] }
  0xbf   :  { %8015 = vst [vmem:[#allocation94_spill] sm:$0xff] %v6074_v37  ;;  %v6096_v26 = vor.u32 %v4774_v28, %v4002_v53  ;;  %v4822_v28 = vld [vmem:[%s7707_s0 + $0x74] sm:$0xf]  ;;  %v4156_v53 = vld [vmem:[%s7707_s0 + $0x8c] sm:$0xf0] }
  0xc0   :  { %1122 = vmatpush.bf16.msra.mxu3 %v4191_v25  ;;  %962 = vmatpush.bf16.msra.mxu2 %v6054_v56  ;;  %v6072_v25 = vor.u32 %v4776_v44, %v4010_v61  ;;  %v4829_v44 = vld [vmem:[%s7707_s0 + $0xac] sm:$0xf]  ;;  %8017 = vst [vmem:[#allocation96_spill] sm:$0xff] %v6098_v34  ;;  %v4794_v61 = vld [vmem:[%s7710_s3 + $0x2a4] sm:$0xf] }
  0xc1   :  { %8016 = vst [vmem:[#allocation95_spill] sm:$0xff] %v6096_v26  ;;  %v4187_v54 = vor.u32 %v4829_v44, %v4184_v13  ;;  %v6129_v44 = vor.u32 %v4794_v61, %v4082_v46  ;;  %v4178_v13 = vld [vmem:[%s7707_s0 + $0x88] sm:$0xf]  ;;  %v4824_v46 = vld [vmem:[%s7707_s0 + $0x84] sm:$0xf] }
  0xc2   :  { %971 = vmatpush.bf16.msrb.mxu1 %v6028_v17  ;;  %1136 = vmatpush.bf16.msrb.mxu0 %v4167_v27  ;;  %8014 = vst [vmem:[#allocation93_spill] sm:$0xff] %v6072_v25  ;;  %v4206_v27 = vld [vmem:[%s7707_s0 + $0xc0] sm:$0xf] }
  0xc3   :  { %8018 = vst [vmem:[#allocation97_spill] sm:$0xff] %v6129_v44 }
  0xc4   :  { %1123 = vmatpush.bf16.msra.mxu3 %v4163_v4  ;;  %963 = vmatpush.bf16.msra.mxu2 %v6072_v25  ;;  %v4835_v4 = vld [vmem:[%s7707_s0 + $0xd8] sm:$0xf0] }
  0xc5   :  { %4208 = vmatmul.msk.bf16.vlgmr.msra.gmra.mxu0 %vm211_vm0, %v5109_v22  ;;  %v4831_v22 = vld [vmem:[%s7707_s0 + $0xbc] sm:$0xf]  ;;  %v4207_v38 = vor.u32 %v4835_v4, %v4206_v27  ;;  %v4159_v4 = vor.u32 %v4822_v28, %v4156_v53  ;;  %v4198_v28 = vld [vmem:[%s7707_s0 + $0xb8] sm:$0xf] }
  0xc6   :  { %972 = vmatpush.bf16.msrb.mxu1 %v6056_v8  ;;  %1198 = vmatpush.bf16.msra.mxu0 %v5182_v52  ;;  %v4828_v52 = vld [vmem:[%s7707_s0 + $0xa0] sm:$0xf0]  ;;  %v4074_v27 = vld [vmem:[%s7710_s3 + $0x298] sm:$0xf0]  ;;  %v4203_v61 = vor.u32 %v4831_v22, %v4200_v14  ;;  %v4170_v14 = vld [vmem:[%s7707_s0 + $0x80] sm:$0xf] }
  0xc7   :  { %v4179_v8 = vor.u32 %v4828_v52, %v4178_v13  ;;  %v4834_v52 = vld [vmem:[%s7707_s0 + $0xd0] sm:$0xf0] }
  0xc8   :  { %964 = vmatpush.bf16.msra.mxu2 %v6096_v26  ;;  %v4199_v22 = vor.u32 %v4834_v52, %v4198_v28  ;;  %v8022_v13 = vld [vmem:[#allocation48_spill] sm:$0xff]  ;;  %v8029_v28 = vld [vmem:[#allocation50_spill] sm:$0xff] }
  0xc9   :  { %v8030_v52 = vld [vmem:[#allocation52_spill] sm:$0xff] }
  0xca   :  { %973 = vmatpush.bf16.msrb.mxu1 %v6074_v37  ;;  %v4792_v37 = vld [vmem:[%s7710_s3 + $0x294] sm:$0xf]  ;;  %1199 = vmatpush.bf16.msra.mxu0 %v5202_v58 }
  0xcb   :  { %4135 = vmatmul.msk.bf16.vlgmr.msrb.gmra.mxu3 %vm810_vm1, %v5864_v50  ;;  %965 = vmatmul.bf16.vlgmr.msra.gmra.mxu2 %v5862_v42  ;;  %v4790_v50 = vld [vmem:[%s7710_s3 + $0x284] sm:$0xf]  ;;  %v4066_v42 = vld [vmem:[%s7710_s3 + $0x288] sm:$0xf0] }
  0xcc   :  { %1109 = vmatpush.bf16.msrb.mxu2 %v4187_v54  ;;  %1174 = vmatpush.bf16.msrb.mxu3 %v4207_v38  ;;  %v6154_v54 = vor.u32 %v4792_v37, %v4074_v27  ;;  %v6170_v53 = vor.u32 %v4790_v50, %v4066_v42  ;;  %v4827_v38 = vld [vmem:[%s7707_s0 + $0x98] sm:$0xf0]  ;;  %v8028_v42 = vld [vmem:[#allocation31_spill] sm:$0xff] }
  0xcd   :  { %v8023_v27 = vld [vmem:[#allocation45_spill] sm:$0xff] }
  0xce   :  { %974 = vmatpush.bf16.msrb.mxu1 %v6098_v34  ;;  %v4172_v34 = vld [vmem:[%s7707_s0 + $0x9c] sm:$0xf0]  ;;  %8019 = vst [vmem:[#allocation98_spill] sm:$0xff] %v6154_v54  ;;  %1200 = vmatpush.bf16.msra.mxu0 %v5228_v3  ;;  %v8027_v50 = vld [vmem:[#allocation49_spill] sm:$0xff] }
  0xcf   :  { %v4175_v37 = vor.u32 %v4824_v46, %v4172_v34  ;;  %8020 = vst [vmem:[#allocation99_spill] sm:$0xff] %v6170_v53  ;;  %v4171_v34 = vor.u32 %v4827_v38, %v4170_v14  ;;  %v8026_v46 = vld [vmem:[#allocation46_spill] sm:$0xff] }
  0xd0   :  { %1110 = vmatpush.bf16.msrb.mxu2 %v4159_v4  ;;  %1175 = vmatpush.bf16.msrb.mxu3 %v4179_v8  ;;  %v6183_v8 = vld [vmem:[%s7708_s1] sm:$0xf]  ;;  %v8024_v4 = vld [vmem:[#allocation51_spill] sm:$0xff] }
  0xd1   :  { %v8033_v14 = vld [vmem:[#allocation34_spill] sm:$0xff] }
  0xd2   :  { %975 = vmatpush.bf16.msrb.mxu1 %v6129_v44  ;;  %1201 = vmatpush.bf16.msra.mxu0 %v5267_v16  ;;  %v8034_v38 = vld [vmem:[#allocation54_spill] sm:$0xff] }
  0xd4   :  { %1161 = vmatpush.bf16.msra.mxu2 %v4203_v61  ;;  %v8025_v61 = vld [vmem:[#allocation29_spill] sm:$0xff] }
  0xd5   :  { %4211 = vmatmul.msk.bf16.vlgmr.msrb.gmra.mxu0 %vm211_vm0, %v6183_v8 }
  0xd6   :  { %976 = vmatpush.bf16.msrb.mxu1 %v6154_v54  ;;  %1202 = vmatpush.bf16.msra.mxu0 %v5308_v29 }
  0xd8   :  { %1162 = vmatpush.bf16.msra.mxu2 %v4175_v37  ;;  %v8031_v37 = vld [vmem:[#allocation33_spill] sm:$0xff] }
  0xda   :  { %977 = vmatpush.bf16.msrb.mxu1 %v6170_v53  ;;  %1203 = vmatpush.bf16.msra.mxu0 %v5344_v41 }
  0xdb   :  { %4210 = vmatmul.msk.bf16.vlgmr.msra.gmra.mxu3 %vm211_vm0, %v6183_v8  ;;  %4209 = vmatmul.msk.bf16.vlgmr.msrb.gmra.mxu2 %vm211_vm0, %v6183_v8 }
  0xdc   :  { %1237 = vmatpush.bf16.msra.mxu3 %v5222_v1  ;;  %1224 = vmatpush.bf16.msrb.mxu2 %v5278_v20 }
  0xdd   :  { %978 = vmatmul.bf16.vlgmr.msrb.gmra.mxu1 %v5809_v57  ;;  %v8021_v57 = vld [vmem:[#allocation42_spill] sm:$0xff] }
  0xde   :  { %1148 = vmatpush.bf16.msra.mxu1 %v4199_v22  ;;  %1204 = vmatpush.bf16.msra.mxu0 %v5386_v59  ;;  %v8032_v22 = vld [vmem:[#allocation53_spill] sm:$0xff] }
  0xe0   :  { %1238 = vmatpush.bf16.msra.mxu3 %v5237_v6  ;;  %1225 = vmatpush.bf16.msrb.mxu2 %v5320_v33 }
  0xe2   :  { %1149 = vmatpush.bf16.msra.mxu1 %v4171_v34  ;;  %1205 = vmatpush.bf16.msra.mxu0 %v5418_v11  ;;  %v8035_v34 = vld [vmem:[#allocation38_spill] sm:$0xff] }
  0xe4   :  { %1239 = vmatpush.bf16.msra.mxu3 %v5273_v18  ;;  %1226 = vmatpush.bf16.msrb.mxu2 %v5356_v45 }
  0xe6   :  { %1211 = vmatpush.bf16.msrb.mxu1 %v5171_v48  ;;  %1250 = vmatpush.bf16.msrb.mxu0 %v5421_v12 }
  0xe8   :  { %1240 = vmatpush.bf16.msra.mxu3 %v5314_v31  ;;  %1227 = vmatpush.bf16.msrb.mxu2 %v5398_v0 }
  0xea   :  { %1212 = vmatpush.bf16.msrb.mxu1 %v5191_v55  ;;  %1251 = vmatpush.bf16.msrb.mxu0 %v5442_v21  ;;  %v8041_v21 = vld [vmem:[#allocation57_spill] sm:$0xff] }
  0xeb   :  { %4214 = vmatmul.msk.bf16.vlgmr.msrb.gmra.mxu3 %vm211_vm0, %v6183_v8  ;;  %4213 = vmatmul.msk.bf16.vlgmr.msra.gmra.mxu2 %vm211_vm0, %v6183_v8 }
  0xec   :  { %1241 = vmatpush.bf16.msra.mxu3 %v5350_v43  ;;  %1228 = vmatpush.bf16.msrb.mxu2 %v5493_v47 }
  0xed   :  { %4212 = vmatmul.msk.bf16.vlgmr.msra.gmra.mxu1 %vm211_vm0, %v6183_v8 }
  0xee   :  { %1213 = vmatpush.bf16.msrb.mxu1 %v5217_v63  ;;  %1252 = vmatpush.bf16.msrb.mxu0 %v5460_v30 }
  0xf0   :  { %1242 = vmatpush.bf16.msra.mxu3 %v5389_v60  ;;  %1229 = vmatpush.bf16.msrb.mxu2 %v5529_v10 }
  0xf2   :  { %1214 = vmatpush.bf16.msrb.mxu1 %v5246_v9  ;;  %1253 = vmatpush.bf16.msrb.mxu0 %v5499_v51  ;;  %v8042_v9 = vld [vmem:[#allocation61_spill] sm:$0xff] }
  0xf4   :  { %1243 = vmatpush.bf16.msra.mxu3 %v5481_v40  ;;  %1230 = vmatpush.bf16.msrb.mxu2 %v5566_v39 }
  0xf6   :  { %1215 = vmatpush.bf16.msrb.mxu1 %v5289_v24  ;;  %1254 = vmatpush.bf16.msrb.mxu0 %v5541_v19  ;;  %v8039_v19 = vld [vmem:[#allocation47_spill] sm:$0xff] }
  0xf8   :  { %1244 = vmatpush.bf16.msra.mxu3 %v5517_v62  ;;  %1231 = vmatpush.bf16.msrb.mxu2 %v8022_v13 }
  0xfa   :  { %1216 = vmatpush.bf16.msrb.mxu1 %v5329_v36  ;;  %1255 = vmatpush.bf16.msrb.mxu0 %v8023_v27  ;;  %v8036_v27 = vld [vmem:[#allocation55_spill] sm:$0xff] }
  0xfc   :  { %1289 = vmatpush.bf16.msrb.mxu3 %v8021_v57  ;;  %1283 = vmatpush.bf16.msra.mxu2 %v8024_v4 }
  0xfe   :  { %1217 = vmatpush.bf16.msrb.mxu1 %v5365_v49  ;;  %1256 = vmatpush.bf16.msrb.mxu0 %v8027_v50  ;;  %v8038_v50 = vld [vmem:[#allocation56_spill] sm:$0xff] }
 0x100   :  { %1290 = vmatpush.bf16.msrb.mxu3 %v8026_v46 }
 0x102   :  { %1218 = vmatpush.bf16.msrb.mxu1 %v5401_v2  ;;  %1257 = vmatpush.bf16.msrb.mxu0 %v8030_v52  ;;  %v8040_v52 = vld [vmem:[#allocation58_spill] sm:$0xff] }
 0x104   :  { %1291 = vmatpush.bf16.msrb.mxu3 %v8029_v28 }
 0x106   :  { %1263 = vmatpush.bf16.msra.mxu1 %v5409_v7 }
 0x108   :  { %1292 = vmatpush.bf16.msrb.mxu3 %v8032_v22 }
 0x10a   :  { %1264 = vmatpush.bf16.msra.mxu1 %v8025_v61  ;;  %v8037_v61 = vld [vmem:[#allocation43_spill] sm:$0xff] }
 0x10c   :  { %1293 = vmatpush.bf16.msrb.mxu3 %v8034_v38 }
 0x10e   :  { %1265 = vmatpush.bf16.msra.mxu1 %v8028_v42 }
 0x110   :  { %1294 = vmatpush.bf16.msrb.mxu3 %v8036_v27 }
 0x112   :  { %1266 = vmatpush.bf16.msra.mxu1 %v8031_v37  ;;  %v836_v42 = vpop.f32.mrf.mxu0 }
 0x114   :  { %1295 = vmatpush.bf16.msrb.mxu3 %v8038_v50 }
 0x116   :  { %1267 = vmatpush.bf16.msra.mxu1 %v8033_v14 }
 0x118   :  { %1296 = vmatpush.bf16.msrb.mxu3 %v8040_v52 }
 0x11a   :  { %1268 = vmatpush.bf16.msra.mxu1 %v8035_v34  ;;  %v849_v37 = vpop.f32.mrf.mxu1  ;;  %v838_v28 = vpop.f32.mrf.mxu0 }
 0x11d   :  { %v823_v22 = vpop.f32.mrf.mxu3 }
 0x11e   :  { %1269 = vmatpush.bf16.msra.mxu1 %v8037_v61 }
 0x122   :  { %1270 = vmatpush.bf16.msra.mxu1 %v8039_v19  ;;  %v851_v7 = vpop.f32.mrf.mxu1  ;;  %v888_v14 = vpop.f32.mrf.mxu0 }
 0x123   :  { %v837_v7 = vadd.f32 %v836_v42, %v823_v22 }
 0x125   :  { %v825_v2 = vpop.f32.mrf.mxu3  ;;  %v850_v24 = vadd.f32 %v849_v37, %v837_v7 }
 0x12a   :  { %v901_v38 = vpop.f32.mrf.mxu1  ;;  %v890_v51 = vpop.f32.mrf.mxu0 }
 0x12e   :  { %v862_v34 = vpop.f32.mrf.mxu2  ;;  %v875_v46 = vpop.f32.mrf.mxu3 }
 0x132   :  { %v903_v27 = vpop.f32.mrf.mxu1  ;;  %v953_v49 = vpop.f32.mrf.mxu0 }
 0x133   :  { %v863_v27 = vadd.f32 %v862_v34, %v850_v24 }
 0x136   :  { %v864_v61 = vpop.f32.mrf.mxu2  ;;  %v877_v30 = vpop.f32.mrf.mxu3 }
 0x13a   :  { %v927_v50 = vpop.f32.mrf.mxu1  ;;  %v955_v57 = vpop.f32.mrf.mxu0 }
 0x13e   :  { %v914_v62 = vpop.f32.mrf.mxu2  ;;  %v940_v19 = vpop.f32.mrf.mxu3 }
 0x13f   :  { %v928_v51 = vadd.f32 %v927_v50, %v914_v62  ;;  %v8043_v62 = vld [vmem:[#allocation64_spill] sm:$0xff] }
 0x141   :  { %v941_v30 = vadd.f32 %v940_v19, %v928_v51 }
 0x142   :  { %v929_v36 = vpop.f32.mrf.mxu1  ;;  %v1099_v52 = vpop.f32.mrf.mxu0 }
 0x143   :  { %v1100_v28 = vadd.f32 %v1099_v52, %v8041_v21  ;;  %v876_v36 = vadd.f32 %v875_v46, %v863_v27  ;;  %v954_v52 = vadd.f32 %v953_v49, %v941_v30  ;;  %v8044_v46 = vld [vmem:[#allocation67_spill] sm:$0xff] }
 0x145   :  { %4936 = vtanh.f32 %v1100_v28  ;;  %v889_v42 = vadd.f32 %v888_v14, %v876_v36  ;;  %v8048_v36 = vld [vmem:[#allocation75_spill] sm:$0xff] }
 0x146   :  { %v916_v40 = vpop.f32.mrf.mxu2  ;;  %v942_v2 = vpop.f32.mrf.mxu3 }
 0x147   :  { %v902_v50 = vadd.f32 %v901_v38, %v889_v42  ;;  %v8047_v2 = vld [vmem:[#allocation70_spill] sm:$0xff] }
 0x148   :  { %v8051_v42 = vld [vmem:[#allocation78_spill] sm:$0xff] }
 0x14a   :  { %v1101_v12 = vpop.f32.mrf.mxu0 }
 0x14b   :  { %v4937_v11 = vpop.eup %4936 }
 0x14c   :  { %v6252_v60 = vpack.c.bf16 %v4937_v11, %v4937_v11 }
 0x14e   :  { %v992_v61 = vpop.f32.mrf.mxu3  ;;  %v966_v57 = vpop.f32.mrf.mxu2  ;;  %1206 = vmatmul.bf16.vlgmr.msra.gmra.mxu0 %v6252_v60 }
 0x14f   :  { %1315 = vmatpush.bf16.msra.mxu0 %v8042_v9  ;;  %v967_v22 = vadd.f32 %v966_v57, %v954_v52  ;;  %v8049_v52 = vld [vmem:[#allocation74_spill] sm:$0xff] }
 0x152   :  { %v1138_v40 = vpop.f32.mrf.mxu0 }
 0x153   :  { %v1139_v37 = vadd.f32 %v1138_v40, %v8041_v21  ;;  %1316 = vmatpush.bf16.msra.mxu0 %v8043_v62  ;;  %v8050_v40 = vld [vmem:[#allocation79_spill] sm:$0xff] }
 0x155   :  { %4938 = vtanh.f32 %v1139_v37 }
 0x156   :  { %v994_v11 = vpop.f32.mrf.mxu3  ;;  %v968_v19 = vpop.f32.mrf.mxu2 }
 0x157   :  { %1317 = vmatpush.bf16.msra.mxu0 %v8044_v46 }
 0x15a   :  { %v979_v12 = vpop.f32.mrf.mxu1  ;;  %v1140_v28 = vpop.f32.mrf.mxu0 }
 0x15b   :  { %v980_v24 = vadd.f32 %v979_v12, %v967_v22  ;;  %v4939_v7 = vpop.eup %4938  ;;  %1318 = vmatpush.bf16.msra.mxu0 %v8047_v2 }
 0x15c   :  { %v6269_v51 = vpack.c.bf16 %v4939_v7, %v4939_v7  ;;  %v8054_v7 = vld [vmem:[#allocation62_spill] sm:$0xff] }
 0x15d   :  { %v993_v34 = vadd.f32 %v992_v61, %v980_v24 }
 0x15e   :  { %v1125_v27 = vpop.f32.mrf.mxu3  ;;  %v1112_v30 = vpop.f32.mrf.mxu2  ;;  %1245 = vmatmul.bf16.vlgmr.msra.gmra.mxu3 %v6269_v51 }
 0x15f   :  { %v996_v14 = vpack.c.bf16 %v993_v34, %v902_v50  ;;  %v1126_v61 = vadd.f32 %v1125_v27, %v8041_v21  ;;  %v1113_v57 = vadd.f32 %v1112_v30, %v8041_v21  ;;  %1341 = vmatpush.bf16.msra.mxu3 %v8048_v36  ;;  %1319 = vmatpush.bf16.msra.mxu0 %v8049_v52  ;;  %v8052_v34 = vld [vmem:[#allocation83_spill] sm:$0xff]  ;;  %v4254_v52 = vld [vmem:[%s7707_s0 + $0x10c] sm:$0xf0] }
 0x160   :  { %v4244_v36 = vld [vmem:[%s7707_s0 + $0xe8] sm:$0xf] }
 0x161   :  { %1000 = vst.msk [vmem:[%s7711_s4] sm:$0xff] %vm6259_vm4, %v996_v14  ;;  %4940 = vtanh.f32 %v1126_v61  ;;  %v8053_v14 = vld [vmem:[#allocation82_spill] sm:$0xff] }
 0x162   :  { %v981_v38 = vpop.f32.mrf.mxu1  ;;  %4942 = vtanh.f32 %v1113_v57 }
 0x163   :  { %1342 = vmatpush.bf16.msra.mxu3 %v8050_v40  ;;  %1320 = vmatpush.bf16.msra.mxu0 %v8051_v42  ;;  %v8055_v38 = vld [vmem:[#allocation59_spill] sm:$0xff]  ;;  %v4838_v40 = vld [vmem:[%s7707_s0 + $0xf4] sm:$0xf] }
 0x166   :  { %v1127_v12 = vpop.f32.mrf.mxu3  ;;  %v1114_v11 = vpop.f32.mrf.mxu2 }
 0x167   :  { %v4941_v24 = vpop.eup %4940  ;;  %1343 = vmatpush.bf16.msra.mxu3 %v8052_v34  ;;  %1321 = vmatpush.bf16.msra.mxu0 %v8053_v14  ;;  %v8056_v12 = vld [vmem:[#allocation65_spill] sm:$0xff]  ;;  %v8057_v11 = vld [vmem:[#allocation60_spill] sm:$0xff] }
 0x168   :  { %v4943_v19 = vpop.eup %4942  ;;  %v1190_v50 = vpack.c.bf16 %v4941_v24, %v4941_v24  ;;  %v8063_v14 = vld [vmem:[#allocation69_spill] sm:$0xff] }
 0x169   :  { %v6281_v28 = vpack.c.bf16 %v4943_v19, %v4943_v19  ;;  %v8058_v19 = vld [vmem:[#allocation68_spill] sm:$0xff] }
 0x16a   :  { %v1151_v22 = vpop.f32.mrf.mxu1  ;;  %1232 = vmatmul.bf16.vlgmr.msrb.gmra.mxu2 %v1190_v50 }
 0x16b   :  { %v1152_v37 = vadd.f32 %v1151_v22, %v8041_v21  ;;  %1219 = vmatmul.bf16.vlgmr.msrb.gmra.mxu1 %v6281_v28  ;;  %1302 = vmatpush.bf16.msrb.mxu2 %v8054_v7 }
 0x16c   :  { %1328 = vmatpush.bf16.msrb.mxu1 %v8055_v38  ;;  %1344 = vmatpush.bf16.msra.mxu3 %v5992_v35  ;;  %v4836_v35 = vld [vmem:[%s7707_s0 + $0xe4] sm:$0xf] }
 0x16d   :  { %4944 = vtanh.f32 %v1152_v37  ;;  %1322 = vmatpush.bf16.msra.mxu0 %v5982_v23  ;;  %v8061_v23 = vld [vmem:[#allocation66_spill] sm:$0xff] }
 0x16e   :  { %v1177_v61 = vpop.f32.mrf.mxu3  ;;  %v1164_v22 = vpop.f32.mrf.mxu2  ;;  %1297 = vmatmul.bf16.vlgmr.msrb.gmra.mxu3 %v6252_v60 }
 0x16f   :  { %v1178_v37 = vadd.f32 %v1177_v61, %v8041_v21  ;;  %1303 = vmatpush.bf16.msrb.mxu2 %v8056_v12  ;;  %v1165_v24 = vadd.f32 %v1164_v22, %v8041_v21  ;;  %v4266_v61 = vld [vmem:[%s7707_s0 + $0x134] sm:$0xf0] }
 0x170   :  { %1329 = vmatpush.bf16.msrb.mxu1 %v8057_v11  ;;  %1345 = vmatpush.bf16.msra.mxu3 %v6026_v5 }
 0x171   :  { %4946 = vtanh.f32 %v1178_v37  ;;  %v8060_v37 = vld [vmem:[#allocation71_spill] sm:$0xff] }
 0x172   :  { %v1153_v27 = vpop.f32.mrf.mxu1  ;;  %4948 = vtanh.f32 %v1165_v24 }
 0x173   :  { %v4945_v30 = vpop.eup %4944  ;;  %1304 = vmatpush.bf16.msrb.mxu2 %v8058_v19  ;;  %v8059_v27 = vld [vmem:[#allocation63_spill] sm:$0xff] }
 0x174   :  { %v1192_v57 = vpack.c.bf16 %v4945_v30, %v4945_v30  ;;  %1330 = vmatpush.bf16.msrb.mxu1 %v8059_v27  ;;  %1346 = vmatpush.bf16.msra.mxu3 %v6054_v56  ;;  %v4843_v30 = vld [vmem:[%s7707_s0 + $0x11c] sm:$0xf] }
 0x175   :  { %v4269_v56 = vor.u32 %v4843_v30, %v4266_v61  ;;  %v4282_v30 = vld [vmem:[%s7707_s0 + $0x144] sm:$0xf0]  ;;  %v4272_v61 = vld [vmem:[%s7707_s0 + $0x120] sm:$0xf] }
 0x176   :  { %1258 = vmatmul.bf16.vlgmr.msrb.gmra.mxu0 %v1192_v57  ;;  %v1179_v60 = vpop.f32.mrf.mxu3  ;;  %v1166_v24 = vpop.f32.mrf.mxu2 }
 0x177   :  { %1374 = vmatpush.bf16.msrb.mxu0 %v6014_v32  ;;  %v4947_v22 = vpop.eup %4946  ;;  %1305 = vmatpush.bf16.msrb.mxu2 %v8060_v37  ;;  %v4238_v24 = vld [vmem:[%s7707_s0 + $0xfc] sm:$0xf0]  ;;  %v8064_v37 = vld [vmem:[#allocation77_spill] sm:$0xff] }
 0x178   :  { %v4949_v32 = vpop.eup %4948  ;;  %v6305_v5 = vpack.c.bf16 %v4947_v22, %v4947_v22  ;;  %1331 = vmatpush.bf16.msrb.mxu1 %v8061_v23  ;;  %1347 = vmatpush.bf16.msra.mxu3 %v6072_v25  ;;  %v4845_v22 = vld [vmem:[%s7707_s0 + $0x12c] sm:$0xf]  ;;  %v4847_v25 = vld [vmem:[%s7707_s0 + $0x138] sm:$0xf0]  ;;  %v4241_v34 = vor.u32 %v4836_v35, %v4238_v24  ;;  %v4840_v35 = vld [vmem:[%s7707_s0 + $0x100] sm:$0xf0]  ;;  %v4257_v24 = vor.u32 %v4838_v40, %v4254_v52 }
 0x179   :  { %v6309_v60 = vpack.c.bf16 %v4949_v32, %v4949_v32  ;;  %v8062_v32 = vld [vmem:[#allocation73_spill] sm:$0xff]  ;;  %v4285_v42 = vor.u32 %v4845_v22, %v4282_v30  ;;  %v4245_v22 = vor.u32 %v4840_v35, %v4244_v36  ;;  %v4844_v36 = vld [vmem:[%s7707_s0 + $0x124] sm:$0xf]  ;;  %v4274_v52 = vld [vmem:[%s7707_s0 + $0x13c] sm:$0xf0] }
 0x17a   :  { %4215 = vmatmul.msk.bf16.vlgmr.msra.gmra.mxu2 %vm810_vm1, %v6305_v5  ;;  %v8066_v30 = vld [vmem:[#allocation81_spill] sm:$0xff]  ;;  %v8068_v40 = vld [vmem:[#allocation80_spill] sm:$0xff]  ;;  %v4277_v35 = vor.u32 %v4844_v36, %v4274_v52  ;;  %v8071_v52 = vld [vmem:[#allocation94_spill] sm:$0xff] }
 0x17b   :  { %1271 = vmatmul.bf16.vlgmr.msra.gmra.mxu1 %v6309_v60  ;;  %1306 = vmatpush.bf16.msrb.mxu2 %v8062_v32  ;;  %v4273_v32 = vor.u32 %v4847_v25, %v4272_v61  ;;  %v4264_v25 = vld [vmem:[%s7707_s0 + $0x118] sm:$0xf]  ;;  %v8067_v61 = vld [vmem:[#allocation76_spill] sm:$0xff] }
 0x17c   :  { %1332 = vmatpush.bf16.msrb.mxu1 %v8063_v14  ;;  %1348 = vmatpush.bf16.msra.mxu3 %v6096_v26 }
 0x17f   :  { %1307 = vmatpush.bf16.msrb.mxu2 %v8064_v37  ;;  %1349 = vmatmul.bf16.vlgmr.msra.gmra.mxu3 %v1192_v57  ;;  %v4846_v57 = vld [vmem:[%s7707_s0 + $0x130] sm:$0xf0] }
 0x180   :  { %1491 = vmatpush.bf16.msrb.mxu3 %v4269_v56  ;;  %v8065_v56 = vld [vmem:[#allocation72_spill] sm:$0xff]  ;;  %v4265_v26 = vor.u32 %v4846_v57, %v4264_v25  ;;  %v4837_v25 = vld [vmem:[%s7707_s0 + $0xec] sm:$0xf]  ;;  %v4246_v57 = vld [vmem:[%s7707_s0 + $0x104] sm:$0xf0] }
 0x181   :  { %1333 = vmatpush.bf16.msrb.mxu1 %v8065_v56 }
 0x183   :  { %1308 = vmatpush.bf16.msrb.mxu2 %v8066_v30 }
 0x184   :  { %1492 = vmatpush.bf16.msrb.mxu3 %v4241_v34  ;;  %v4839_v34 = vld [vmem:[%s7707_s0 + $0xf8] sm:$0xf0] }
 0x185   :  { %1334 = vmatpush.bf16.msrb.mxu1 %v8067_v61 }
 0x186   :  { %1323 = vmatmul.bf16.vlgmr.msra.gmra.mxu0 %v1190_v50  ;;  %v4236_v50 = vld [vmem:[%s7707_s0 + $0xe0] sm:$0xf] }
 0x187   :  { %1504 = vmatpush.bf16.msra.mxu0 %v4273_v32  ;;  %1309 = vmatpush.bf16.msrb.mxu2 %v5980_v15  ;;  %v4237_v32 = vor.u32 %v4839_v34, %v4236_v50  ;;  %v4842_v50 = vld [vmem:[%s7707_s0 + $0x110] sm:$0xf0] }
 0x188   :  { %1543 = vmatpush.bf16.msra.mxu3 %v4285_v42  ;;  %v8069_v42 = vld [vmem:[#allocation87_spill] sm:$0xff]  ;;  %v8070_v34 = vld [vmem:[#allocation92_spill] sm:$0xff] }
 0x189   :  { %1335 = vmatpush.bf16.msrb.mxu1 %v8068_v40 }
 0x18a   :  { %1310 = vmatmul.bf16.vlgmr.msrb.gmra.mxu2 %v6281_v28  ;;  %v4249_v28 = vor.u32 %v4837_v25, %v4246_v57  ;;  %v4848_v25 = vld [vmem:[%s7707_s0 + $0x140] sm:$0xf0] }
 0x18b   :  { %1505 = vmatpush.bf16.msra.mxu0 %v4245_v22  ;;  %1354 = vmatpush.bf16.msra.mxu2 %v8069_v42 }
 0x18c   :  { %1544 = vmatpush.bf16.msra.mxu3 %v4257_v24  ;;  %1336 = vmatmul.bf16.vlgmr.msrb.gmra.mxu1 %v6269_v51  ;;  %v4288_v24 = vld [vmem:[%s7707_s0 + $0x130] sm:$0xf]  ;;  %v4260_v51 = vld [vmem:[%s7707_s0 + $0xf8] sm:$0xf] }
 0x18d   :  { %1478 = vmatpush.bf16.msra.mxu1 %v4265_v26  ;;  %v4849_v26 = vld [vmem:[%s7707_s0 + $0x148] sm:$0xf0]  ;;  %v4261_v36 = vor.u32 %v4842_v50, %v4260_v51  ;;  %v8077_v50 = vld [vmem:[#allocation28_spill] sm:$0xff] }
 0x18e   :  { %v4289_v22 = vor.u32 %v4849_v26, %v4288_v24  ;;  %v4252_v24 = vld [vmem:[%s7707_s0 + $0xf0] sm:$0xf]  ;;  %v4841_v26 = vld [vmem:[%s7707_s0 + $0x108] sm:$0xf0] }
 0x18f   :  { %1355 = vmatpush.bf16.msra.mxu2 %v6028_v17  ;;  %4291 = vmatmul.msk.bf16.vlgmr.msrb.gmra.mxu3 %vm211_vm0, %v6183_v8  ;;  %v8076_v51 = vld [vmem:[#allocation27_spill] sm:$0xff] }
 0x190   :  { %1606 = vmatpush.bf16.msrb.mxu3 %v5278_v20 }
 0x191   :  { %1479 = vmatpush.bf16.msra.mxu1 %v4237_v32  ;;  %v8072_v32 = vld [vmem:[#allocation96_spill] sm:$0xff] }
 0x193   :  { %1356 = vmatpush.bf16.msra.mxu2 %v8070_v34 }
 0x194   :  { %1607 = vmatpush.bf16.msrb.mxu3 %v5320_v33 }
 0x195   :  { %1517 = vmatpush.bf16.msrb.mxu1 %v4277_v35  ;;  %v8073_v35 = vld [vmem:[#allocation3_spill] sm:$0xff] }
 0x196   :  { %4216 = vmatmul.msk.bf16.vlgmr.msrb.gmra.mxu0 %vm810_vm1, %v6305_v5  ;;  %v4280_v5 = vld [vmem:[%s7707_s0 + $0x128] sm:$0xf] }
 0x197   :  { %1556 = vmatpush.bf16.msrb.mxu0 %v4289_v22  ;;  %1357 = vmatpush.bf16.msra.mxu2 %v8071_v52  ;;  %v4281_v57 = vor.u32 %v4848_v25, %v4280_v5  ;;  %v8075_v22 = vld [vmem:[#allocation23_spill] sm:$0xff]  ;;  %v8080_v25 = vld [vmem:[#allocation30_spill] sm:$0xff] }
 0x198   :  { %1608 = vmatpush.bf16.msrb.mxu3 %v5356_v45  ;;  %v8079_v5 = vld [vmem:[#allocation35_spill] sm:$0xff] }
 0x199   :  { %1518 = vmatpush.bf16.msrb.mxu1 %v4249_v28  ;;  %v4253_v28 = vor.u32 %v4841_v26, %v4252_v24  ;;  %v8082_v24 = vld [vmem:[#allocation39_spill] sm:$0xff]  ;;  %v8083_v26 = vld [vmem:[#allocation42_spill] sm:$0xff] }
 0x19b   :  { %1557 = vmatpush.bf16.msrb.mxu0 %v4261_v36  ;;  %1358 = vmatpush.bf16.msra.mxu2 %v8072_v32  ;;  %v8078_v36 = vld [vmem:[#allocation13_spill] sm:$0xff] }
 0x19c   :  { %4290 = vmatmul.msk.bf16.vlgmr.msra.gmra.mxu1 %vm211_vm0, %v6183_v8  ;;  %1609 = vmatpush.bf16.msrb.mxu3 %v5398_v0 }
 0x19d   :  { %1580 = vmatpush.bf16.msra.mxu1 %v8073_v35 }
 0x19f   :  { %1359 = vmatpush.bf16.msra.mxu2 %v6129_v44  ;;  %4295 = vmatmul.msk.bf16.vlgmr.msra.gmra.mxu3 %vm211_vm0, %v6183_v8 }
 0x1a0   :  { %1610 = vmatpush.bf16.msrb.mxu3 %v5493_v47 }
 0x1a1   :  { %1581 = vmatpush.bf16.msra.mxu1 %v5202_v58 }
 0x1a3   :  { %1360 = vmatpush.bf16.msra.mxu2 %v6154_v54 }
 0x1a4   :  { %1611 = vmatpush.bf16.msrb.mxu3 %v5529_v10  ;;  %v8097_v10 = vld [vmem:[#allocation49_spill] sm:$0xff] }
 0x1a5   :  { %1582 = vmatpush.bf16.msra.mxu1 %v5228_v3 }
 0x1a6   :  { %4292 = vmatmul.msk.bf16.vlgmr.msra.gmra.mxu0 %vm211_vm0, %v6183_v8 }
 0x1a7   :  { %1619 = vmatpush.bf16.msra.mxu0 %v5222_v1  ;;  %1361 = vmatpush.bf16.msra.mxu2 %v6170_v53 }
 0x1a8   :  { %1612 = vmatpush.bf16.msrb.mxu3 %v5566_v39  ;;  %v8091_v39 = vld [vmem:[#allocation41_spill] sm:$0xff] }
 0x1a9   :  { %1583 = vmatpush.bf16.msra.mxu1 %v5267_v16 }
 0x1aa   :  { %1362 = vmatmul.bf16.vlgmr.msra.gmra.mxu2 %v6309_v60  ;;  %v8074_v60 = vld [vmem:[#allocation9_spill] sm:$0xff] }
 0x1ab   :  { %1530 = vmatpush.bf16.msrb.mxu2 %v4281_v57  ;;  %1620 = vmatpush.bf16.msra.mxu0 %v5237_v6  ;;  %v8081_v57 = vld [vmem:[#allocation17_spill] sm:$0xff]  ;;  %v8106_v6 = vld [vmem:[#allocation47_spill] sm:$0xff] }
 0x1ac   :  { %4293 = vmatmul.msk.bf16.vlgmr.msrb.gmra.mxu1 %vm211_vm0, %v6183_v8  ;;  %1613 = vmatpush.bf16.msrb.mxu3 %v8022_v13  ;;  %v8088_v13 = vld [vmem:[#allocation25_spill] sm:$0xff] }
 0x1ad   :  { %1584 = vmatpush.bf16.msra.mxu1 %v5308_v29 }
 0x1af   :  { %1531 = vmatpush.bf16.msrb.mxu2 %v4253_v28  ;;  %1621 = vmatpush.bf16.msra.mxu0 %v5273_v18  ;;  %v8084_v28 = vld [vmem:[#allocation32_spill] sm:$0xff]  ;;  %v8092_v18 = vld [vmem:[#allocation29_spill] sm:$0xff] }
 0x1b0   :  { %1665 = vmatpush.bf16.msra.mxu3 %v8024_v4  ;;  %v8087_v4 = vld [vmem:[#allocation37_spill] sm:$0xff] }
 0x1b1   :  { %1585 = vmatpush.bf16.msra.mxu1 %v5344_v41 }
 0x1b3   :  { %1593 = vmatpush.bf16.msra.mxu2 %v5171_v48  ;;  %1622 = vmatpush.bf16.msra.mxu0 %v5314_v31  ;;  %v8089_v31 = vld [vmem:[#allocation26_spill] sm:$0xff] }
 0x1b5   :  { %1586 = vmatpush.bf16.msra.mxu1 %v5386_v59 }
 0x1b6   :  { %4296 = vmatmul.msk.bf16.vlgmr.msrb.gmra.mxu0 %vm211_vm0, %v6183_v8 }
 0x1b7   :  { %1594 = vmatpush.bf16.msra.mxu2 %v5191_v55  ;;  %1623 = vmatpush.bf16.msra.mxu0 %v5350_v43  ;;  %v8086_v43 = vld [vmem:[#allocation46_spill] sm:$0xff] }
 0x1b9   :  { %1587 = vmatpush.bf16.msra.mxu1 %v8076_v51 }
 0x1ba   :  { %4294 = vmatmul.msk.bf16.vlgmr.msrb.gmra.mxu2 %vm211_vm0, %v6183_v8 }
 0x1bb   :  { %1595 = vmatpush.bf16.msra.mxu2 %v5217_v63  ;;  %1624 = vmatpush.bf16.msra.mxu0 %v8075_v22  ;;  %v8085_v22 = vld [vmem:[#allocation21_spill] sm:$0xff] }
 0x1bd   :  { %1632 = vmatpush.bf16.msrb.mxu1 %v8077_v50 }
 0x1bf   :  { %1596 = vmatpush.bf16.msra.mxu2 %v8074_v60  ;;  %1625 = vmatpush.bf16.msra.mxu0 %v8079_v5  ;;  %v8090_v5 = vld [vmem:[#allocation50_spill] sm:$0xff] }
 0x1c1   :  { %1633 = vmatpush.bf16.msrb.mxu1 %v8080_v25 }
 0x1c3   :  { %1597 = vmatpush.bf16.msra.mxu2 %v8078_v36  ;;  %1626 = vmatpush.bf16.msra.mxu0 %v8082_v24  ;;  %v8093_v24 = vld [vmem:[#allocation53_spill] sm:$0xff] }
 0x1c5   :  { %1634 = vmatpush.bf16.msrb.mxu1 %v8084_v28 }
 0x1c7   :  { %1598 = vmatpush.bf16.msra.mxu2 %v8081_v57  ;;  %1671 = vmatpush.bf16.msrb.mxu0 %v8083_v26  ;;  %v8094_v57 = vld [vmem:[#allocation45_spill] sm:$0xff] }
 0x1c9   :  { %1635 = vmatpush.bf16.msrb.mxu1 %v8087_v4  ;;  %v8100_v4 = vld [vmem:[#allocation52_spill] sm:$0xff] }
 0x1cb   :  { %1599 = vmatpush.bf16.msra.mxu2 %v8085_v22  ;;  %1672 = vmatpush.bf16.msrb.mxu0 %v8086_v43  ;;  %v1207_v26 = vpop.f32.mrf.mxu0  ;;  %v8095_v22 = vld [vmem:[#allocation31_spill] sm:$0xff]  ;;  %v8096_v43 = vld [vmem:[#allocation54_spill] sm:$0xff] }
 0x1cd   :  { %1636 = vmatpush.bf16.msrb.mxu1 %v8091_v39  ;;  %v8101_v39 = vld [vmem:[#allocation34_spill] sm:$0xff] }
 0x1cf   :  { %1600 = vmatpush.bf16.msra.mxu2 %v8088_v13  ;;  %1673 = vmatpush.bf16.msrb.mxu0 %v8090_v5  ;;  %v8098_v13 = vld [vmem:[#allocation33_spill] sm:$0xff] }
 0x1d1   :  { %1637 = vmatpush.bf16.msrb.mxu1 %v8094_v57  ;;  %v8104_v57 = vld [vmem:[#allocation58_spill] sm:$0xff] }
 0x1d3   :  { %1645 = vmatpush.bf16.msrb.mxu2 %v8089_v31  ;;  %1674 = vmatpush.bf16.msrb.mxu0 %v8093_v24  ;;  %v8099_v31 = vld [vmem:[#allocation55_spill] sm:$0xff]  ;;  %v1209_v5 = vpop.f32.mrf.mxu0  ;;  %v8103_v24 = vld [vmem:[#allocation38_spill] sm:$0xff] }
 0x1d5   :  { %1638 = vmatpush.bf16.msrb.mxu1 %v8097_v10 }
 0x1d7   :  { %1646 = vmatpush.bf16.msrb.mxu2 %v8092_v18  ;;  %1675 = vmatpush.bf16.msrb.mxu0 %v8096_v43  ;;  %v8102_v18 = vld [vmem:[#allocation56_spill] sm:$0xff] }
 0x1d9   :  { %1639 = vmatpush.bf16.msrb.mxu1 %v8100_v4 }
 0x1db   :  { %1647 = vmatpush.bf16.msrb.mxu2 %v8095_v22  ;;  %1676 = vmatpush.bf16.msrb.mxu0 %v8099_v31  ;;  %v8105_v22 = vld [vmem:[#allocation43_spill] sm:$0xff] }
 0x1df   :  { %1648 = vmatpush.bf16.msrb.mxu2 %v8098_v13  ;;  %1677 = vmatpush.bf16.msrb.mxu0 %v8102_v18 }
 0x1e1   :  { %v1246_v43 = vpop.f32.mrf.mxu3 }
 0x1e3   :  { %1649 = vmatpush.bf16.msrb.mxu2 %v8101_v39  ;;  %1678 = vmatpush.bf16.msrb.mxu0 %v8104_v57 }
 0x1e7   :  { %1650 = vmatpush.bf16.msrb.mxu2 %v8103_v24 }
 0x1e8   :  { %v1220_v10 = vpop.f32.mrf.mxu1 }
 0x1e9   :  { %v1248_v13 = vpop.f32.mrf.mxu3  ;;  %v1221_v36 = vadd.f32 %v1220_v10, %v1207_v26 }
 0x1eb   :  { %1651 = vmatpush.bf16.msrb.mxu2 %v8105_v22 }
 0x1ed   :  { %v1233_v31 = vpop.f32.mrf.mxu2 }
 0x1ee   :  { %v1234_v5 = vadd.f32 %v1233_v31, %v1221_v36 }
 0x1ef   :  { %1652 = vmatpush.bf16.msrb.mxu2 %v8106_v6 }
 0x1f0   :  { %v1247_v4 = vadd.f32 %v1246_v43, %v1234_v5  ;;  %v1222_v28 = vpop.f32.mrf.mxu1 }
 0x1f1   :  { %v1298_v39 = vpop.f32.mrf.mxu3 }
 0x1f3   :  { %v1259_v47 = vpop.f32.mrf.mxu0 }
 0x1f5   :  { %v1235_v1 = vpop.f32.mrf.mxu2 }
 0x1f8   :  { %v1272_v60 = vpop.f32.mrf.mxu1 }
 0x1f9   :  { %v1300_v24 = vpop.f32.mrf.mxu3 }
 0x1fb   :  { %v1261_v18 = vpop.f32.mrf.mxu0 }
 0x1fd   :  { %v1285_v0 = vpop.f32.mrf.mxu2 }
 0x200   :  { %v1274_v25 = vpop.f32.mrf.mxu1 }
 0x202   :  { %v1350_v22 = vpop.f32.mrf.mxu3 }
 0x203   :  { %v1324_v57 = vpop.f32.mrf.mxu0 }
 0x205   :  { %v1287_v63 = vpop.f32.mrf.mxu2 }
 0x209   :  { %v1337_v6 = vpop.f32.mrf.mxu1 }
 0x20a   :  { %v1352_v50 = vpop.f32.mrf.mxu3 }
 0x20b   :  { %v1326_v45 = vpop.f32.mrf.mxu0 }
 0x20d   :  { %v1311_v13 = vpop.f32.mrf.mxu2 }
 0x20e   :  { %v1312_v63 = vadd.f32 %v1311_v13, %v1298_v39 }
 0x211   :  { %v1339_v26 = vpop.f32.mrf.mxu1 }
 0x212   :  { %v1494_v31 = vpop.f32.mrf.mxu3 }
 0x213   :  { %v1376_v10 = vpop.f32.mrf.mxu0  ;;  %v1495_v43 = vadd.f32 %v1494_v31, %v8041_v21 }
 0x215   :  { %4950 = vtanh.f32 %v1495_v43  ;;  %v1313_v36 = vpop.f32.mrf.mxu2  ;;  %v1325_v43 = vadd.f32 %v1324_v57, %v1312_v63 }
 0x217   :  { %v1338_v39 = vadd.f32 %v1337_v6, %v1325_v43 }
 0x219   :  { %v1481_v18 = vpop.f32.mrf.mxu1 }
 0x21a   :  { %v1482_v24 = vadd.f32 %v1481_v18, %v8041_v21  ;;  %v1496_v28 = vpop.f32.mrf.mxu3 }
 0x21b   :  { %v1378_v1 = vpop.f32.mrf.mxu0  ;;  %v4951_v5 = vpop.eup %4950 }
 0x21c   :  { %4952 = vtanh.f32 %v1482_v24  ;;  %v6487_v25 = vpack.c.bf16 %v4951_v5, %v4951_v5  ;;  %v1260_v5 = vadd.f32 %v1259_v47, %v1247_v4 }
 0x21e   :  { %1601 = vmatmul.bf16.vlgmr.msra.gmra.mxu2 %v6487_v25 }
 0x21f   :  { %1710 = vmatpush.bf16.msra.mxu2 %v8055_v38 }
 0x221   :  { %v1483_v26 = vpop.f32.mrf.mxu1 }
 0x222   :  { %v4953_v31 = vpop.eup %4952  ;;  %v1546_v1 = vpop.f32.mrf.mxu3 }
 0x223   :  { %v1507_v45 = vpop.f32.mrf.mxu0  ;;  %v6492_v36 = vpack.c.bf16 %v4953_v31, %v4953_v31  ;;  %v1547_v18 = vadd.f32 %v1546_v1, %v8041_v21  ;;  %1711 = vmatpush.bf16.msra.mxu2 %v8057_v11  ;;  %v1273_v31 = vadd.f32 %v1272_v60, %v1260_v5  ;;  %v4346_v5 = vld [vmem:[%s7707_s0 + $0x188] sm:$0xf] }
 0x224   :  { %v1508_v50 = vadd.f32 %v1507_v45, %v8041_v21  ;;  %v1351_v45 = vadd.f32 %v1350_v22, %v1338_v39 }
 0x225   :  { %1588 = vmatmul.bf16.vlgmr.msra.gmra.mxu1 %v6492_v36  ;;  %v1286_v47 = vadd.f32 %v1285_v0, %v1273_v31 }
 0x226   :  { %4954 = vtanh.f32 %v1508_v50  ;;  %1697 = vmatpush.bf16.msra.mxu1 %v8042_v9 }
 0x227   :  { %4956 = vtanh.f32 %v1547_v18  ;;  %1712 = vmatpush.bf16.msra.mxu2 %v8059_v27 }
 0x229   :  { %v1520_v57 = vpop.f32.mrf.mxu1 }
 0x22a   :  { %v1521_v63 = vadd.f32 %v1520_v57, %v8041_v21  ;;  %1698 = vmatpush.bf16.msra.mxu1 %v8043_v62  ;;  %v1548_v26 = vpop.f32.mrf.mxu3  ;;  %v8108_v57 = vld [vmem:[#allocation74_spill] sm:$0xff] }
 0x22b   :  { %v1509_v13 = vpop.f32.mrf.mxu0  ;;  %1713 = vmatpush.bf16.msra.mxu2 %v8061_v23  ;;  %v8109_v26 = vld [vmem:[#allocation71_spill] sm:$0xff] }
 0x22c   :  { %v4955_v24 = vpop.eup %4954  ;;  %4958 = vtanh.f32 %v1521_v63  ;;  %v4860_v63 = vld [vmem:[%s7707_s0 + $0x1a0] sm:$0xf0] }
 0x22d   :  { %v6499_v28 = vpack.c.bf16 %v4955_v24, %v4955_v24  ;;  %v1363_v50 = vpop.f32.mrf.mxu2  ;;  %v4957_v6 = vpop.eup %4956  ;;  %v8107_v24 = vld [vmem:[#allocation75_spill] sm:$0xff]  ;;  %v4347_v31 = vor.u32 %v4860_v63, %v4346_v5 }
 0x22e   :  { %v1364_v43 = vadd.f32 %v1363_v50, %v1351_v45  ;;  %v6506_v1 = vpack.c.bf16 %v4957_v6, %v4957_v6  ;;  %1699 = vmatpush.bf16.msra.mxu1 %v8044_v46  ;;  %v8113_v63 = vld [vmem:[#allocation83_spill] sm:$0xff] }
 0x22f   :  { %1614 = vmatmul.bf16.vlgmr.msrb.gmra.mxu3 %v6499_v28  ;;  %1714 = vmatpush.bf16.msra.mxu2 %v8063_v14 }
 0x230   :  { %1684 = vmatpush.bf16.msrb.mxu3 %v8054_v7  ;;  %v1377_v4 = vadd.f32 %v1376_v10, %v1364_v43  ;;  %1653 = vmatmul.bf16.vlgmr.msrb.gmra.mxu2 %v6506_v1  ;;  %v8110_v43 = vld [vmem:[#allocation79_spill] sm:$0xff] }
 0x231   :  { %v1522_v60 = vpop.f32.mrf.mxu1 }
 0x232   :  { %v1380_v18 = vpack.c.bf16 %v1377_v4, %v1286_v47  ;;  %v4959_v13 = vpop.eup %4958  ;;  %1700 = vmatpush.bf16.msra.mxu1 %v8047_v2  ;;  %v8111_v47 = vld [vmem:[#allocation78_spill] sm:$0xff]  ;;  %v4318_v4 = vld [vmem:[%s7707_s0 + $0x150] sm:$0xf]  ;;  %v8112_v60 = vld [vmem:[#allocation73_spill] sm:$0xff] }
 0x233   :  { %v1559_v22 = vpop.f32.mrf.mxu0  ;;  %v1573_v0 = vpack.c.bf16 %v4959_v13, %v4959_v13  ;;  %1715 = vmatpush.bf16.msra.mxu2 %v8065_v56  ;;  %v4858_v13 = vld [vmem:[%s7707_s0 + $0x194] sm:$0xf] }
 0x234   :  { %v1560_v39 = vadd.f32 %v1559_v22, %v8041_v21  ;;  %1685 = vmatpush.bf16.msrb.mxu3 %v8056_v12  ;;  %4217 = vst.msk [vmem:[%s7711_s4 + $0x8] sm:$0xff] %vm6259_vm4, %v1380_v18  ;;  %v4853_v22 = vld [vmem:[%s7707_s0 + $0x168] sm:$0xf0] }
 0x235   :  { %v1365_v10 = vpop.f32.mrf.mxu2  ;;  %1627 = vmatmul.bf16.vlgmr.msra.gmra.mxu0 %v1573_v0  ;;  %v4319_v5 = vor.u32 %v4853_v22, %v4318_v4  ;;  %v8116_v4 = vld [vmem:[#allocation85_spill] sm:$0xff] }
 0x236   :  { %4960 = vtanh.f32 %v1560_v39  ;;  %1723 = vmatpush.bf16.msra.mxu0 %v8107_v24  ;;  %1701 = vmatpush.bf16.msra.mxu1 %v8108_v57  ;;  %v4356_v10 = vld [vmem:[%s7707_s0 + $0x1ac] sm:$0xf0] }
 0x237   :  { %1716 = vmatpush.bf16.msra.mxu2 %v8067_v61 }
 0x238   :  { %1686 = vmatpush.bf16.msrb.mxu3 %v8058_v19 }
 0x23a   :  { %1724 = vmatpush.bf16.msra.mxu0 %v8110_v43  ;;  %1702 = vmatpush.bf16.msra.mxu1 %v8111_v47 }
 0x23b   :  { %v1561_v45 = vpop.f32.mrf.mxu0  ;;  %1717 = vmatpush.bf16.msra.mxu2 %v8068_v40 }
 0x23c   :  { %v4961_v50 = vpop.eup %4960  ;;  %1687 = vmatpush.bf16.msrb.mxu3 %v8109_v26  ;;  %v8114_v45 = vld [vmem:[#allocation82_spill] sm:$0xff] }
 0x23d   :  { %v6531_v6 = vpack.c.bf16 %v4961_v50, %v4961_v50  ;;  %v1533_v18 = vpop.f32.mrf.mxu2  ;;  %v4359_v50 = vor.u32 %v4858_v13, %v4356_v10  ;;  %v8117_v10 = vld [vmem:[#allocation89_spill] sm:$0xff] }
 0x23e   :  { %v1534_v39 = vadd.f32 %v1533_v18, %v8041_v21  ;;  %1725 = vmatpush.bf16.msra.mxu0 %v8113_v63  ;;  %1703 = vmatpush.bf16.msra.mxu1 %v8114_v45  ;;  %v4851_v18 = vld [vmem:[%s7707_s0 + $0x15c] sm:$0xf] }
 0x23f   :  { %4297 = vmatmul.msk.bf16.vlgmr.msra.gmra.mxu3 %vm810_vm1, %v6531_v6  ;;  %1860 = vmatpush.bf16.msrb.mxu2 %v4347_v31  ;;  %v8115_v31 = vld [vmem:[#allocation86_spill] sm:$0xff] }
 0x240   :  { %1688 = vmatpush.bf16.msrb.mxu3 %v8112_v60  ;;  %4962 = vtanh.f32 %v1534_v39  ;;  %1718 = vmatmul.bf16.vlgmr.msra.gmra.mxu2 %v1573_v0  ;;  %v4328_v60 = vld [vmem:[%s7707_s0 + $0x174] sm:$0xf0] }
 0x241   :  { %v4331_v39 = vor.u32 %v4851_v18, %v4328_v60  ;;  %v4857_v60 = vld [vmem:[%s7707_s0 + $0x18c] sm:$0xf] }
 0x242   :  { %1726 = vmatpush.bf16.msra.mxu0 %v8115_v31  ;;  %1704 = vmatpush.bf16.msra.mxu1 %v8116_v4 }
 0x243   :  { %1861 = vmatpush.bf16.msrb.mxu2 %v4319_v5  ;;  %v8118_v5 = vld [vmem:[#allocation88_spill] sm:$0xff] }
 0x244   :  { %1689 = vmatpush.bf16.msrb.mxu3 %v8064_v37  ;;  %v8119_v37 = vld [vmem:[#allocation91_spill] sm:$0xff] }
 0x245   :  { %v1535_v22 = vpop.f32.mrf.mxu2  ;;  %1679 = vmatmul.bf16.vlgmr.msrb.gmra.mxu0 %v6492_v36  ;;  %v4348_v36 = vld [vmem:[%s7707_s0 + $0x1a4] sm:$0xf0] }
 0x246   :  { %v4963_v0 = vpop.eup %4962  ;;  %1727 = vmatpush.bf16.msra.mxu0 %v8117_v10  ;;  %v4351_v18 = vor.u32 %v4857_v60, %v4348_v36  ;;  %v4320_v22 = vld [vmem:[%s7707_s0 + $0x16c] sm:$0xf0]  ;;  %v4861_v36 = vld [vmem:[%s7707_s0 + $0x1a8] sm:$0xf0] }
 0x247   :  { %1899 = vmatpush.bf16.msra.mxu2 %v4359_v50  ;;  %v1574_v13 = vpack.c.bf16 %v4963_v0, %v4963_v0  ;;  %v8120_v50 = vld [vmem:[#allocation93_spill] sm:$0xff]  ;;  %v4354_v60 = vld [vmem:[%s7707_s0 + $0x190] sm:$0xf] }
 0x248   :  { %1690 = vmatpush.bf16.msrb.mxu3 %v8066_v30  ;;  %v4364_v0 = vld [vmem:[%s7707_s0 + $0x1b4] sm:$0xf0]  ;;  %v4336_v30 = vld [vmem:[%s7707_s0 + $0x17c] sm:$0xf0] }
 0x249   :  { %1640 = vmatmul.bf16.vlgmr.msrb.gmra.mxu1 %v1574_v13 }
 0x24a   :  { %1756 = vmatpush.bf16.msrb.mxu1 %v8118_v5  ;;  %1728 = vmatpush.bf16.msra.mxu0 %v8119_v37 }
 0x24b   :  { %1900 = vmatpush.bf16.msra.mxu2 %v4331_v39  ;;  %v4859_v39 = vld [vmem:[%s7707_s0 + $0x19c] sm:$0xf] }
 0x24c   :  { %1691 = vmatpush.bf16.msrb.mxu3 %v5980_v15  ;;  %v4367_v15 = vor.u32 %v4859_v39, %v4364_v0  ;;  %v6647_v0 = vld [vmem:[%s7708_s1] sm:$0xf] }
 0x24e   :  { %1729 = vmatpush.bf16.msra.mxu0 %v8120_v50 }
 0x24f   :  { %1692 = vmatmul.bf16.vlgmr.msrb.gmra.mxu3 %v6487_v25  ;;  %v4850_v25 = vld [vmem:[%s7707_s0 + $0x154] sm:$0xf] }
 0x250   :  { %1736 = vmatpush.bf16.msra.mxu3 %v8069_v42  ;;  %4372 = vmatmul.msk.bf16.vlgmr.msrb.gmra.mxu2 %vm211_vm0, %v6183_v8  ;;  %v4323_v42 = vor.u32 %v4850_v25, %v4320_v22  ;;  %v4854_v25 = vld [vmem:[%s7707_s0 + $0x170] sm:$0xf0] }
 0x251   :  { %1962 = vmatpush.bf16.msrb.mxu2 %v8073_v35  ;;  %v4355_v35 = vor.u32 %v4861_v36, %v4354_v60  ;;  %v4342_v60 = vld [vmem:[%s7707_s0 + $0x168] sm:$0xf]  ;;  %v4856_v36 = vld [vmem:[%s7707_s0 + $0x180] sm:$0xf0] }
 0x254   :  { %1737 = vmatpush.bf16.msra.mxu3 %v6028_v17  ;;  %v8121_v17 = vld [vmem:[#allocation95_spill] sm:$0xff] }
 0x255   :  { %1730 = vmatpush.bf16.msra.mxu0 %v8121_v17  ;;  %1963 = vmatpush.bf16.msrb.mxu2 %v5202_v58 }
 0x258   :  { %1738 = vmatpush.bf16.msra.mxu3 %v8070_v34  ;;  %v4852_v34 = vld [vmem:[%s7707_s0 + $0x164] sm:$0xf]  ;;  %1731 = vmatmul.bf16.vlgmr.msra.gmra.mxu0 %v1574_v13 }
 0x259   :  { %1873 = vmatpush.bf16.msrb.mxu0 %v4351_v18  ;;  %v4326_v18 = vld [vmem:[%s7707_s0 + $0x158] sm:$0xf]  ;;  %1705 = vmatmul.bf16.vlgmr.msra.gmra.mxu1 %v6499_v28  ;;  %v4339_v22 = vor.u32 %v4852_v34, %v4336_v30  ;;  %v4862_v30 = vld [vmem:[%s7707_s0 + $0x1b0] sm:$0xf0]  ;;  %v4863_v34 = vld [vmem:[%s7707_s0 + $0x1b8] sm:$0xf0] }
 0x25a   :  { %1886 = vmatpush.bf16.msra.mxu1 %v4355_v35  ;;  %v4327_v39 = vor.u32 %v4854_v25, %v4326_v18  ;;  %1964 = vmatpush.bf16.msrb.mxu2 %v5228_v3  ;;  %v4334_v35 = vld [vmem:[%s7707_s0 + $0x160] sm:$0xf]  ;;  %v4855_v28 = vld [vmem:[%s7707_s0 + $0x178] sm:$0xf0]  ;;  %v4343_v25 = vor.u32 %v4856_v36, %v4342_v60  ;;  %v8134_v60 = vld [vmem:[#allocation40_spill] sm:$0xff] }
 0x25b   :  { %v4335_v18 = vor.u32 %v4855_v28, %v4334_v35  ;;  %v8131_v35 = vld [vmem:[#allocation13_spill] sm:$0xff]  ;;  %v8132_v28 = vld [vmem:[#allocation8_spill] sm:$0xff] }
 0x25c   :  { %1739 = vmatpush.bf16.msra.mxu3 %v8071_v52  ;;  %v8135_v36 = vld [vmem:[#allocation17_spill] sm:$0xff] }
 0x25d   :  { %1874 = vmatpush.bf16.msrb.mxu0 %v4323_v42  ;;  %v4370_v42 = vld [vmem:[%s7707_s0 + $0x1a0] sm:$0xf] }
 0x25e   :  { %1887 = vmatpush.bf16.msra.mxu1 %v4327_v39  ;;  %1965 = vmatpush.bf16.msrb.mxu2 %v5267_v16  ;;  %v4371_v13 = vor.u32 %v4863_v34, %v4370_v42  ;;  %v8124_v39 = vld [vmem:[#allocation5_spill] sm:$0xff]  ;;  %v8128_v42 = vld [vmem:[#allocation6_spill] sm:$0xff]  ;;  %v8129_v34 = vld [vmem:[#allocation32_spill] sm:$0xff] }
 0x260   :  { %1740 = vmatpush.bf16.msra.mxu3 %v8072_v32  ;;  %4375 = vmatmul.msk.bf16.vlgmr.msra.gmra.mxu2 %vm211_vm0, %v6183_v8 }
 0x261   :  { %1925 = vmatpush.bf16.msra.mxu0 %v4367_v15  ;;  %v4362_v15 = vld [vmem:[%s7707_s0 + $0x198] sm:$0xf] }
 0x262   :  { %1966 = vmatpush.bf16.msrb.mxu2 %v5308_v29  ;;  %v4363_v8 = vor.u32 %v4862_v30, %v4362_v15  ;;  %v8126_v15 = vld [vmem:[#allocation24_spill] sm:$0xff]  ;;  %v8127_v30 = vld [vmem:[#allocation9_spill] sm:$0xff] }
 0x264   :  { %1741 = vmatpush.bf16.msra.mxu3 %v6129_v44 }
 0x265   :  { %1926 = vmatpush.bf16.msra.mxu0 %v4339_v22  ;;  %v8122_v22 = vld [vmem:[#allocation28_spill] sm:$0xff] }
 0x266   :  { %1967 = vmatpush.bf16.msrb.mxu2 %v5344_v41 }
 0x268   :  { %1742 = vmatpush.bf16.msra.mxu3 %v6154_v54  ;;  %4373 = vmatmul.msk.bf16.vlgmr.msrb.gmra.mxu0 %vm211_vm0, %v6647_v0 }
 0x269   :  { %4298 = vmatmul.msk.bf16.vlgmr.msrb.gmra.mxu1 %vm810_vm1, %v6531_v6  ;;  %1988 = vmatpush.bf16.msrb.mxu0 %v5278_v20  ;;  %v8123_v6 = vld [vmem:[#allocation20_spill] sm:$0xff] }
 0x26a   :  { %1938 = vmatpush.bf16.msrb.mxu1 %v4371_v13  ;;  %1968 = vmatpush.bf16.msrb.mxu2 %v5386_v59  ;;  %v8133_v13 = vld [vmem:[#allocation37_spill] sm:$0xff] }
 0x26c   :  { %1743 = vmatpush.bf16.msra.mxu3 %v6170_v53  ;;  %v8166_v53 = vld [vmem:[#allocation58_spill] sm:$0xff] }
 0x26d   :  { %1989 = vmatpush.bf16.msrb.mxu0 %v5320_v33 }
 0x26e   :  { %1939 = vmatpush.bf16.msrb.mxu1 %v4343_v25  ;;  %1969 = vmatpush.bf16.msrb.mxu2 %v8076_v51  ;;  %v8137_v25 = vld [vmem:[#allocation41_spill] sm:$0xff] }
 0x26f   :  { %1744 = vmatmul.bf16.vlgmr.msra.gmra.mxu3 %v6506_v1  ;;  %v8125_v1 = vld [vmem:[#allocation30_spill] sm:$0xff] }
 0x270   :  { %1912 = vmatpush.bf16.msrb.mxu3 %v4363_v8  ;;  %v8130_v8 = vld [vmem:[#allocation36_spill] sm:$0xff] }
 0x271   :  { %1990 = vmatpush.bf16.msrb.mxu0 %v8123_v6 }
 0x272   :  { %2014 = vmatpush.bf16.msra.mxu2 %v8122_v22  ;;  %v8154_v22 = vld [vmem:[#allocation33_spill] sm:$0xff] }
 0x274   :  { %1913 = vmatpush.bf16.msrb.mxu3 %v4335_v18  ;;  %v8136_v18 = vld [vmem:[#allocation11_spill] sm:$0xff] }
 0x275   :  { %1991 = vmatpush.bf16.msrb.mxu0 %v8126_v15 }
 0x276   :  { %2015 = vmatpush.bf16.msra.mxu2 %v8125_v1  ;;  %v8143_v1 = vld [vmem:[#allocation51_spill] sm:$0xff] }
 0x278   :  { %1975 = vmatpush.bf16.msra.mxu3 %v5171_v48  ;;  %4377 = vmatmul.msk.bf16.vlgmr.msra.gmra.mxu0 %vm211_vm0, %v6647_v0  ;;  %v8151_v48 = vld [vmem:[#allocation35_spill] sm:$0xff] }
 0x279   :  { %4374 = vmatmul.msk.bf16.vlgmr.msra.gmra.mxu1 %vm211_vm0, %v6647_v0  ;;  %1992 = vmatpush.bf16.msrb.mxu0 %v8130_v8 }
 0x27a   :  { %2001 = vmatpush.bf16.msra.mxu1 %v8128_v42  ;;  %2016 = vmatpush.bf16.msra.mxu2 %v8129_v34  ;;  %v8140_v34 = vld [vmem:[#allocation15_spill] sm:$0xff] }
 0x27c   :  { %1976 = vmatpush.bf16.msra.mxu3 %v5191_v55  ;;  %v8141_v55 = vld [vmem:[#allocation45_spill] sm:$0xff] }
 0x27d   :  { %1993 = vmatpush.bf16.msrb.mxu0 %v8134_v60 }
 0x27e   :  { %2002 = vmatpush.bf16.msra.mxu1 %v8132_v28  ;;  %2017 = vmatpush.bf16.msra.mxu2 %v8133_v13  ;;  %v8145_v13 = vld [vmem:[#allocation19_spill] sm:$0xff] }
 0x27f   :  { %4376 = vmatmul.msk.bf16.vlgmr.msrb.gmra.mxu3 %vm211_vm0, %v6647_v0 }
 0x280   :  { %1977 = vmatpush.bf16.msra.mxu3 %v8124_v39  ;;  %v8139_v39 = vld [vmem:[#allocation21_spill] sm:$0xff] }
 0x282   :  { %2003 = vmatpush.bf16.msra.mxu1 %v8136_v18  ;;  %2018 = vmatpush.bf16.msra.mxu2 %v8137_v25  ;;  %v8146_v25 = vld [vmem:[#allocation26_spill] sm:$0xff]  ;;  %v8147_v18 = vld [vmem:[#allocation49_spill] sm:$0xff] }
 0x284   :  { %1978 = vmatpush.bf16.msra.mxu3 %v8127_v30  ;;  %v8138_v30 = vld [vmem:[#allocation44_spill] sm:$0xff] }
 0x285   :  { %1994 = vmatpush.bf16.msrb.mxu0 %v8138_v30 }
 0x286   :  { %2004 = vmatpush.bf16.msra.mxu1 %v8140_v34  ;;  %2019 = vmatpush.bf16.msra.mxu2 %v8141_v55  ;;  %v8149_v34 = vld [vmem:[#allocation29_spill] sm:$0xff]  ;;  %v8150_v55 = vld [vmem:[#allocation52_spill] sm:$0xff] }
 0x288   :  { %1979 = vmatpush.bf16.msra.mxu3 %v8131_v35  ;;  %v8142_v35 = vld [vmem:[#allocation48_spill] sm:$0xff] }
 0x289   :  { %1995 = vmatpush.bf16.msrb.mxu0 %v8142_v35  ;;  %4378 = vmatmul.msk.bf16.vlgmr.msrb.gmra.mxu1 %vm211_vm0, %v6647_v0  ;;  %v8153_v35 = vld [vmem:[#allocation39_spill] sm:$0xff] }
 0x28a   :  { %2005 = vmatpush.bf16.msra.mxu1 %v8145_v13  ;;  %2020 = vmatpush.bf16.msra.mxu2 %v8147_v18  ;;  %v8156_v13 = vld [vmem:[#allocation34_spill] sm:$0xff] }
 0x28b   :  { %v8158_v18 = vld [vmem:[#allocation38_spill] sm:$0xff] }
 0x28c   :  { %1980 = vmatpush.bf16.msra.mxu3 %v8135_v36  ;;  %v8144_v36 = vld [vmem:[#allocation25_spill] sm:$0xff] }
 0x28d   :  { %2047 = vmatpush.bf16.msra.mxu0 %v8143_v1  ;;  %v8152_v1 = vld [vmem:[#allocation31_spill] sm:$0xff] }
 0x28e   :  { %2021 = vmatpush.bf16.msra.mxu2 %v8150_v55  ;;  %v8161_v55 = vld [vmem:[#allocation53_spill] sm:$0xff] }
 0x290   :  { %1981 = vmatpush.bf16.msra.mxu3 %v8139_v39  ;;  %v8148_v39 = vld [vmem:[#allocation23_spill] sm:$0xff] }
 0x291   :  { %2006 = vmatpush.bf16.msra.mxu1 %v8148_v39  ;;  %v8159_v39 = vld [vmem:[#allocation50_spill] sm:$0xff] }
 0x294   :  { %1982 = vmatpush.bf16.msra.mxu3 %v8144_v36  ;;  %v8155_v36 = vld [vmem:[#allocation42_spill] sm:$0xff] }
 0x295   :  { %2007 = vmatpush.bf16.msra.mxu1 %v8151_v48 }
 0x298   :  { %2027 = vmatpush.bf16.msrb.mxu3 %v8146_v25  ;;  %v8157_v25 = vld [vmem:[#allocation46_spill] sm:$0xff] }
 0x299   :  { %2008 = vmatpush.bf16.msra.mxu1 %v8153_v35  ;;  %v8162_v35 = vld [vmem:[#allocation47_spill] sm:$0xff] }
 0x29c   :  { %2028 = vmatpush.bf16.msrb.mxu3 %v8149_v34  ;;  %v8160_v34 = vld [vmem:[#allocation43_spill] sm:$0xff] }
 0x29d   :  { %2053 = vmatpush.bf16.msrb.mxu1 %v8155_v36  ;;  %v8164_v36 = vld [vmem:[#allocation55_spill] sm:$0xff] }
 0x2a0   :  { %2029 = vmatpush.bf16.msrb.mxu3 %v8152_v1 }
 0x2a1   :  { %2054 = vmatpush.bf16.msrb.mxu1 %v8157_v25  ;;  %v1602_v1 = vpop.f32.mrf.mxu2  ;;  %v8165_v25 = vld [vmem:[#allocation56_spill] sm:$0xff] }
 0x2a2   :  { %v1589_v48 = vpop.f32.mrf.mxu1 }
 0x2a3   :  { %v1603_v28 = vadd.f32 %v1602_v1, %v1589_v48 }
 0x2a4   :  { %2030 = vmatpush.bf16.msrb.mxu3 %v8154_v22  ;;  %v8163_v22 = vld [vmem:[#allocation54_spill] sm:$0xff] }
 0x2a5   :  { %2055 = vmatpush.bf16.msrb.mxu1 %v8159_v39 }
 0x2a8   :  { %2031 = vmatpush.bf16.msrb.mxu3 %v8156_v13 }
 0x2a9   :  { %2056 = vmatpush.bf16.msrb.mxu1 %v8161_v55  ;;  %v1604_v51 = vpop.f32.mrf.mxu2 }
 0x2aa   :  { %v1591_v13 = vpop.f32.mrf.mxu1 }
 0x2ac   :  { %2032 = vmatpush.bf16.msrb.mxu3 %v8158_v18 }
 0x2ad   :  { %2057 = vmatpush.bf16.msrb.mxu1 %v8163_v22 }
 0x2b0   :  { %2033 = vmatpush.bf16.msrb.mxu3 %v8160_v34 }
 0x2b1   :  { %2058 = vmatpush.bf16.msrb.mxu1 %v8164_v36 }
 0x2b2   :  { %v1615_v18 = vpop.f32.mrf.mxu3  ;;  %v1628_v39 = vpop.f32.mrf.mxu0 }
 0x2b3   :  { %v1654_v34 = vpop.f32.mrf.mxu2 }
 0x2b4   :  { %2034 = vmatpush.bf16.msrb.mxu3 %v8162_v35 }
 0x2b5   :  { %2059 = vmatpush.bf16.msrb.mxu1 %v8165_v25 }
 0x2b9   :  { %2060 = vmatpush.bf16.msrb.mxu1 %v8166_v53 }
 0x2ba   :  { %v1617_v30 = vpop.f32.mrf.mxu3  ;;  %v1630_v55 = vpop.f32.mrf.mxu0 }
 0x2bb   :  { %v1656_v42 = vpop.f32.mrf.mxu2 }
 0x2c2   :  { %v1667_v59 = vpop.f32.mrf.mxu3  ;;  %v1680_v48 = vpop.f32.mrf.mxu0 }
 0x2c3   :  { %v1719_v1 = vpop.f32.mrf.mxu2 }
 0x2c6   :  { %v1641_v35 = vpop.f32.mrf.mxu1 }
 0x2ca   :  { %v1669_v54 = vpop.f32.mrf.mxu3  ;;  %v1682_v22 = vpop.f32.mrf.mxu0 }
 0x2cb   :  { %v1721_v60 = vpop.f32.mrf.mxu2  ;;  %v1616_v22 = vadd.f32 %v1615_v18, %v1603_v28 }
 0x2ce   :  { %v1643_v36 = vpop.f32.mrf.mxu1 }
 0x2d2   :  { %v1693_v13 = vpop.f32.mrf.mxu3 }
 0x2d3   :  { %v1863_v41 = vpop.f32.mrf.mxu2  ;;  %v1694_v54 = vadd.f32 %v1693_v13, %v1680_v48 }
 0x2d4   :  { %v1864_v25 = vadd.f32 %v1863_v41, %v8041_v21 }
 0x2d5   :  { %v1732_v51 = vpop.f32.mrf.mxu0 }
 0x2d6   :  { %v1706_v44 = vpop.f32.mrf.mxu1  ;;  %4964 = vtanh.f32 %v1864_v25 }
 0x2d7   :  { %v1707_v60 = vadd.f32 %v1706_v44, %v1694_v54 }
 0x2da   :  { %v1695_v53 = vpop.f32.mrf.mxu3 }
 0x2db   :  { %v1865_v30 = vpop.f32.mrf.mxu2  ;;  %v1629_v53 = vadd.f32 %v1628_v39, %v1616_v22 }
 0x2dc   :  { %v4965_v55 = vpop.eup %4964 }
 0x2dd   :  { %v1734_v8 = vpop.f32.mrf.mxu0  ;;  %v6721_v42 = vpack.c.bf16 %v4965_v55, %v4965_v55  ;;  %v1642_v30 = vadd.f32 %v1641_v35, %v1629_v53 }
 0x2de   :  { %v1708_v29 = vpop.f32.mrf.mxu1 }
 0x2df   :  { %1970 = vmatmul.bf16.vlgmr.msrb.gmra.mxu2 %v6721_v42  ;;  %v1720_v29 = vadd.f32 %v1719_v1, %v1707_v60  ;;  %v1655_v55 = vadd.f32 %v1654_v34, %v1642_v30 }
 0x2e0   :  { %2079 = vmatpush.bf16.msrb.mxu2 %v8042_v9 }
 0x2e1   :  { %v1733_v48 = vadd.f32 %v1732_v51, %v1720_v29  ;;  %v1668_v35 = vadd.f32 %v1667_v59, %v1655_v55 }
 0x2e3   :  { %v1902_v32 = vpop.f32.mrf.mxu2 }
 0x2e4   :  { %v1903_v25 = vadd.f32 %v1902_v32, %v8041_v21  ;;  %2080 = vmatpush.bf16.msrb.mxu2 %v8043_v62 }
 0x2e5   :  { %v1876_v36 = vpop.f32.mrf.mxu0 }
 0x2e6   :  { %v1877_v41 = vadd.f32 %v1876_v36, %v8041_v21  ;;  %v1758_v8 = vpop.f32.mrf.mxu1 }
 0x2e8   :  { %4966 = vtanh.f32 %v1877_v41  ;;  %2081 = vmatpush.bf16.msrb.mxu2 %v8044_v46 }
 0x2e9   :  { %4968 = vtanh.f32 %v1903_v25 }
 0x2eb   :  { %v1904_v44 = vpop.f32.mrf.mxu2 }
 0x2ec   :  { %2082 = vmatpush.bf16.msrb.mxu2 %v8047_v2 }
 0x2ed   :  { %v1878_v28 = vpop.f32.mrf.mxu0 }
 0x2ee   :  { %v4967_v18 = vpop.eup %4966  ;;  %v1760_v39 = vpop.f32.mrf.mxu1 }
 0x2ef   :  { %v4969_v54 = vpop.eup %4968  ;;  %v6730_v32 = vpack.c.bf16 %v4967_v18, %v4967_v18 }
 0x2f0   :  { %v6732_v22 = vpack.c.bf16 %v4969_v54, %v4969_v54  ;;  %2083 = vmatpush.bf16.msrb.mxu2 %v8108_v57 }
 0x2f1   :  { %1983 = vmatmul.bf16.vlgmr.msra.gmra.mxu3 %v6730_v32 }
 0x2f2   :  { %v1745_v13 = vpop.f32.mrf.mxu3  ;;  %2009 = vmatmul.bf16.vlgmr.msra.gmra.mxu1 %v6732_v22  ;;  %2092 = vmatpush.bf16.msra.mxu3 %v8055_v38 }
 0x2f3   :  { %v1746_v36 = vadd.f32 %v1745_v13, %v1733_v48  ;;  %2105 = vmatpush.bf16.msra.mxu1 %v8107_v24 }
 0x2f4   :  { %2084 = vmatpush.bf16.msrb.mxu2 %v8111_v47 }
 0x2f5   :  { %v1759_v1 = vadd.f32 %v1758_v8, %v1746_v36  ;;  %v1928_v51 = vpop.f32.mrf.mxu0 }
 0x2f6   :  { %v1929_v60 = vadd.f32 %v1928_v51, %v8041_v21  ;;  %2093 = vmatpush.bf16.msra.mxu3 %v8057_v11  ;;  %v1889_v41 = vpop.f32.mrf.mxu1 }
 0x2f7   :  { %v1762_v34 = vpack.c.bf16 %v1759_v1, %v1668_v35  ;;  %2106 = vmatpush.bf16.msra.mxu1 %v8110_v43  ;;  %v1890_v25 = vadd.f32 %v1889_v41, %v8041_v21  ;;  %v4874_v35 = vld [vmem:[%s7707_s0 + $0x210] sm:$0xf0]  ;;  %v4871_v1 = vld [vmem:[%s7707_s0 + $0x1fc] sm:$0xf] }
 0x2f8   :  { %4970 = vtanh.f32 %v1929_v60  ;;  %2085 = vmatpush.bf16.msrb.mxu2 %v8114_v45  ;;  %v4400_v60 = vld [vmem:[%s7707_s0 + $0x1c0] sm:$0xf]  ;;  %v4867_v41 = vld [vmem:[%s7707_s0 + $0x1d8] sm:$0xf0] }
 0x2f9   :  { %4299 = vst.msk [vmem:[%s7711_s4 + $0x10] sm:$0xff] %vm6259_vm4, %v1762_v34  ;;  %4972 = vtanh.f32 %v1890_v25  ;;  %v4430_v34 = vld [vmem:[%s7707_s0 + $0x214] sm:$0xf0]  ;;  %v4864_v25 = vld [vmem:[%s7707_s0 + $0x1c4] sm:$0xf] }
 0x2fa   :  { %v1747_v59 = vpop.f32.mrf.mxu3  ;;  %2094 = vmatpush.bf16.msra.mxu3 %v8059_v27 }
 0x2fb   :  { %2107 = vmatpush.bf16.msra.mxu1 %v8113_v63  ;;  %v4433_v59 = vor.u32 %v4871_v1, %v4430_v34  ;;  %v4865_v1 = vld [vmem:[%s7707_s0 + $0x1cc] sm:$0xf]  ;;  %v4410_v34 = vld [vmem:[%s7707_s0 + $0x1e4] sm:$0xf0] }
 0x2fc   :  { %2086 = vmatpush.bf16.msrb.mxu2 %v8116_v4 }
 0x2fd   :  { %v1930_v53 = vpop.f32.mrf.mxu0 }
 0x2fe   :  { %v4971_v8 = vpop.eup %4970  ;;  %2095 = vmatpush.bf16.msra.mxu3 %v8061_v23  ;;  %v1891_v48 = vpop.f32.mrf.mxu1  ;;  %v4402_v53 = vld [vmem:[%s7707_s0 + $0x1dc] sm:$0xf0] }
 0x2ff   :  { %v6753_v29 = vpack.c.bf16 %v4971_v8, %v4971_v8  ;;  %2108 = vmatpush.bf16.msra.mxu1 %v8115_v31  ;;  %v4973_v28 = vpop.eup %4972  ;;  %v4872_v8 = vld [vmem:[%s7707_s0 + $0x204] sm:$0xf]  ;;  %v4446_v48 = vld [vmem:[%s7707_s0 + $0x224] sm:$0xf0] }
 0x300   :  { %v6758_v44 = vpack.c.bf16 %v4973_v28, %v4973_v28 }
 0x301   :  { %2035 = vmatmul.bf16.vlgmr.msrb.gmra.mxu3 %v6753_v29 }
 0x302   :  { %v1915_v30 = vpop.f32.mrf.mxu3  ;;  %2061 = vmatmul.bf16.vlgmr.msrb.gmra.mxu1 %v6721_v42  ;;  %2096 = vmatpush.bf16.msra.mxu3 %v8063_v14  ;;  %v4428_v42 = vld [vmem:[%s7707_s0 + $0x1f8] sm:$0xf] }
 0x303   :  { %v1916_v55 = vadd.f32 %v1915_v30, %v8041_v21  ;;  %2109 = vmatpush.bf16.msra.mxu1 %v8117_v10  ;;  %1996 = vmatmul.bf16.vlgmr.msrb.gmra.mxu0 %v6758_v44  ;;  %v4429_v51 = vor.u32 %v4874_v35, %v4428_v42  ;;  %v4438_v30 = vld [vmem:[%s7707_s0 + $0x21c] sm:$0xf0] }
 0x304   :  { %2066 = vmatpush.bf16.msrb.mxu0 %v8054_v7  ;;  %v4441_v42 = vor.u32 %v4872_v8, %v4438_v30  ;;  %v8168_v8 = vld [vmem:[#allocation77_spill] sm:$0xff]  ;;  %v4408_v30 = vld [vmem:[%s7707_s0 + $0x1c8] sm:$0xf] }
 0x305   :  { %4974 = vtanh.f32 %v1916_v55  ;;  %v4873_v55 = vld [vmem:[%s7707_s0 + $0x20c] sm:$0xf] }
 0x306   :  { %2097 = vmatpush.bf16.msra.mxu3 %v8065_v56  ;;  %v1941_v54 = vpop.f32.mrf.mxu1  ;;  %v4449_v35 = vor.u32 %v4873_v55, %v4446_v48  ;;  %v4868_v55 = vld [vmem:[%s7707_s0 + $0x1e0] sm:$0xf0] }
 0x307   :  { %2110 = vmatpush.bf16.msra.mxu1 %v8119_v37  ;;  %v1942_v39 = vadd.f32 %v1941_v54, %v8041_v21  ;;  %v4405_v54 = vor.u32 %v4864_v25, %v4402_v53  ;;  %v4409_v48 = vor.u32 %v4868_v55, %v4408_v30  ;;  %v4876_v30 = vld [vmem:[%s7707_s0 + $0x220] sm:$0xf0]  ;;  %v8180_v55 = vld [vmem:[#allocation40_spill] sm:$0xff] }
 0x308   :  { %2067 = vmatpush.bf16.msrb.mxu0 %v8056_v12 }
 0x309   :  { %4976 = vtanh.f32 %v1942_v39 }
 0x30a   :  { %v1917_v18 = vpop.f32.mrf.mxu3  ;;  %2098 = vmatpush.bf16.msra.mxu3 %v8067_v61 }
 0x30b   :  { %v4975_v13 = vpop.eup %4974  ;;  %2111 = vmatpush.bf16.msra.mxu1 %v8120_v50  ;;  %v4401_v18 = vor.u32 %v4867_v41, %v4400_v60  ;;  %v4875_v60 = vld [vmem:[%s7707_s0 + $0x218] sm:$0xf0]  ;;  %v4413_v41 = vor.u32 %v4865_v1, %v4410_v34  ;;  %v4870_v34 = vld [vmem:[%s7707_s0 + $0x1f0] sm:$0xf0] }
 0x30c   :  { %v1956_v36 = vpack.c.bf16 %v4975_v13, %v4975_v13  ;;  %2068 = vmatpush.bf16.msrb.mxu0 %v8058_v19 }
 0x30e   :  { %2022 = vmatmul.bf16.vlgmr.msra.gmra.mxu2 %v1956_v36  ;;  %2099 = vmatpush.bf16.msra.mxu3 %v8068_v40  ;;  %v1943_v28 = vpop.f32.mrf.mxu1 }
 0x30f   :  { %2138 = vmatpush.bf16.msra.mxu2 %v8118_v5  ;;  %2112 = vmatpush.bf16.msra.mxu1 %v8121_v17  ;;  %v4977_v13 = vpop.eup %4976  ;;  %v8169_v28 = vld [vmem:[#allocation81_spill] sm:$0xff] }
 0x310   :  { %2069 = vmatpush.bf16.msrb.mxu0 %v8109_v26  ;;  %v1958_v39 = vpack.c.bf16 %v4977_v13, %v4977_v13  ;;  %v8171_v13 = vld [vmem:[#allocation87_spill] sm:$0xff] }
 0x311   :  { %2100 = vmatmul.bf16.vlgmr.msra.gmra.mxu3 %v6732_v22  ;;  %v8167_v22 = vld [vmem:[#allocation73_spill] sm:$0xff] }
 0x312   :  { %2242 = vmatpush.bf16.msrb.mxu3 %v4429_v51  ;;  %2113 = vmatmul.bf16.vlgmr.msra.gmra.mxu1 %v1956_v36  ;;  %v4866_v51 = vld [vmem:[%s7707_s0 + $0x1d4] sm:$0xf]  ;;  %v4436_v36 = vld [vmem:[%s7707_s0 + $0x200] sm:$0xf] }
 0x313   :  { %2255 = vmatpush.bf16.msrb.mxu1 %v4433_v59  ;;  %v4418_v59 = vld [vmem:[%s7707_s0 + $0x1ec] sm:$0xf0]  ;;  %4379 = vmatmul.msk.bf16.vlgmr.msra.gmra.mxu0 %vm810_vm1, %v1958_v39  ;;  %v4437_v53 = vor.u32 %v4875_v60, %v4436_v36 }
 0x314   :  { %2070 = vmatpush.bf16.msrb.mxu0 %v8167_v22  ;;  %v4421_v25 = vor.u32 %v4866_v51, %v4418_v59  ;;  %v8174_v51 = vld [vmem:[#allocation92_spill] sm:$0xff] }
 0x315   :  { %v8175_v36 = vld [vmem:[#allocation96_spill] sm:$0xff] }
 0x316   :  { %2243 = vmatpush.bf16.msrb.mxu3 %v4401_v18  ;;  %v8170_v18 = vld [vmem:[#allocation84_spill] sm:$0xff] }
 0x317   :  { %2256 = vmatpush.bf16.msrb.mxu1 %v4405_v54  ;;  %v8172_v54 = vld [vmem:[#allocation3_spill] sm:$0xff]  ;;  %v8177_v60 = vld [vmem:[#allocation36_spill] sm:$0xff] }
 0x318   :  { %2071 = vmatpush.bf16.msrb.mxu0 %v8168_v8 }
 0x31a   :  { %2281 = vmatpush.bf16.msra.mxu3 %v4441_v42  ;;  %v4877_v42 = vld [vmem:[%s7707_s0 + $0x228] sm:$0xf0] }
 0x31b   :  { %2307 = vmatpush.bf16.msra.mxu1 %v4449_v35  ;;  %v8173_v35 = vld [vmem:[#allocation90_spill] sm:$0xff] }
 0x31c   :  { %2072 = vmatpush.bf16.msrb.mxu0 %v8169_v28 }
 0x31e   :  { %2282 = vmatpush.bf16.msra.mxu3 %v4413_v41  ;;  %2087 = vmatmul.bf16.vlgmr.msrb.gmra.mxu2 %v6758_v44  ;;  %v4452_v44 = vld [vmem:[%s7707_s0 + $0x210] sm:$0xf]  ;;  %v8178_v41 = vld [vmem:[#allocation97_spill] sm:$0xff] }
 0x31f   :  { %2308 = vmatpush.bf16.msra.mxu1 %v4421_v25  ;;  %2268 = vmatpush.bf16.msrb.mxu2 %v4437_v53  ;;  %v4453_v1 = vor.u32 %v4877_v42, %v4452_v44  ;;  %v8179_v25 = vld [vmem:[#allocation18_spill] sm:$0xff]  ;;  %v4444_v53 = vld [vmem:[%s7707_s0 + $0x208] sm:$0xf] }
 0x320   :  { %2073 = vmatpush.bf16.msrb.mxu0 %v8170_v18  ;;  %v4445_v44 = vor.u32 %v4876_v30, %v4444_v53  ;;  %v8182_v42 = vld [vmem:[#allocation22_spill] sm:$0xff]  ;;  %v8187_v53 = vld [vmem:[#allocation8_spill] sm:$0xff] }
 0x321   :  { %4454 = vmatmul.msk.bf16.vlgmr.msrb.gmra.mxu3 %vm211_vm0, %v6647_v0  ;;  %v8188_v30 = vld [vmem:[#allocation28_spill] sm:$0xff] }
 0x322   :  { %4455 = vmatmul.msk.bf16.vlgmr.msrb.gmra.mxu1 %vm211_vm0, %v6647_v0  ;;  %2344 = vmatpush.bf16.msrb.mxu3 %v8172_v54 }
 0x323   :  { %2269 = vmatpush.bf16.msrb.mxu2 %v4409_v48  ;;  %2074 = vmatmul.bf16.vlgmr.msrb.gmra.mxu0 %v6730_v32  ;;  %v4424_v32 = vld [vmem:[%s7707_s0 + $0x1d8] sm:$0xf]  ;;  %v8181_v48 = vld [vmem:[#allocation98_spill] sm:$0xff] }
 0x324   :  { %2118 = vmatpush.bf16.msra.mxu0 %v8171_v13  ;;  %2370 = vmatpush.bf16.msrb.mxu1 %v5278_v20  ;;  %v4425_v59 = vor.u32 %v4870_v34, %v4424_v32  ;;  %v4869_v32 = vld [vmem:[%s7707_s0 + $0x1e8] sm:$0xf0]  ;;  %v8183_v34 = vld [vmem:[#allocation6_spill] sm:$0xff] }
 0x326   :  { %2345 = vmatpush.bf16.msrb.mxu3 %v5202_v58 }
 0x328   :  { %2119 = vmatpush.bf16.msra.mxu0 %v8173_v35  ;;  %2371 = vmatpush.bf16.msrb.mxu1 %v5320_v33 }
 0x32a   :  { %2346 = vmatpush.bf16.msrb.mxu3 %v5228_v3 }
 0x32c   :  { %2120 = vmatpush.bf16.msra.mxu0 %v8174_v51  ;;  %2372 = vmatpush.bf16.msrb.mxu1 %v8123_v6  ;;  %v8220_v6 = vld [vmem:[#allocation33_spill] sm:$0xff] }
 0x32e   :  { %4380 = vmatmul.msk.bf16.vlgmr.msra.gmra.mxu2 %vm810_vm1, %v1958_v39  ;;  %2347 = vmatpush.bf16.msrb.mxu3 %v5267_v16  ;;  %v8176_v39 = vld [vmem:[#allocation14_spill] sm:$0xff] }
 0x32f   :  { %2320 = vmatpush.bf16.msra.mxu2 %v4453_v1  ;;  %v4416_v1 = vld [vmem:[%s7707_s0 + $0x1d0] sm:$0xf] }
 0x330   :  { %2121 = vmatpush.bf16.msra.mxu0 %v8071_v52  ;;  %2373 = vmatpush.bf16.msrb.mxu1 %v8126_v15  ;;  %v8189_v15 = vld [vmem:[#allocation48_spill] sm:$0xff] }
 0x331   :  { %4457 = vmatmul.msk.bf16.vlgmr.msra.gmra.mxu3 %vm211_vm0, %v6647_v0 }
 0x332   :  { %4459 = vmatmul.msk.bf16.vlgmr.msra.gmra.mxu1 %vm211_vm0, %v6647_v0  ;;  %2348 = vmatpush.bf16.msrb.mxu3 %v8176_v39 }
 0x333   :  { %2321 = vmatpush.bf16.msra.mxu2 %v4425_v59  ;;  %v8184_v59 = vld [vmem:[#allocation44_spill] sm:$0xff] }
 0x334   :  { %2122 = vmatpush.bf16.msra.mxu0 %v8175_v36  ;;  %2374 = vmatpush.bf16.msrb.mxu1 %v8177_v60  ;;  %v4417_v60 = vor.u32 %v4869_v32, %v4416_v1  ;;  %v8195_v1 = vld [vmem:[#allocation15_spill] sm:$0xff]  ;;  %v8196_v32 = vld [vmem:[#allocation32_spill] sm:$0xff] }
 0x336   :  { %2349 = vmatpush.bf16.msrb.mxu3 %v8179_v25 }
 0x338   :  { %2123 = vmatpush.bf16.msra.mxu0 %v8178_v41  ;;  %2375 = vmatpush.bf16.msrb.mxu1 %v8180_v55  ;;  %v8185_v55 = vld [vmem:[#allocation99_spill] sm:$0xff] }
 0x339   :  { %v8190_v41 = vld [vmem:[#allocation51_spill] sm:$0xff] }
 0x33a   :  { %2350 = vmatpush.bf16.msrb.mxu3 %v8182_v42 }
 0x33c   :  { %2124 = vmatpush.bf16.msra.mxu0 %v8181_v48  ;;  %2376 = vmatpush.bf16.msrb.mxu1 %v8184_v59  ;;  %v8186_v48 = vld [vmem:[#allocation27_spill] sm:$0xff] }
 0x33d   :  { %v8192_v59 = vld [vmem:[#allocation11_spill] sm:$0xff] }
 0x33e   :  { %4456 = vmatmul.msk.bf16.vlgmr.msrb.gmra.mxu2 %vm211_vm0, %v6647_v0  ;;  %2351 = vmatpush.bf16.msrb.mxu3 %v8186_v48 }
 0x33f   :  { %2383 = vmatpush.bf16.msrb.mxu2 %v8183_v34  ;;  %v8191_v34 = vld [vmem:[#allocation2_spill] sm:$0xff] }
 0x340   :  { %2125 = vmatpush.bf16.msra.mxu0 %v8185_v55  ;;  %2377 = vmatpush.bf16.msrb.mxu1 %v8189_v15  ;;  %v8193_v55 = vld [vmem:[#allocation30_spill] sm:$0xff]  ;;  %v8198_v15 = vld [vmem:[#allocation19_spill] sm:$0xff] }
 0x342   :  { %2396 = vmatpush.bf16.msra.mxu3 %v8188_v30  ;;  %v8224_v30 = vld [vmem:[#allocation38_spill] sm:$0xff] }
 0x343   :  { %2384 = vmatpush.bf16.msrb.mxu2 %v8187_v53  ;;  %2126 = vmatmul.bf16.vlgmr.msra.gmra.mxu0 %v6753_v29  ;;  %v8197_v29 = vld [vmem:[#allocation5_spill] sm:$0xff]  ;;  %v8204_v53 = vld [vmem:[#allocation35_spill] sm:$0xff] }
 0x344   :  { %2294 = vmatpush.bf16.msrb.mxu0 %v4445_v44  ;;  %2429 = vmatpush.bf16.msra.mxu1 %v8190_v41  ;;  %v8194_v44 = vld [vmem:[#allocation4_spill] sm:$0xff]  ;;  %v8200_v41 = vld [vmem:[#allocation9_spill] sm:$0xff] }
 0x346   :  { %2397 = vmatpush.bf16.msra.mxu3 %v8193_v55  ;;  %v8212_v55 = vld [vmem:[#allocation52_spill] sm:$0xff] }
 0x347   :  { %2385 = vmatpush.bf16.msrb.mxu2 %v8192_v59  ;;  %v8201_v59 = vld [vmem:[#allocation23_spill] sm:$0xff] }
 0x348   :  { %2295 = vmatpush.bf16.msrb.mxu0 %v4417_v60  ;;  %v8199_v60 = vld [vmem:[#allocation37_spill] sm:$0xff] }
 0x34a   :  { %2398 = vmatpush.bf16.msra.mxu3 %v8196_v32  ;;  %v8211_v32 = vld [vmem:[#allocation46_spill] sm:$0xff] }
 0x34b   :  { %2386 = vmatpush.bf16.msrb.mxu2 %v8195_v1  ;;  %v8203_v1 = vld [vmem:[#allocation13_spill] sm:$0xff] }
 0x34c   :  { %2357 = vmatpush.bf16.msra.mxu0 %v8191_v34  ;;  %v8205_v34 = vld [vmem:[#allocation45_spill] sm:$0xff] }
 0x34e   :  { %4460 = vmatmul.msk.bf16.vlgmr.msra.gmra.mxu2 %vm211_vm0, %v6647_v0  ;;  %2399 = vmatpush.bf16.msra.mxu3 %v8199_v60  ;;  %v8208_v60 = vld [vmem:[#allocation42_spill] sm:$0xff] }
 0x34f   :  { %2387 = vmatpush.bf16.msrb.mxu2 %v8198_v15  ;;  %v8207_v15 = vld [vmem:[#allocation39_spill] sm:$0xff] }
 0x350   :  { %2358 = vmatpush.bf16.msra.mxu0 %v8194_v44  ;;  %v8202_v44 = vld [vmem:[#allocation41_spill] sm:$0xff] }
 0x352   :  { %2400 = vmatpush.bf16.msra.mxu3 %v8202_v44  ;;  %v8213_v44 = vld [vmem:[#allocation25_spill] sm:$0xff] }
 0x353   :  { %2388 = vmatpush.bf16.msrb.mxu2 %v8201_v59  ;;  %4458 = vmatmul.msk.bf16.vlgmr.msrb.gmra.mxu0 %vm211_vm0, %v6647_v0  ;;  %v8210_v59 = vld [vmem:[#allocation21_spill] sm:$0xff] }
 0x354   :  { %2359 = vmatpush.bf16.msra.mxu0 %v8197_v29  ;;  %v8206_v29 = vld [vmem:[#allocation17_spill] sm:$0xff] }
 0x356   :  { %2401 = vmatpush.bf16.msra.mxu3 %v8205_v34 }
 0x357   :  { %2389 = vmatpush.bf16.msrb.mxu2 %v8204_v53  ;;  %v8215_v53 = vld [vmem:[#allocation50_spill] sm:$0xff] }
 0x358   :  { %2360 = vmatpush.bf16.msra.mxu0 %v8200_v41  ;;  %v8209_v41 = vld [vmem:[#allocation49_spill] sm:$0xff] }
 0x35a   :  { %2402 = vmatpush.bf16.msra.mxu3 %v8209_v41  ;;  %v8219_v41 = vld [vmem:[#allocation54_spill] sm:$0xff] }
 0x35b   :  { %2390 = vmatpush.bf16.msrb.mxu2 %v8207_v15  ;;  %v8217_v15 = vld [vmem:[#allocation53_spill] sm:$0xff] }
 0x35c   :  { %2361 = vmatpush.bf16.msra.mxu0 %v8203_v1  ;;  %v8214_v1 = vld [vmem:[#allocation26_spill] sm:$0xff] }
 0x35e   :  { %2403 = vmatpush.bf16.msra.mxu3 %v8212_v55 }
 0x35f   :  { %2435 = vmatpush.bf16.msra.mxu2 %v8208_v60  ;;  %v8218_v60 = vld [vmem:[#allocation31_spill] sm:$0xff] }
 0x360   :  { %2362 = vmatpush.bf16.msra.mxu0 %v8206_v29  ;;  %v8216_v29 = vld [vmem:[#allocation29_spill] sm:$0xff] }
 0x362   :  { %v1971_v34 = vpop.f32.mrf.mxu2 }
 0x363   :  { %2436 = vmatpush.bf16.msra.mxu2 %v8211_v32  ;;  %v8221_v32 = vld [vmem:[#allocation55_spill] sm:$0xff] }
 0x364   :  { %2363 = vmatpush.bf16.msra.mxu0 %v8210_v59 }
 0x367   :  { %2437 = vmatpush.bf16.msra.mxu2 %v8215_v53 }
 0x368   :  { %2364 = vmatpush.bf16.msra.mxu0 %v8213_v44  ;;  %v8222_v44 = vld [vmem:[#allocation34_spill] sm:$0xff] }
 0x36a   :  { %v1973_v59 = vpop.f32.mrf.mxu2 }
 0x36b   :  { %2438 = vmatpush.bf16.msra.mxu2 %v8217_v15  ;;  %v8227_v59 = vld [vmem:[#allocation47_spill] sm:$0xff] }
 0x36c   :  { %2409 = vmatpush.bf16.msrb.mxu0 %v8214_v1  ;;  %v8223_v1 = vld [vmem:[#allocation56_spill] sm:$0xff] }
 0x36f   :  { %2439 = vmatpush.bf16.msra.mxu2 %v8219_v41  ;;  %v2010_v55 = vpop.f32.mrf.mxu1 }
 0x370   :  { %2410 = vmatpush.bf16.msrb.mxu0 %v8216_v29  ;;  %v8225_v29 = vld [vmem:[#allocation58_spill] sm:$0xff] }
 0x373   :  { %2440 = vmatpush.bf16.msra.mxu2 %v8221_v32 }
 0x374   :  { %2411 = vmatpush.bf16.msrb.mxu0 %v8218_v60  ;;  %v1984_v53 = vpop.f32.mrf.mxu3  ;;  %v8226_v60 = vld [vmem:[#allocation43_spill] sm:$0xff] }
 0x375   :  { %v1985_v15 = vadd.f32 %v1984_v53, %v1971_v34 }
 0x377   :  { %2441 = vmatpush.bf16.msra.mxu2 %v8223_v1  ;;  %v2012_v48 = vpop.f32.mrf.mxu1 }
 0x378   :  { %2412 = vmatpush.bf16.msrb.mxu0 %v8220_v6 }
 0x37b   :  { %2442 = vmatpush.bf16.msra.mxu2 %v8225_v29 }
 0x37c   :  { %2413 = vmatpush.bf16.msrb.mxu0 %v8222_v44  ;;  %v1986_v41 = vpop.f32.mrf.mxu3 }
 0x37f   :  { %v2062_v6 = vpop.f32.mrf.mxu1 }
 0x380   :  { %2414 = vmatpush.bf16.msrb.mxu0 %v8224_v30  ;;  %v1997_v36 = vpop.f32.mrf.mxu0 }
 0x381   :  { %v1998_v32 = vadd.f32 %v1997_v36, %v1985_v15 }
 0x383   :  { %v2011_v33 = vadd.f32 %v2010_v55, %v1998_v32 }
 0x384   :  { %2415 = vmatpush.bf16.msrb.mxu0 %v8226_v60  ;;  %v2036_v42 = vpop.f32.mrf.mxu3 }
 0x387   :  { %v2064_v44 = vpop.f32.mrf.mxu1 }
 0x388   :  { %2416 = vmatpush.bf16.msrb.mxu0 %v8227_v59  ;;  %v1999_v52 = vpop.f32.mrf.mxu0 }
 0x38c   :  { %v2038_v1 = vpop.f32.mrf.mxu3 }
 0x38f   :  { %v2114_v25 = vpop.f32.mrf.mxu1 }
 0x390   :  { %v2049_v30 = vpop.f32.mrf.mxu0 }
 0x391   :  { %v2023_v20 = vpop.f32.mrf.mxu2 }
 0x394   :  { %v2101_v51 = vpop.f32.mrf.mxu3 }
 0x397   :  { %v2116_v34 = vpop.f32.mrf.mxu1 }
 0x398   :  { %v2051_v48 = vpop.f32.mrf.mxu0 }
 0x399   :  { %v2025_v29 = vpop.f32.mrf.mxu2 }
 0x39c   :  { %v2103_v53 = vpop.f32.mrf.mxu3 }
 0x39f   :  { %v2258_v41 = vpop.f32.mrf.mxu1 }
 0x3a0   :  { %v2259_v59 = vadd.f32 %v2258_v41, %v8041_v21  ;;  %v2075_v39 = vpop.f32.mrf.mxu0 }
 0x3a1   :  { %v2088_v60 = vpop.f32.mrf.mxu2  ;;  %v2076_v41 = vadd.f32 %v2075_v39, %v2062_v6 }
 0x3a2   :  { %4978 = vtanh.f32 %v2259_v59 }
 0x3a4   :  { %v2245_v15 = vpop.f32.mrf.mxu3 }
 0x3a5   :  { %v2246_v55 = vadd.f32 %v2245_v15, %v8041_v21  ;;  %v2089_v15 = vadd.f32 %v2088_v60, %v2076_v41 }
 0x3a7   :  { %4980 = vtanh.f32 %v2246_v55  ;;  %v2260_v52 = vpop.f32.mrf.mxu1 }
 0x3a8   :  { %v4979_v44 = vpop.eup %4978  ;;  %v2077_v1 = vpop.f32.mrf.mxu0 }
 0x3a9   :  { %v2090_v36 = vpop.f32.mrf.mxu2  ;;  %v6952_v32 = vpack.c.bf16 %v4979_v44, %v4979_v44  ;;  %v2024_v1 = vadd.f32 %v2023_v20, %v2011_v33 }
 0x3ab   :  { %2365 = vmatmul.bf16.vlgmr.msra.gmra.mxu0 %v6952_v32  ;;  %v2037_v60 = vadd.f32 %v2036_v42, %v2024_v1  ;;  %v4510_v42 = vld [vmem:[%s7707_s0 + $0x268] sm:$0xf] }
 0x3ac   :  { %2474 = vmatpush.bf16.msra.mxu0 %v8055_v38  ;;  %v2247_v29 = vpop.f32.mrf.mxu3 }
 0x3ad   :  { %v4981_v34 = vpop.eup %4980  ;;  %v2102_v29 = vadd.f32 %v2101_v51, %v2089_v15  ;;  %v2050_v15 = vadd.f32 %v2049_v30, %v2037_v60  ;;  %v4482_v60 = vld [vmem:[%s7707_s0 + $0x230] sm:$0xf] }
 0x3ae   :  { %v6956_v53 = vpack.c.bf16 %v4981_v34, %v4981_v34 }
 0x3af   :  { %v2310_v59 = vpop.f32.mrf.mxu1 }
 0x3b0   :  { %v2311_v36 = vadd.f32 %v2310_v59, %v8041_v21  ;;  %2475 = vmatpush.bf16.msra.mxu0 %v8057_v11  ;;  %2352 = vmatmul.bf16.vlgmr.msrb.gmra.mxu3 %v6956_v53  ;;  %v2115_v59 = vadd.f32 %v2114_v25, %v2102_v29 }
 0x3b1   :  { %v2140_v48 = vpop.f32.mrf.mxu2  ;;  %2461 = vmatpush.bf16.msrb.mxu3 %v8042_v9 }
 0x3b2   :  { %4982 = vtanh.f32 %v2311_v36 }
 0x3b4   :  { %2476 = vmatpush.bf16.msra.mxu0 %v8059_v27  ;;  %v2284_v55 = vpop.f32.mrf.mxu3 }
 0x3b5   :  { %v2285_v44 = vadd.f32 %v2284_v55, %v8041_v21  ;;  %2462 = vmatpush.bf16.msrb.mxu3 %v8043_v62 }
 0x3b7   :  { %4984 = vtanh.f32 %v2285_v44  ;;  %v2312_v6 = vpop.f32.mrf.mxu1 }
 0x3b8   :  { %v4983_v39 = vpop.eup %4982  ;;  %2477 = vmatpush.bf16.msra.mxu0 %v8061_v23  ;;  %v4888_v6 = vld [vmem:[%s7707_s0 + $0x280] sm:$0xf0] }
 0x3b9   :  { %v2142_v52 = vpop.f32.mrf.mxu2  ;;  %v6966_v34 = vpack.c.bf16 %v4983_v39, %v4983_v39  ;;  %2463 = vmatpush.bf16.msrb.mxu3 %v8044_v46  ;;  %v4511_v1 = vor.u32 %v4888_v6, %v4510_v42 }
 0x3bb   :  { %2417 = vmatmul.bf16.vlgmr.msrb.gmra.mxu0 %v6966_v34 }
 0x3bc   :  { %2478 = vmatpush.bf16.msra.mxu0 %v8063_v14  ;;  %v2286_v41 = vpop.f32.mrf.mxu3 }
 0x3bd   :  { %v4985_v36 = vpop.eup %4984  ;;  %2464 = vmatpush.bf16.msrb.mxu3 %v8047_v2  ;;  %v4886_v41 = vld [vmem:[%s7707_s0 + $0x274] sm:$0xf] }
 0x3be   :  { %v2337_v20 = vpack.c.bf16 %v4985_v36, %v4985_v36  ;;  %v4520_v36 = vld [vmem:[%s7707_s0 + $0x28c] sm:$0xf0] }
 0x3c0   :  { %v2127_v55 = vpop.f32.mrf.mxu0  ;;  %2479 = vmatpush.bf16.msra.mxu0 %v8065_v56  ;;  %2391 = vmatmul.bf16.vlgmr.msrb.gmra.mxu2 %v2337_v20 }
 0x3c1   :  { %v2271_v52 = vpop.f32.mrf.mxu2  ;;  %v2128_v33 = vadd.f32 %v2127_v55, %v2115_v59  ;;  %2487 = vmatpush.bf16.msrb.mxu2 %v8107_v24  ;;  %2465 = vmatpush.bf16.msrb.mxu3 %v8108_v57  ;;  %v4881_v59 = vld [vmem:[%s7707_s0 + $0x248] sm:$0xf0] }
 0x3c2   :  { %v2272_v51 = vadd.f32 %v2271_v52, %v8041_v21  ;;  %v4483_v55 = vor.u32 %v4881_v59, %v4482_v60  ;;  %v4523_v52 = vor.u32 %v4886_v41, %v4520_v36  ;;  %v4885_v60 = vld [vmem:[%s7707_s0 + $0x26c] sm:$0xf]  ;;  %v4878_v36 = vld [vmem:[%s7707_s0 + $0x234] sm:$0xf] }
 0x3c3   :  { %v2141_v44 = vadd.f32 %v2140_v48, %v2128_v33  ;;  %v4879_v33 = vld [vmem:[%s7707_s0 + $0x23c] sm:$0xf] }
 0x3c4   :  { %4986 = vtanh.f32 %v2272_v51  ;;  %2480 = vmatpush.bf16.msra.mxu0 %v8067_v61  ;;  %v4492_v51 = vld [vmem:[%s7707_s0 + $0x254] sm:$0xf0] }
 0x3c5   :  { %v2144_v25 = vpack.c.bf16 %v2141_v44, %v2050_v15  ;;  %2488 = vmatpush.bf16.msrb.mxu2 %v8110_v43  ;;  %2466 = vmatpush.bf16.msrb.mxu3 %v8111_v47 }
 0x3c7   :  { %4381 = vst.msk [vmem:[%s7711_s4 + $0x18] sm:$0xff] %vm6259_vm4, %v2144_v25 }
 0x3c8   :  { %v2129_v30 = vpop.f32.mrf.mxu0  ;;  %2481 = vmatpush.bf16.msra.mxu0 %v8068_v40 }
 0x3c9   :  { %v2273_v48 = vpop.f32.mrf.mxu2  ;;  %2489 = vmatpush.bf16.msrb.mxu2 %v8113_v63  ;;  %2467 = vmatpush.bf16.msrb.mxu3 %v8114_v45 }
 0x3ca   :  { %v4987_v39 = vpop.eup %4986 }
 0x3cb   :  { %v6990_v29 = vpack.c.bf16 %v4987_v39, %v4987_v39  ;;  %2482 = vmatmul.bf16.vlgmr.msra.gmra.mxu0 %v2337_v20  ;;  %v4495_v20 = vor.u32 %v4879_v33, %v4492_v51  ;;  %v4528_v33 = vld [vmem:[%s7707_s0 + $0x294] sm:$0xf0] }
 0x3cc   :  { %2624 = vmatpush.bf16.msrb.mxu0 %v4511_v1 }
 0x3cd   :  { %2378 = vmatmul.bf16.vlgmr.msrb.gmra.mxu1 %v6990_v29  ;;  %2490 = vmatpush.bf16.msrb.mxu2 %v8115_v31 }
 0x3ce   :  { %2448 = vmatpush.bf16.msrb.mxu1 %v8054_v7  ;;  %2468 = vmatpush.bf16.msrb.mxu3 %v8116_v4 }
 0x3d0   :  { %v2297_v15 = vpop.f32.mrf.mxu0  ;;  %2625 = vmatpush.bf16.msrb.mxu0 %v4483_v55  ;;  %2443 = vmatmul.bf16.vlgmr.msra.gmra.mxu2 %v6956_v53  ;;  %v4512_v53 = vld [vmem:[%s7707_s0 + $0x284] sm:$0xf0]  ;;  %v4484_v55 = vld [vmem:[%s7707_s0 + $0x24c] sm:$0xf0] }
 0x3d1   :  { %v2323_v44 = vpop.f32.mrf.mxu2  ;;  %v2298_v25 = vadd.f32 %v2297_v15, %v8041_v21  ;;  %2491 = vmatpush.bf16.msrb.mxu2 %v8117_v10  ;;  %v4515_v41 = vor.u32 %v4885_v60, %v4512_v53  ;;  %v4487_v51 = vor.u32 %v4878_v36, %v4484_v55  ;;  %v8228_v60 = vld [vmem:[#allocation14_spill] sm:$0xff]  ;;  %v8229_v53 = vld [vmem:[#allocation92_spill] sm:$0xff]  ;;  %v4891_v36 = vld [vmem:[%s7707_s0 + $0x298] sm:$0xf0] }
 0x3d2   :  { %v2324_v42 = vadd.f32 %v2323_v44, %v8041_v21  ;;  %2449 = vmatpush.bf16.msrb.mxu1 %v8056_v12  ;;  %v4880_v44 = vld [vmem:[%s7707_s0 + $0x244] sm:$0xf] }
 0x3d3   :  { %4988 = vtanh.f32 %v2298_v25  ;;  %v4500_v25 = vld [vmem:[%s7707_s0 + $0x25c] sm:$0xf0] }
 0x3d4   :  { %2663 = vmatpush.bf16.msra.mxu0 %v4523_v52  ;;  %4990 = vtanh.f32 %v2324_v42  ;;  %v4887_v52 = vld [vmem:[%s7707_s0 + $0x27c] sm:$0xf]  ;;  %v4503_v42 = vor.u32 %v4880_v44, %v4500_v25  ;;  %v8232_v55 = vld [vmem:[#allocation94_spill] sm:$0xff]  ;;  %v8235_v44 = vld [vmem:[#allocation96_spill] sm:$0xff] }
 0x3d5   :  { %2492 = vmatpush.bf16.msrb.mxu2 %v8119_v37  ;;  %v4531_v15 = vor.u32 %v4887_v52, %v4528_v33  ;;  %v8233_v52 = vld [vmem:[#allocation22_spill] sm:$0xff]  ;;  %v8234_v33 = vld [vmem:[#allocation16_spill] sm:$0xff]  ;;  %v8236_v25 = vld [vmem:[#allocation27_spill] sm:$0xff] }
 0x3d6   :  { %2450 = vmatpush.bf16.msrb.mxu1 %v8058_v19 }
 0x3d8   :  { %2664 = vmatpush.bf16.msra.mxu0 %v4495_v20  ;;  %v2299_v6 = vpop.f32.mrf.mxu0  ;;  %v4518_v20 = vld [vmem:[%s7707_s0 + $0x270] sm:$0xf] }
 0x3d9   :  { %v2325_v30 = vpop.f32.mrf.mxu2  ;;  %v4989_v48 = vpop.eup %4988  ;;  %2493 = vmatpush.bf16.msrb.mxu2 %v8120_v50  ;;  %v4889_v6 = vld [vmem:[%s7707_s0 + $0x288] sm:$0xf0] }
 0x3da   :  { %2451 = vmatpush.bf16.msrb.mxu1 %v8109_v26  ;;  %v4991_v39 = vpop.eup %4990  ;;  %v2338_v1 = vpack.c.bf16 %v4989_v48, %v4989_v48  ;;  %v4519_v30 = vor.u32 %v4889_v6, %v4518_v20  ;;  %v4490_v48 = vld [vmem:[%s7707_s0 + $0x238] sm:$0xf]  ;;  %v8237_v20 = vld [vmem:[#allocation28_spill] sm:$0xff] }
 0x3db   :  { %v2340_v59 = vpack.c.bf16 %v4991_v39, %v4991_v39  ;;  %4536 = vmatmul.msk.bf16.vlgmr.msrb.gmra.mxu0 %vm211_vm0, %v6647_v0  ;;  %v4882_v39 = vld [vmem:[%s7707_s0 + $0x250] sm:$0xf0] }
 0x3dc   :  { %2404 = vmatmul.bf16.vlgmr.msra.gmra.mxu3 %v2338_v1  ;;  %2726 = vmatpush.bf16.msrb.mxu0 %v8172_v54  ;;  %v8238_v6 = vld [vmem:[#allocation20_spill] sm:$0xff] }
 0x3dd   :  { %4461 = vmatmul.msk.bf16.vlgmr.msra.gmra.mxu1 %vm810_vm1, %v2340_v59  ;;  %2520 = vmatpush.bf16.msra.mxu3 %v8118_v5 }
 0x3de   :  { %2452 = vmatpush.bf16.msrb.mxu1 %v8167_v22  ;;  %2494 = vmatpush.bf16.msrb.mxu2 %v8121_v17 }
 0x3e0   :  { %2727 = vmatpush.bf16.msrb.mxu0 %v5202_v58 }
 0x3e1   :  { %2495 = vmatmul.bf16.vlgmr.msrb.gmra.mxu2 %v2338_v1  ;;  %v4491_v1 = vor.u32 %v4882_v39, %v4490_v48  ;;  %v4526_v48 = vld [vmem:[%s7707_s0 + $0x278] sm:$0xf]  ;;  %v4890_v39 = vld [vmem:[%s7707_s0 + $0x290] sm:$0xf0] }
 0x3e2   :  { %2637 = vmatpush.bf16.msra.mxu2 %v4515_v41  ;;  %2453 = vmatpush.bf16.msrb.mxu1 %v8168_v8  ;;  %v8230_v41 = vld [vmem:[#allocation18_spill] sm:$0xff] }
 0x3e4   :  { %2728 = vmatpush.bf16.msrb.mxu0 %v5228_v3 }
 0x3e6   :  { %2638 = vmatpush.bf16.msra.mxu2 %v4487_v51  ;;  %2454 = vmatpush.bf16.msrb.mxu1 %v8169_v28 }
 0x3e8   :  { %2729 = vmatpush.bf16.msrb.mxu0 %v5267_v16 }
 0x3ea   :  { %2689 = vmatpush.bf16.msrb.mxu2 %v4531_v15  ;;  %2455 = vmatpush.bf16.msrb.mxu1 %v8170_v18  ;;  %v4884_v15 = vld [vmem:[%s7707_s0 + $0x260] sm:$0xf0] }
 0x3eb   :  { %4539 = vmatmul.msk.bf16.vlgmr.msra.gmra.mxu0 %vm211_vm0, %v6647_v0 }
 0x3ec   :  { %2469 = vmatmul.bf16.vlgmr.msrb.gmra.mxu3 %v6990_v29  ;;  %2730 = vmatpush.bf16.msrb.mxu0 %v8228_v60  ;;  %v8231_v29 = vld [vmem:[#allocation12_spill] sm:$0xff] }
 0x3ed   :  { %2456 = vmatmul.bf16.vlgmr.msrb.gmra.mxu1 %v6952_v32  ;;  %2650 = vmatpush.bf16.msrb.mxu3 %v4519_v30  ;;  %v4534_v32 = vld [vmem:[%s7707_s0 + $0x280] sm:$0xf]  ;;  %v8239_v30 = vld [vmem:[#allocation97_spill] sm:$0xff] }
 0x3ee   :  { %2690 = vmatpush.bf16.msrb.mxu2 %v4503_v42  ;;  %2500 = vmatpush.bf16.msra.mxu1 %v8171_v13  ;;  %v4535_v51 = vor.u32 %v4891_v36, %v4534_v32  ;;  %v8242_v32 = vld [vmem:[#allocation98_spill] sm:$0xff] }
 0x3ef   :  { %v7120_v36 = vld [vmem:[%s7708_s1] sm:$0xf] }
 0x3f0   :  { %2731 = vmatpush.bf16.msrb.mxu0 %v8230_v41  ;;  %v8279_v41 = vld [vmem:[#allocation54_spill] sm:$0xff] }
 0x3f1   :  { %2651 = vmatpush.bf16.msrb.mxu3 %v4491_v1  ;;  %4537 = vmatmul.msk.bf16.vlgmr.msra.gmra.mxu2 %vm211_vm0, %v6647_v0  ;;  %v4506_v0 = vld [vmem:[%s7707_s0 + $0x248] sm:$0xf]  ;;  %v8241_v1 = vld [vmem:[#allocation24_spill] sm:$0xff] }
 0x3f2   :  { %2501 = vmatpush.bf16.msra.mxu1 %v8173_v35  ;;  %2752 = vmatpush.bf16.msra.mxu2 %v8231_v29  ;;  %v4507_v42 = vor.u32 %v4884_v15, %v4506_v0  ;;  %v4498_v0 = vld [vmem:[%s7707_s0 + $0x240] sm:$0xf]  ;;  %v4883_v15 = vld [vmem:[%s7707_s0 + $0x258] sm:$0xf0] }
 0x3f4   :  { %2732 = vmatpush.bf16.msrb.mxu0 %v8233_v52  ;;  %v8249_v52 = vld [vmem:[#allocation2_spill] sm:$0xff] }
 0x3f6   :  { %2502 = vmatpush.bf16.msra.mxu1 %v8229_v53  ;;  %2753 = vmatpush.bf16.msra.mxu2 %v8234_v33 }
 0x3f8   :  { %2733 = vmatpush.bf16.msrb.mxu0 %v8236_v25  ;;  %v4499_v25 = vor.u32 %v4883_v15, %v4498_v0  ;;  %v8253_v0 = vld [vmem:[#allocation4_spill] sm:$0xff]  ;;  %v8254_v15 = vld [vmem:[#allocation45_spill] sm:$0xff] }
 0x3fa   :  { %2503 = vmatpush.bf16.msra.mxu1 %v8232_v55  ;;  %2754 = vmatpush.bf16.msra.mxu2 %v8238_v6 }
 0x3fc   :  { %4462 = vmatmul.msk.bf16.vlgmr.msra.gmra.mxu3 %vm810_vm1, %v2340_v59  ;;  %2778 = vmatpush.bf16.msra.mxu0 %v8237_v20  ;;  %v8240_v59 = vld [vmem:[#allocation30_spill] sm:$0xff]  ;;  %v8245_v20 = vld [vmem:[#allocation99_spill] sm:$0xff] }
 0x3fd   :  { %2702 = vmatpush.bf16.msra.mxu3 %v4535_v51  ;;  %v4527_v51 = vor.u32 %v4890_v39, %v4526_v48  ;;  %v8247_v48 = vld [vmem:[#allocation40_spill] sm:$0xff]  ;;  %v8248_v39 = vld [vmem:[#allocation6_spill] sm:$0xff] }
 0x3fe   :  { %2504 = vmatpush.bf16.msra.mxu1 %v8235_v44  ;;  %2755 = vmatpush.bf16.msra.mxu2 %v8241_v1 }
 0x400   :  { %2779 = vmatpush.bf16.msra.mxu0 %v8240_v59  ;;  %v8244_v59 = vld [vmem:[#allocation36_spill] sm:$0xff] }
 0x401   :  { %2703 = vmatpush.bf16.msra.mxu3 %v4507_v42  ;;  %4541 = vmatmul.msk.bf16.vlgmr.msrb.gmra.mxu2 %vm211_vm0, %v7120_v36  ;;  %v8243_v42 = vld [vmem:[#allocation32_spill] sm:$0xff] }
 0x402   :  { %2505 = vmatpush.bf16.msra.mxu1 %v8239_v30  ;;  %2756 = vmatpush.bf16.msra.mxu2 %v8244_v59  ;;  %v8251_v30 = vld [vmem:[#allocation44_spill] sm:$0xff] }
 0x404   :  { %2780 = vmatpush.bf16.msra.mxu0 %v8243_v42  ;;  %v8250_v42 = vld [vmem:[#allocation41_spill] sm:$0xff] }
 0x406   :  { %2506 = vmatpush.bf16.msra.mxu1 %v8242_v32  ;;  %v8246_v32 = vld [vmem:[#allocation37_spill] sm:$0xff]  ;;  %2757 = vmatpush.bf16.msra.mxu2 %v8247_v48 }
 0x408   :  { %2781 = vmatpush.bf16.msra.mxu0 %v8246_v32  ;;  %v8256_v32 = vld [vmem:[#allocation51_spill] sm:$0xff] }
 0x40a   :  { %2507 = vmatpush.bf16.msra.mxu1 %v8245_v20  ;;  %2758 = vmatpush.bf16.msra.mxu2 %v8251_v30  ;;  %v8257_v20 = vld [vmem:[#allocation11_spill] sm:$0xff] }
 0x40c   :  { %4538 = vmatmul.msk.bf16.vlgmr.msrb.gmra.mxu3 %vm211_vm0, %v7120_v36  ;;  %2782 = vmatpush.bf16.msra.mxu0 %v8250_v42  ;;  %v8261_v42 = vld [vmem:[#allocation9_spill] sm:$0xff] }
 0x40d   :  { %2508 = vmatmul.bf16.vlgmr.msra.gmra.mxu1 %v6966_v34  ;;  %2765 = vmatpush.bf16.msrb.mxu3 %v8248_v39  ;;  %v8255_v34 = vld [vmem:[#allocation48_spill] sm:$0xff]  ;;  %v8259_v39 = vld [vmem:[#allocation49_spill] sm:$0xff] }
 0x40e   :  { %2676 = vmatpush.bf16.msrb.mxu1 %v4527_v51  ;;  %v8252_v51 = vld [vmem:[#allocation8_spill] sm:$0xff]  ;;  %2759 = vmatpush.bf16.msra.mxu2 %v8255_v34  ;;  %v8272_v34 = vld [vmem:[#allocation26_spill] sm:$0xff] }
 0x410   :  { %2783 = vmatpush.bf16.msra.mxu0 %v8254_v15  ;;  %v8263_v15 = vld [vmem:[#allocation19_spill] sm:$0xff] }
 0x411   :  { %2766 = vmatpush.bf16.msrb.mxu3 %v8252_v51  ;;  %v8264_v51 = vld [vmem:[#allocation13_spill] sm:$0xff] }
 0x412   :  { %2677 = vmatpush.bf16.msrb.mxu1 %v4499_v25  ;;  %2811 = vmatpush.bf16.msrb.mxu2 %v8256_v32  ;;  %v8258_v25 = vld [vmem:[#allocation5_spill] sm:$0xff] }
 0x413   :  { %v8270_v32 = vld [vmem:[#allocation25_spill] sm:$0xff] }
 0x414   :  { %2784 = vmatpush.bf16.msra.mxu0 %v8259_v39  ;;  %v8267_v39 = vld [vmem:[#allocation35_spill] sm:$0xff] }
 0x415   :  { %2767 = vmatpush.bf16.msrb.mxu3 %v8257_v20  ;;  %v8265_v20 = vld [vmem:[#allocation23_spill] sm:$0xff] }
 0x416   :  { %2739 = vmatpush.bf16.msra.mxu1 %v8249_v52  ;;  %v8260_v52 = vld [vmem:[#allocation15_spill] sm:$0xff] }
 0x419   :  { %2768 = vmatpush.bf16.msrb.mxu3 %v8260_v52  ;;  %v8268_v52 = vld [vmem:[#allocation21_spill] sm:$0xff] }
 0x41a   :  { %2740 = vmatpush.bf16.msra.mxu1 %v8253_v0  ;;  %v8262_v0 = vld [vmem:[#allocation52_spill] sm:$0xff] }
 0x41b   :  { %2785 = vmatpush.bf16.msra.mxu0 %v8262_v0  ;;  %v8271_v0 = vld [vmem:[#allocation42_spill] sm:$0xff] }
 0x41c   :  { %4542 = vmatmul.msk.bf16.vlgmr.msra.gmra.mxu3 %vm211_vm0, %v7120_v36 }
 0x41d   :  { %4540 = vmatmul.msk.bf16.vlgmr.msrb.gmra.mxu1 %vm211_vm0, %v7120_v36  ;;  %2769 = vmatpush.bf16.msrb.mxu3 %v8263_v15  ;;  %v8273_v15 = vld [vmem:[#allocation46_spill] sm:$0xff] }
 0x41e   :  { %2741 = vmatpush.bf16.msra.mxu1 %v8258_v25  ;;  %v8266_v25 = vld [vmem:[#allocation17_spill] sm:$0xff] }
 0x421   :  { %2770 = vmatpush.bf16.msrb.mxu3 %v8265_v20  ;;  %v8275_v20 = vld [vmem:[#allocation50_spill] sm:$0xff] }
 0x422   :  { %2742 = vmatpush.bf16.msra.mxu1 %v8261_v42  ;;  %v8269_v42 = vld [vmem:[#allocation39_spill] sm:$0xff] }
 0x425   :  { %2771 = vmatpush.bf16.msrb.mxu3 %v8267_v39 }
 0x426   :  { %2743 = vmatpush.bf16.msra.mxu1 %v8264_v51  ;;  %v8274_v51 = vld [vmem:[#allocation29_spill] sm:$0xff] }
 0x428   :  { %v2366_v30 = vpop.f32.mrf.mxu0 }
 0x429   :  { %2772 = vmatpush.bf16.msrb.mxu3 %v8269_v42  ;;  %v8278_v42 = vld [vmem:[#allocation33_spill] sm:$0xff] }
 0x42a   :  { %2744 = vmatpush.bf16.msra.mxu1 %v8266_v25  ;;  %v8276_v25 = vld [vmem:[#allocation31_spill] sm:$0xff] }
 0x42d   :  { %2817 = vmatpush.bf16.msra.mxu3 %v8271_v0  ;;  %v8280_v0 = vld [vmem:[#allocation34_spill] sm:$0xff] }
 0x42e   :  { %2745 = vmatpush.bf16.msra.mxu1 %v8268_v52  ;;  %v8277_v52 = vld [vmem:[#allocation53_spill] sm:$0xff] }
 0x430   :  { %v2368_v39 = vpop.f32.mrf.mxu0 }
 0x431   :  { %2818 = vmatpush.bf16.msra.mxu3 %v8273_v15  ;;  %v8281_v15 = vld [vmem:[#allocation55_spill] sm:$0xff] }
 0x432   :  { %2746 = vmatpush.bf16.msra.mxu1 %v8270_v32 }
 0x433   :  { %v2353_v48 = vpop.f32.mrf.mxu3 }
 0x434   :  { %v2367_v32 = vadd.f32 %v2366_v30, %v2353_v48 }
 0x435   :  { %2819 = vmatpush.bf16.msra.mxu3 %v8275_v20  ;;  %v8283_v20 = vld [vmem:[#allocation56_spill] sm:$0xff] }
 0x436   :  { %2791 = vmatpush.bf16.msrb.mxu1 %v8272_v34 }
 0x438   :  { %v2418_v34 = vpop.f32.mrf.mxu0 }
 0x439   :  { %2820 = vmatpush.bf16.msra.mxu3 %v8277_v52  ;;  %v8285_v52 = vld [vmem:[#allocation58_spill] sm:$0xff] }
 0x43a   :  { %2792 = vmatpush.bf16.msrb.mxu1 %v8274_v51  ;;  %v8282_v51 = vld [vmem:[#allocation38_spill] sm:$0xff] }
 0x43b   :  { %v2355_v44 = vpop.f32.mrf.mxu3 }
 0x43d   :  { %2821 = vmatpush.bf16.msra.mxu3 %v8279_v41 }
 0x43e   :  { %2793 = vmatpush.bf16.msrb.mxu1 %v8276_v25  ;;  %v8284_v25 = vld [vmem:[#allocation43_spill] sm:$0xff] }
 0x440   :  { %v2420_v39 = vpop.f32.mrf.mxu0 }
 0x441   :  { %2822 = vmatpush.bf16.msra.mxu3 %v8281_v15 }
 0x442   :  { %2794 = vmatpush.bf16.msrb.mxu1 %v8278_v42  ;;  %v8286_v42 = vld [vmem:[#allocation47_spill] sm:$0xff] }
 0x443   :  { %v2392_v59 = vpop.f32.mrf.mxu2 }
 0x445   :  { %2823 = vmatpush.bf16.msra.mxu3 %v8283_v20 }
 0x446   :  { %2795 = vmatpush.bf16.msrb.mxu1 %v8280_v0 }
 0x448   :  { %v2483_v48 = vpop.f32.mrf.mxu0 }
 0x449   :  { %2824 = vmatpush.bf16.msra.mxu3 %v8285_v52 }
 0x44a   :  { %2796 = vmatpush.bf16.msrb.mxu1 %v8282_v51  ;;  %v2379_v30 = vpop.f32.mrf.mxu1 }
 0x44b   :  { %v2394_v41 = vpop.f32.mrf.mxu2  ;;  %v2380_v55 = vadd.f32 %v2379_v30, %v2367_v32 }
 0x44d   :  { %v2393_v20 = vadd.f32 %v2392_v59, %v2380_v55 }
 0x44e   :  { %2797 = vmatpush.bf16.msrb.mxu1 %v8284_v25 }
 0x450   :  { %v2485_v60 = vpop.f32.mrf.mxu0 }
 0x452   :  { %2798 = vmatpush.bf16.msrb.mxu1 %v8286_v42  ;;  %v2381_v0 = vpop.f32.mrf.mxu1 }
 0x453   :  { %v2444_v44 = vpop.f32.mrf.mxu2 }
 0x458   :  { %v2627_v1 = vpop.f32.mrf.mxu0 }
 0x459   :  { %v2628_v51 = vadd.f32 %v2627_v1, %v8041_v21 }
 0x45a   :  { %v2431_v15 = vpop.f32.mrf.mxu1 }
 0x45b   :  { %4992 = vtanh.f32 %v2628_v51  ;;  %v2446_v25 = vpop.f32.mrf.mxu2 }
 0x45f   :  { %v2405_v39 = vpop.f32.mrf.mxu3 }
 0x460   :  { %v2406_v16 = vadd.f32 %v2405_v39, %v2393_v20  ;;  %v2629_v6 = vpop.f32.mrf.mxu0 }
 0x461   :  { %v4993_v42 = vpop.eup %4992 }
 0x462   :  { %v2419_v53 = vadd.f32 %v2418_v34, %v2406_v16  ;;  %v2433_v52 = vpop.f32.mrf.mxu1  ;;  %v2716_v3 = vpack.c.bf16 %v4993_v42, %v4993_v42 }
 0x464   :  { %v2496_v35 = vpop.f32.mrf.mxu2  ;;  %2734 = vmatmul.bf16.vlgmr.msrb.gmra.mxu0 %v2716_v3 }
 0x465   :  { %2843 = vmatpush.bf16.msrb.mxu0 %v8042_v9 }
 0x467   :  { %v2407_v41 = vpop.f32.mrf.mxu3 }
 0x468   :  { %v2666_v32 = vpop.f32.mrf.mxu0 }
 0x469   :  { %v2667_v0 = vadd.f32 %v2666_v32, %v8041_v21  ;;  %2844 = vmatpush.bf16.msrb.mxu0 %v8043_v62 }
 0x46a   :  { %v2457_v60 = vpop.f32.mrf.mxu1 }
 0x46b   :  { %4994 = vtanh.f32 %v2667_v0  ;;  %v2458_v34 = vadd.f32 %v2457_v60, %v2444_v44 }
 0x46c   :  { %v2498_v55 = vpop.f32.mrf.mxu2 }
 0x46d   :  { %2845 = vmatpush.bf16.msrb.mxu0 %v8044_v46 }
 0x46f   :  { %v2470_v59 = vpop.f32.mrf.mxu3 }
 0x470   :  { %v2668_v52 = vpop.f32.mrf.mxu0  ;;  %v2471_v25 = vadd.f32 %v2470_v59, %v2458_v34 }
 0x471   :  { %v4995_v20 = vpop.eup %4994  ;;  %2846 = vmatpush.bf16.msrb.mxu0 %v8047_v2 }
 0x472   :  { %v2459_v16 = vpop.f32.mrf.mxu1  ;;  %v7187_v6 = vpack.c.bf16 %v4995_v20, %v4995_v20  ;;  %v2484_v0 = vadd.f32 %v2483_v48, %v2471_v25  ;;  %v2432_v48 = vadd.f32 %v2431_v15, %v2419_v53 }
 0x474   :  { %v2640_v1 = vpop.f32.mrf.mxu2  ;;  %2773 = vmatmul.bf16.vlgmr.msrb.gmra.mxu3 %v7187_v6  ;;  %v2497_v44 = vadd.f32 %v2496_v35, %v2484_v0  ;;  %v4594_v35 = vld [vmem:[%s7707_s0 + $0x2f4] sm:$0xf0] }
 0x475   :  { %v2641_v51 = vadd.f32 %v2640_v1, %v8041_v21  ;;  %2869 = vmatpush.bf16.msrb.mxu3 %v8107_v24  ;;  %2847 = vmatpush.bf16.msrb.mxu0 %v8108_v57 }
 0x477   :  { %v2472_v42 = vpop.f32.mrf.mxu3  ;;  %4996 = vtanh.f32 %v2641_v51 }
 0x479   :  { %2870 = vmatpush.bf16.msrb.mxu3 %v8110_v43  ;;  %2848 = vmatpush.bf16.msrb.mxu0 %v8111_v47 }
 0x47c   :  { %v2642_v30 = vpop.f32.mrf.mxu2 }
 0x47d   :  { %v4997_v39 = vpop.eup %4996  ;;  %2871 = vmatpush.bf16.msrb.mxu3 %v8113_v63  ;;  %2849 = vmatpush.bf16.msrb.mxu0 %v8114_v45 }
 0x47e   :  { %v7195_v32 = vpack.c.bf16 %v4997_v39, %v4997_v39  ;;  %v4892_v39 = vld [vmem:[%s7707_s0 + $0x2a4] sm:$0xf] }
 0x47f   :  { %v2522_v41 = vpop.f32.mrf.mxu3 }
 0x480   :  { %2747 = vmatmul.bf16.vlgmr.msra.gmra.mxu1 %v7195_v32 }
 0x481   :  { %2856 = vmatpush.bf16.msra.mxu1 %v8055_v38  ;;  %2872 = vmatpush.bf16.msrb.mxu3 %v8115_v31 }
 0x482   :  { %2850 = vmatpush.bf16.msrb.mxu0 %v8116_v4 }
 0x484   :  { %v2692_v60 = vpop.f32.mrf.mxu2  ;;  %2825 = vmatmul.bf16.vlgmr.msra.gmra.mxu3 %v2716_v3  ;;  %v4899_v3 = vld [vmem:[%s7707_s0 + $0x2dc] sm:$0xf] }
 0x485   :  { %v2693_v16 = vadd.f32 %v2692_v60, %v8041_v21  ;;  %2857 = vmatpush.bf16.msra.mxu1 %v8057_v11  ;;  %2873 = vmatpush.bf16.msrb.mxu3 %v8117_v10  ;;  %v4597_v30 = vor.u32 %v4899_v3, %v4594_v35  ;;  %v4895_v3 = vld [vmem:[%s7707_s0 + $0x2b8] sm:$0xf0]  ;;  %v4901_v35 = vld [vmem:[%s7707_s0 + $0x2ec] sm:$0xf] }
 0x487   :  { %v2524_v59 = vpop.f32.mrf.mxu3  ;;  %4998 = vtanh.f32 %v2693_v16 }
 0x489   :  { %2858 = vmatpush.bf16.msra.mxu1 %v8059_v27  ;;  %2874 = vmatpush.bf16.msrb.mxu3 %v8119_v37 }
 0x48a   :  { %v2509_v55 = vpop.f32.mrf.mxu1 }
 0x48b   :  { %v2510_v52 = vadd.f32 %v2509_v55, %v2497_v44 }
 0x48c   :  { %v2694_v53 = vpop.f32.mrf.mxu2 }
 0x48d   :  { %v2523_v20 = vadd.f32 %v2522_v41, %v2510_v52  ;;  %v4999_v15 = vpop.eup %4998  ;;  %2859 = vmatpush.bf16.msra.mxu1 %v8061_v23  ;;  %2875 = vmatpush.bf16.msrb.mxu3 %v8120_v50  ;;  %v4566_v41 = vld [vmem:[%s7707_s0 + $0x2bc] sm:$0xf0]  ;;  %v4592_v52 = vld [vmem:[%s7707_s0 + $0x2d8] sm:$0xf]  ;;  %v4610_v53 = vld [vmem:[%s7707_s0 + $0x304] sm:$0xf0] }
 0x48e   :  { %v7220_v34 = vpack.c.bf16 %v4999_v15, %v4999_v15  ;;  %v4569_v0 = vor.u32 %v4892_v39, %v4566_v41  ;;  %v4900_v15 = vld [vmem:[%s7707_s0 + $0x2e4] sm:$0xf] }
 0x48f   :  { %v2526_v1 = vpack.c.bf16 %v2523_v20, %v2432_v48  ;;  %v2653_v51 = vpop.f32.mrf.mxu3  ;;  %v4902_v48 = vld [vmem:[%s7707_s0 + $0x2f0] sm:$0xf0] }
 0x490   :  { %v2654_v25 = vadd.f32 %v2653_v51, %v8041_v21  ;;  %2799 = vmatmul.bf16.vlgmr.msrb.gmra.mxu1 %v7220_v34  ;;  %v4593_v20 = vor.u32 %v4902_v48, %v4592_v52  ;;  %v4893_v52 = vld [vmem:[%s7707_s0 + $0x2ac] sm:$0xf]  ;;  %v4574_v48 = vld [vmem:[%s7707_s0 + $0x2c4] sm:$0xf0] }
 0x491   :  { %4463 = vst.msk [vmem:[%s7711_s4 + $0x20] sm:$0xff] %vm6259_vm4, %v2526_v1  ;;  %2860 = vmatpush.bf16.msra.mxu1 %v8063_v14  ;;  %2876 = vmatpush.bf16.msrb.mxu3 %v8121_v17  ;;  %v4564_v1 = vld [vmem:[%s7707_s0 + $0x2a0] sm:$0xf] }
 0x492   :  { %v2511_v42 = vpop.f32.mrf.mxu1  ;;  %5000 = vtanh.f32 %v2654_v25  ;;  %v4565_v41 = vor.u32 %v4895_v3, %v4564_v1 }
 0x493   :  { %v4602_v42 = vld [vmem:[%s7707_s0 + $0x2fc] sm:$0xf0] }
 0x495   :  { %3019 = vmatpush.bf16.msra.mxu3 %v4597_v30  ;;  %2861 = vmatpush.bf16.msra.mxu1 %v8065_v56 }
 0x497   :  { %v2655_v60 = vpop.f32.mrf.mxu3 }
 0x498   :  { %v5001_v55 = vpop.eup %5000  ;;  %v4605_v60 = vor.u32 %v4900_v15, %v4602_v42  ;;  %v4903_v15 = vld [vmem:[%s7707_s0 + $0x2f8] sm:$0xf0] }
 0x499   :  { %v2718_v16 = vpack.c.bf16 %v5001_v55, %v5001_v55  ;;  %3020 = vmatpush.bf16.msra.mxu3 %v4569_v0  ;;  %2862 = vmatpush.bf16.msra.mxu1 %v8067_v61  ;;  %v4894_v55 = vld [vmem:[%s7707_s0 + $0x2b4] sm:$0xf] }
 0x49a   :  { %v2679_v44 = vpop.f32.mrf.mxu1 }
 0x49b   :  { %v2680_v59 = vadd.f32 %v2679_v44, %v8041_v21  ;;  %2760 = vmatmul.bf16.vlgmr.msra.gmra.mxu2 %v2718_v16  ;;  %v4613_v44 = vor.u32 %v4901_v35, %v4610_v53  ;;  %v4600_v53 = vld [vmem:[%s7707_s0 + $0x2e0] sm:$0xf] }
 0x49c   :  { %2830 = vmatpush.bf16.msra.mxu2 %v8054_v7  ;;  %v4601_v42 = vor.u32 %v4903_v15, %v4600_v53  ;;  %v8296_v53 = vld [vmem:[#allocation96_spill] sm:$0xff]  ;;  %v8297_v15 = vld [vmem:[#allocation18_spill] sm:$0xff] }
 0x49d   :  { %5002 = vtanh.f32 %v2680_v59  ;;  %2863 = vmatpush.bf16.msra.mxu1 %v8068_v40  ;;  %v4582_v59 = vld [vmem:[%s7707_s0 + $0x2cc] sm:$0xf0] }
 0x49f   :  { %v2705_v51 = vpop.f32.mrf.mxu3 }
 0x4a0   :  { %v2706_v39 = vadd.f32 %v2705_v51, %v8041_v21  ;;  %2831 = vmatpush.bf16.msra.mxu2 %v8056_v12  ;;  %2864 = vmatmul.bf16.vlgmr.msra.gmra.mxu1 %v7187_v6  ;;  %v4585_v6 = vor.u32 %v4894_v55, %v4582_v59  ;;  %v4572_v51 = vld [vmem:[%s7707_s0 + $0x2a8] sm:$0xf]  ;;  %v8290_v55 = vld [vmem:[#allocation92_spill] sm:$0xff] }
 0x4a1   :  { %3006 = vmatpush.bf16.msrb.mxu1 %v4593_v20  ;;  %v4577_v20 = vor.u32 %v4893_v52, %v4574_v48  ;;  %v4898_v59 = vld [vmem:[%s7707_s0 + $0x2d0] sm:$0xf0]  ;;  %v8291_v52 = vld [vmem:[#allocation10_spill] sm:$0xff] }
 0x4a2   :  { %v2681_v25 = vpop.f32.mrf.mxu1  ;;  %5004 = vtanh.f32 %v2706_v39  ;;  %v4616_v39 = vld [vmem:[%s7707_s0 + $0x2f0] sm:$0xf] }
 0x4a3   :  { %v5003_v30 = vpop.eup %5002  ;;  %v4896_v25 = vld [vmem:[%s7707_s0 + $0x2c0] sm:$0xf0]  ;;  %v8292_v48 = vld [vmem:[#allocation24_spill] sm:$0xff] }
 0x4a4   :  { %v2720_v0 = vpack.c.bf16 %v5003_v30, %v5003_v30  ;;  %2832 = vmatpush.bf16.msra.mxu2 %v8058_v19  ;;  %v4573_v30 = vor.u32 %v4896_v25, %v4572_v51  ;;  %v8299_v51 = vld [vmem:[#allocation97_spill] sm:$0xff]  ;;  %v8301_v25 = vld [vmem:[#allocation44_spill] sm:$0xff] }
 0x4a5   :  { %3007 = vmatpush.bf16.msrb.mxu1 %v4565_v41  ;;  %v4905_v41 = vld [vmem:[%s7707_s0 + $0x308] sm:$0xf0] }
 0x4a6   :  { %2786 = vmatmul.bf16.vlgmr.msra.gmra.mxu0 %v2720_v0  ;;  %2877 = vmatmul.bf16.vlgmr.msrb.gmra.mxu3 %v2720_v0  ;;  %v8288_v0 = vld [vmem:[#allocation7_spill] sm:$0xff] }
 0x4a7   :  { %3071 = vmatpush.bf16.msrb.mxu3 %v4613_v44  ;;  %2902 = vmatpush.bf16.msra.mxu0 %v8118_v5  ;;  %v2707_v1 = vpop.f32.mrf.mxu3  ;;  %v8289_v44 = vld [vmem:[#allocation20_spill] sm:$0xff] }
 0x4a8   :  { %v5005_v3 = vpop.eup %5004  ;;  %2833 = vmatpush.bf16.msra.mxu2 %v8109_v26  ;;  %v8294_v1 = vld [vmem:[#allocation14_spill] sm:$0xff] }
 0x4a9   :  { %3045 = vmatpush.bf16.msra.mxu1 %v4605_v60  ;;  %v2722_v35 = vpack.c.bf16 %v5005_v3, %v5005_v3  ;;  %v4617_v60 = vor.u32 %v4905_v41, %v4616_v39  ;;  %v8295_v3 = vld [vmem:[#allocation36_spill] sm:$0xff]  ;;  %v4904_v39 = vld [vmem:[%s7707_s0 + $0x300] sm:$0xf0] }
 0x4aa   :  { %v8302_v41 = vld [vmem:[#allocation98_spill] sm:$0xff] }
 0x4ab   :  { %3072 = vmatpush.bf16.msrb.mxu3 %v4585_v6  ;;  %4543 = vmatmul.msk.bf16.vlgmr.msrb.gmra.mxu2 %vm810_vm1, %v2722_v35 }
 0x4ac   :  { %2834 = vmatpush.bf16.msra.mxu2 %v8167_v22 }
 0x4ad   :  { %3046 = vmatpush.bf16.msra.mxu1 %v4577_v20  ;;  %v8293_v20 = vld [vmem:[#allocation94_spill] sm:$0xff] }
 0x4b0   :  { %2835 = vmatpush.bf16.msra.mxu2 %v8168_v8  ;;  %4618 = vmatmul.msk.bf16.vlgmr.msrb.gmra.mxu1 %vm211_vm0, %v7120_v36 }
 0x4b1   :  { %3108 = vmatpush.bf16.msrb.mxu1 %v8172_v54 }
 0x4b4   :  { %2836 = vmatpush.bf16.msra.mxu2 %v8169_v28 }
 0x4b5   :  { %3109 = vmatpush.bf16.msrb.mxu1 %v5202_v58 }
 0x4b6   :  { %2851 = vmatmul.bf16.vlgmr.msrb.gmra.mxu0 %v2718_v16  ;;  %4619 = vmatmul.msk.bf16.vlgmr.msra.gmra.mxu3 %vm211_vm0, %v7120_v36  ;;  %v8287_v16 = vld [vmem:[#allocation90_spill] sm:$0xff] }
 0x4b7   :  { %3032 = vmatpush.bf16.msrb.mxu0 %v4601_v42  ;;  %3134 = vmatpush.bf16.msra.mxu3 %v8231_v29  ;;  %v8298_v42 = vld [vmem:[#allocation40_spill] sm:$0xff] }
 0x4b8   :  { %2837 = vmatpush.bf16.msra.mxu2 %v8170_v18 }
 0x4b9   :  { %3110 = vmatpush.bf16.msrb.mxu1 %v8288_v0 }
 0x4bb   :  { %3033 = vmatpush.bf16.msrb.mxu0 %v4573_v30  ;;  %3135 = vmatpush.bf16.msra.mxu3 %v8234_v33  ;;  %v4608_v30 = vld [vmem:[%s7707_s0 + $0x2e8] sm:$0xf] }
 0x4bc   :  { %2882 = vmatpush.bf16.msrb.mxu2 %v8171_v13 }
 0x4bd   :  { %2838 = vmatmul.bf16.vlgmr.msra.gmra.mxu2 %v7195_v32  ;;  %v4588_v32 = vld [vmem:[%s7707_s0 + $0x2b8] sm:$0xf]  ;;  %3111 = vmatpush.bf16.msrb.mxu1 %v8291_v52 }
 0x4be   :  { %v4589_v6 = vor.u32 %v4898_v59, %v4588_v32  ;;  %v4609_v32 = vor.u32 %v4904_v39, %v4608_v30  ;;  %v8304_v59 = vld [vmem:[#allocation28_spill] sm:$0xff]  ;;  %v8308_v30 = vld [vmem:[#allocation99_spill] sm:$0xff] }
 0x4bf   :  { %3136 = vmatpush.bf16.msra.mxu3 %v8289_v44  ;;  %v8313_v44 = vld [vmem:[#allocation11_spill] sm:$0xff] }
 0x4c0   :  { %2883 = vmatpush.bf16.msrb.mxu2 %v8287_v16  ;;  %4621 = vmatmul.msk.bf16.vlgmr.msra.gmra.mxu1 %vm211_vm0, %v7120_v36 }
 0x4c1   :  { %3112 = vmatpush.bf16.msrb.mxu1 %v8294_v1 }
 0x4c3   :  { %3137 = vmatpush.bf16.msra.mxu3 %v8292_v48  ;;  %v8307_v48 = vld [vmem:[#allocation6_spill] sm:$0xff] }
 0x4c4   :  { %2884 = vmatpush.bf16.msrb.mxu2 %v8290_v55 }
 0x4c5   :  { %3113 = vmatpush.bf16.msrb.mxu1 %v8297_v15 }
 0x4c6   :  { %4544 = vmatmul.msk.bf16.vlgmr.msra.gmra.mxu0 %vm810_vm1, %v2722_v35  ;;  %4623 = vmatmul.msk.bf16.vlgmr.msrb.gmra.mxu3 %vm211_vm0, %v7120_v36  ;;  %v8300_v35 = vld [vmem:[#allocation22_spill] sm:$0xff] }
 0x4c7   :  { %3084 = vmatpush.bf16.msra.mxu0 %v4617_v60  ;;  %3138 = vmatpush.bf16.msra.mxu3 %v8295_v3  ;;  %v8303_v60 = vld [vmem:[#allocation27_spill] sm:$0xff] }
 0x4c8   :  { %2885 = vmatpush.bf16.msrb.mxu2 %v8293_v20  ;;  %v8306_v3 = vld [vmem:[#allocation51_spill] sm:$0xff] }
 0x4c9   :  { %3114 = vmatpush.bf16.msrb.mxu1 %v8300_v35 }
 0x4cb   :  { %3085 = vmatpush.bf16.msra.mxu0 %v4589_v6  ;;  %3139 = vmatpush.bf16.msra.mxu3 %v8298_v42  ;;  %v8305_v6 = vld [vmem:[#allocation48_spill] sm:$0xff]  ;;  %v4897_v42 = vld [vmem:[%s7707_s0 + $0x2c8] sm:$0xf0] }
 0x4cc   :  { %2886 = vmatpush.bf16.msrb.mxu2 %v8296_v53 }
 0x4cd   :  { %3115 = vmatpush.bf16.msrb.mxu1 %v8303_v60  ;;  %v8312_v60 = vld [vmem:[#allocation2_spill] sm:$0xff] }
 0x4cf   :  { %3140 = vmatpush.bf16.msra.mxu3 %v8301_v25  ;;  %v4580_v25 = vld [vmem:[%s7707_s0 + $0x2b0] sm:$0xf] }
 0x4d0   :  { %2887 = vmatpush.bf16.msrb.mxu2 %v8299_v51  ;;  %v4581_v39 = vor.u32 %v4897_v42, %v4580_v25  ;;  %v8317_v42 = vld [vmem:[#allocation41_spill] sm:$0xff] }
 0x4d1   :  { %3160 = vmatpush.bf16.msra.mxu1 %v8304_v59  ;;  %v8310_v59 = vld [vmem:[#allocation8_spill] sm:$0xff]  ;;  %v8339_v51 = vld [vmem:[#allocation33_spill] sm:$0xff] }
 0x4d3   :  { %3141 = vmatpush.bf16.msra.mxu3 %v8305_v6  ;;  %v8309_v6 = vld [vmem:[#allocation30_spill] sm:$0xff] }
 0x4d4   :  { %2888 = vmatpush.bf16.msrb.mxu2 %v8302_v41  ;;  %v8311_v41 = vld [vmem:[#allocation32_spill] sm:$0xff] }
 0x4d5   :  { %3161 = vmatpush.bf16.msra.mxu1 %v8309_v6 }
 0x4d6   :  { %4620 = vmatmul.msk.bf16.vlgmr.msrb.gmra.mxu0 %vm211_vm0, %v7120_v36 }
 0x4d7   :  { %3193 = vmatpush.bf16.msrb.mxu3 %v8306_v3  ;;  %3147 = vmatpush.bf16.msrb.mxu0 %v8307_v48  ;;  %v8314_v3 = vld [vmem:[#allocation37_spill] sm:$0xff]  ;;  %v8315_v48 = vld [vmem:[#allocation4_spill] sm:$0xff] }
 0x4d8   :  { %2889 = vmatpush.bf16.msrb.mxu2 %v8308_v30  ;;  %v8316_v30 = vld [vmem:[#allocation15_spill] sm:$0xff] }
 0x4d9   :  { %3162 = vmatpush.bf16.msra.mxu1 %v8311_v41  ;;  %v8331_v41 = vld [vmem:[#allocation46_spill] sm:$0xff] }
 0x4db   :  { %2890 = vmatmul.bf16.vlgmr.msrb.gmra.mxu2 %v7220_v34  ;;  %3148 = vmatpush.bf16.msrb.mxu0 %v8310_v59  ;;  %v8318_v34 = vld [vmem:[#allocation5_spill] sm:$0xff] }
 0x4dc   :  { %3058 = vmatpush.bf16.msra.mxu2 %v4609_v32  ;;  %v8319_v32 = vld [vmem:[#allocation19_spill] sm:$0xff]  ;;  %v8321_v59 = vld [vmem:[#allocation9_spill] sm:$0xff] }
 0x4dd   :  { %3163 = vmatpush.bf16.msra.mxu1 %v8314_v3  ;;  %v8325_v3 = vld [vmem:[#allocation35_spill] sm:$0xff] }
 0x4df   :  { %3149 = vmatpush.bf16.msrb.mxu0 %v8313_v44  ;;  %v8322_v44 = vld [vmem:[#allocation23_spill] sm:$0xff] }
 0x4e0   :  { %3059 = vmatpush.bf16.msra.mxu2 %v4581_v39  ;;  %v8320_v39 = vld [vmem:[#allocation45_spill] sm:$0xff] }
 0x4e1   :  { %3164 = vmatpush.bf16.msra.mxu1 %v8317_v42  ;;  %v2735_v25 = vpop.f32.mrf.mxu0  ;;  %v8324_v42 = vld [vmem:[#allocation13_spill] sm:$0xff] }
 0x4e3   :  { %3150 = vmatpush.bf16.msrb.mxu0 %v8316_v30  ;;  %v8323_v30 = vld [vmem:[#allocation49_spill] sm:$0xff] }
 0x4e4   :  { %3121 = vmatpush.bf16.msrb.mxu2 %v8312_v60  ;;  %v8327_v60 = vld [vmem:[#allocation17_spill] sm:$0xff] }
 0x4e5   :  { %3165 = vmatpush.bf16.msra.mxu1 %v8320_v39  ;;  %v8329_v39 = vld [vmem:[#allocation42_spill] sm:$0xff] }
 0x4e6   :  { %4624 = vmatmul.msk.bf16.vlgmr.msra.gmra.mxu0 %vm211_vm0, %v7120_v36 }
 0x4e7   :  { %3151 = vmatpush.bf16.msrb.mxu0 %v8319_v32  ;;  %v8328_v32 = vld [vmem:[#allocation39_spill] sm:$0xff] }
 0x4e8   :  { %3122 = vmatpush.bf16.msrb.mxu2 %v8315_v48 }
 0x4e9   :  { %3166 = vmatpush.bf16.msra.mxu1 %v8323_v30  ;;  %v2737_v48 = vpop.f32.mrf.mxu0  ;;  %v8333_v30 = vld [vmem:[#allocation26_spill] sm:$0xff] }
 0x4eb   :  { %4622 = vmatmul.msk.bf16.vlgmr.msra.gmra.mxu2 %vm211_vm0, %v7120_v36  ;;  %3152 = vmatpush.bf16.msrb.mxu0 %v8322_v44  ;;  %v8332_v44 = vld [vmem:[#allocation25_spill] sm:$0xff] }
 0x4ec   :  { %3123 = vmatpush.bf16.msrb.mxu2 %v8318_v34  ;;  %v8326_v34 = vld [vmem:[#allocation52_spill] sm:$0xff] }
 0x4ed   :  { %3167 = vmatpush.bf16.msra.mxu1 %v8326_v34  ;;  %v8336_v34 = vld [vmem:[#allocation53_spill] sm:$0xff] }
 0x4ef   :  { %3153 = vmatpush.bf16.msrb.mxu0 %v8325_v3  ;;  %v8335_v3 = vld [vmem:[#allocation29_spill] sm:$0xff] }
 0x4f0   :  { %3124 = vmatpush.bf16.msrb.mxu2 %v8321_v59  ;;  %v8330_v59 = vld [vmem:[#allocation21_spill] sm:$0xff] }
 0x4f3   :  { %3154 = vmatpush.bf16.msrb.mxu0 %v8328_v32  ;;  %v8337_v32 = vld [vmem:[#allocation31_spill] sm:$0xff] }
 0x4f4   :  { %3125 = vmatpush.bf16.msrb.mxu2 %v8324_v42  ;;  %v8334_v42 = vld [vmem:[#allocation50_spill] sm:$0xff] }
 0x4f7   :  { %3199 = vmatpush.bf16.msra.mxu0 %v8329_v39  ;;  %v2774_v48 = vpop.f32.mrf.mxu3  ;;  %v8338_v39 = vld [vmem:[#allocation54_spill] sm:$0xff] }
 0x4f8   :  { %3126 = vmatpush.bf16.msrb.mxu2 %v8327_v60 }
 0x4fb   :  { %3200 = vmatpush.bf16.msra.mxu0 %v8331_v41  ;;  %v8340_v41 = vld [vmem:[#allocation55_spill] sm:$0xff] }
 0x4fc   :  { %3127 = vmatpush.bf16.msrb.mxu2 %v8330_v59 }
 0x4fd   :  { %v2748_v60 = vpop.f32.mrf.mxu1 }
 0x4fe   :  { %v2749_v6 = vadd.f32 %v2748_v60, %v2735_v25  ;;  %v8345_v25 = vld [vmem:[#allocation43_spill] sm:$0xff] }
 0x4ff   :  { %3201 = vmatpush.bf16.msra.mxu0 %v8334_v42  ;;  %v2776_v59 = vpop.f32.mrf.mxu3  ;;  %v8342_v42 = vld [vmem:[#allocation56_spill] sm:$0xff] }
 0x500   :  { %3128 = vmatpush.bf16.msrb.mxu2 %v8332_v44 }
 0x503   :  { %3202 = vmatpush.bf16.msra.mxu0 %v8336_v34  ;;  %v8344_v34 = vld [vmem:[#allocation58_spill] sm:$0xff] }
 0x504   :  { %3173 = vmatpush.bf16.msra.mxu2 %v8333_v30  ;;  %v8341_v30 = vld [vmem:[#allocation34_spill] sm:$0xff] }
 0x505   :  { %v2750_v44 = vpop.f32.mrf.mxu1 }
 0x507   :  { %3203 = vmatpush.bf16.msra.mxu0 %v8338_v39  ;;  %v2826_v35 = vpop.f32.mrf.mxu3  ;;  %v8346_v39 = vld [vmem:[#allocation47_spill] sm:$0xff] }
 0x508   :  { %3174 = vmatpush.bf16.msra.mxu2 %v8335_v3  ;;  %v8343_v3 = vld [vmem:[#allocation38_spill] sm:$0xff] }
 0x50b   :  { %3204 = vmatpush.bf16.msra.mxu0 %v8340_v41 }
 0x50c   :  { %3175 = vmatpush.bf16.msra.mxu2 %v8337_v32 }
 0x50d   :  { %v2800_v60 = vpop.f32.mrf.mxu1 }
 0x50f   :  { %3205 = vmatpush.bf16.msra.mxu0 %v8342_v42  ;;  %v2828_v32 = vpop.f32.mrf.mxu3 }
 0x510   :  { %3176 = vmatpush.bf16.msra.mxu2 %v8339_v51 }
 0x513   :  { %3206 = vmatpush.bf16.msra.mxu0 %v8344_v34 }
 0x514   :  { %3177 = vmatpush.bf16.msra.mxu2 %v8341_v30 }
 0x515   :  { %v2802_v59 = vpop.f32.mrf.mxu1 }
 0x518   :  { %3178 = vmatpush.bf16.msra.mxu2 %v8343_v3 }
 0x51c   :  { %3179 = vmatpush.bf16.msra.mxu2 %v8345_v25 }
 0x51d   :  { %v7403_v41 = vpop.f32.mrf.mxu1 }
 0x51e   :  { %v2761_v51 = vpop.f32.mrf.mxu2 }
 0x51f   :  { %v2762_v33 = vadd.f32 %v2761_v51, %v2749_v6 }
 0x520   :  { %3180 = vmatpush.bf16.msra.mxu2 %v8346_v39 }
 0x521   :  { %v2775_v30 = vadd.f32 %v2774_v48, %v2762_v33 }
 0x523   :  { %v2787_v44 = vpop.f32.mrf.mxu0 }
 0x524   :  { %v2788_v53 = vadd.f32 %v2787_v44, %v2775_v30 }
 0x525   :  { %v2867_v34 = vpop.f32.mrf.mxu1 }
 0x526   :  { %v7405_v42 = vadd.f32 %v2800_v60, %v2788_v53  ;;  %v2763_v3 = vpop.f32.mrf.mxu2 }
 0x529   :  { %v7407_v15 = vpop.f32.mrf.mxu3 }
 0x52b   :  { %v2789_v29 = vpop.f32.mrf.mxu0 }
 0x52d   :  { %v3009_v32 = vpop.f32.mrf.mxu1 }
 0x52e   :  { %v7409_v25 = vpop.f32.mrf.mxu2  ;;  %v3010_v59 = vadd.f32 %v3009_v32, %v8041_v21 }
 0x530   :  { %5006 = vtanh.f32 %v3010_v59 }
 0x531   :  { %v2880_v20 = vpop.f32.mrf.mxu3 }
 0x533   :  { %v2852_v39 = vpop.f32.mrf.mxu0 }
 0x535   :  { %v3011_v30 = vpop.f32.mrf.mxu1 }
 0x536   :  { %v2815_v6 = vpop.f32.mrf.mxu2  ;;  %v5007_v53 = vpop.eup %5006 }
 0x537   :  { %v3098_v60 = vpack.c.bf16 %v5007_v53, %v5007_v53 }
 0x539   :  { %v3022_v51 = vpop.f32.mrf.mxu3  ;;  %3116 = vmatmul.bf16.vlgmr.msrb.gmra.mxu1 %v3098_v60 }
 0x53a   :  { %v3023_v33 = vadd.f32 %v3022_v51, %v8041_v21  ;;  %3225 = vmatpush.bf16.msrb.mxu1 %v8042_v9 }
 0x53b   :  { %v2854_v48 = vpop.f32.mrf.mxu0 }
 0x53c   :  { %5008 = vtanh.f32 %v3023_v33 }
 0x53d   :  { %v3048_v34 = vpop.f32.mrf.mxu1 }
 0x53e   :  { %v3049_v59 = vadd.f32 %v3048_v34, %v8041_v21  ;;  %3226 = vmatpush.bf16.msrb.mxu1 %v8043_v62 }
 0x540   :  { %v2839_v20 = vpop.f32.mrf.mxu2  ;;  %5010 = vtanh.f32 %v3049_v59 }
 0x541   :  { %v3024_v29 = vpop.f32.mrf.mxu3 }
 0x542   :  { %v5009_v3 = vpop.eup %5008  ;;  %3227 = vmatpush.bf16.msrb.mxu1 %v8044_v46 }
 0x543   :  { %v7414_v44 = vpack.c.bf16 %v5009_v3, %v5009_v3  ;;  %v2904_v32 = vpop.f32.mrf.mxu0  ;;  %v2840_v3 = vadd.f32 %v2839_v20, %v2826_v35 }
 0x545   :  { %3129 = vmatmul.bf16.vlgmr.msrb.gmra.mxu2 %v7414_v44  ;;  %v3050_v30 = vpop.f32.mrf.mxu1 }
 0x546   :  { %3238 = vmatpush.bf16.msrb.mxu2 %v8055_v38  ;;  %v5011_v53 = vpop.eup %5010  ;;  %3228 = vmatpush.bf16.msrb.mxu1 %v8047_v2  ;;  %v2853_v30 = vadd.f32 %v2852_v39, %v2840_v3  ;;  %v4674_v39 = vld [vmem:[%s7707_s0 + $0x348] sm:$0xf] }
 0x547   :  { %v3101_v29 = vpack.c.bf16 %v5011_v53, %v5011_v53 }
 0x548   :  { %v2841_v6 = vpop.f32.mrf.mxu2  ;;  %v2866_v35 = vadd.f32 %v7403_v41, %v2853_v30  ;;  %v2814_v30 = vadd.f32 %v7409_v25, %v7405_v42  ;;  %v4907_v25 = vld [vmem:[%s7707_s0 + $0x31c] sm:$0xf] }
 0x549   :  { %v3074_v51 = vpop.f32.mrf.mxu3  ;;  %3155 = vmatmul.bf16.vlgmr.msrb.gmra.mxu0 %v3101_v29 }
 0x54a   :  { %v3075_v33 = vadd.f32 %v3074_v51, %v8041_v21  ;;  %3239 = vmatpush.bf16.msrb.mxu2 %v8057_v11  ;;  %3251 = vmatpush.bf16.msrb.mxu0 %v8107_v24  ;;  %v2879_v41 = vadd.f32 %v7407_v15, %v2866_v35  ;;  %v4909_v15 = vld [vmem:[%s7707_s0 + $0x328] sm:$0xf0]  ;;  %v4914_v35 = vld [vmem:[%s7707_s0 + $0x354] sm:$0xf] }
 0x54b   :  { %v2906_v48 = vpop.f32.mrf.mxu0  ;;  %3229 = vmatpush.bf16.msrb.mxu1 %v8108_v57 }
 0x54c   :  { %5012 = vtanh.f32 %v3075_v33  ;;  %v4916_v48 = vld [vmem:[%s7707_s0 + $0x360] sm:$0xf0] }
 0x54e   :  { %3240 = vmatpush.bf16.msrb.mxu2 %v8059_v27  ;;  %3252 = vmatpush.bf16.msrb.mxu0 %v8110_v43 }
 0x54f   :  { %3230 = vmatpush.bf16.msrb.mxu1 %v8111_v47 }
 0x551   :  { %v3076_v34 = vpop.f32.mrf.mxu3 }
 0x552   :  { %v5013_v59 = vpop.eup %5012  ;;  %3241 = vmatpush.bf16.msrb.mxu2 %v8061_v23  ;;  %3253 = vmatpush.bf16.msrb.mxu0 %v8113_v63 }
 0x553   :  { %v7428_v51 = vpack.c.bf16 %v5013_v59, %v5013_v59  ;;  %v3035_v6 = vpop.f32.mrf.mxu0  ;;  %3231 = vmatpush.bf16.msrb.mxu1 %v8114_v45 }
 0x554   :  { %v3036_v33 = vadd.f32 %v3035_v6, %v8041_v21  ;;  %v4675_v6 = vor.u32 %v4916_v48, %v4674_v39 }
 0x555   :  { %3181 = vmatmul.bf16.vlgmr.msra.gmra.mxu2 %v7428_v51 }
 0x556   :  { %5014 = vtanh.f32 %v3036_v33  ;;  %3242 = vmatpush.bf16.msrb.mxu2 %v8063_v14  ;;  %3254 = vmatpush.bf16.msrb.mxu0 %v8115_v31  ;;  %v4646_v33 = vld [vmem:[%s7707_s0 + $0x310] sm:$0xf] }
 0x557   :  { %3232 = vmatpush.bf16.msrb.mxu1 %v8116_v4  ;;  %v4647_v48 = vor.u32 %v4909_v15, %v4646_v33  ;;  %v4906_v15 = vld [vmem:[%s7707_s0 + $0x314] sm:$0xf] }
 0x559   :  { %3207 = vmatmul.bf16.vlgmr.msra.gmra.mxu0 %v3098_v60 }
 0x55a   :  { %3243 = vmatpush.bf16.msrb.mxu2 %v8065_v56  ;;  %3255 = vmatpush.bf16.msrb.mxu0 %v8117_v10 }
 0x55b   :  { %v3037_v20 = vpop.f32.mrf.mxu0 }
 0x55c   :  { %v5015_v53 = vpop.eup %5014  ;;  %v4684_v20 = vld [vmem:[%s7707_s0 + $0x36c] sm:$0xf0] }
 0x55d   :  { %v7447_v3 = vpack.c.bf16 %v5015_v53, %v5015_v53  ;;  %v4687_v42 = vor.u32 %v4914_v35, %v4684_v20 }
 0x55e   :  { %3244 = vmatpush.bf16.msrb.mxu2 %v8067_v61  ;;  %v2891_v34 = vpop.f32.mrf.mxu2  ;;  %3256 = vmatpush.bf16.msrb.mxu0 %v8119_v37 }
 0x55f   :  { %v2892_v59 = vadd.f32 %v2891_v34, %v2879_v41  ;;  %3142 = vmatmul.bf16.vlgmr.msra.gmra.mxu3 %v7447_v3 }
 0x560   :  { %3212 = vmatpush.bf16.msra.mxu3 %v8054_v7 }
 0x561   :  { %v2905_v60 = vadd.f32 %v2904_v32, %v2892_v59  ;;  %v4656_v32 = vld [vmem:[%s7707_s0 + $0x334] sm:$0xf0]  ;;  %v4913_v59 = vld [vmem:[%s7707_s0 + $0x34c] sm:$0xf] }
 0x562   :  { %3245 = vmatpush.bf16.msrb.mxu2 %v8068_v40  ;;  %3257 = vmatpush.bf16.msrb.mxu0 %v8120_v50 }
 0x563   :  { %v2908_v53 = vpack.c.bf16 %v2905_v60, %v2814_v30  ;;  %v3087_v39 = vpop.f32.mrf.mxu0  ;;  %v4648_v30 = vld [vmem:[%s7707_s0 + $0x32c] sm:$0xf0] }
 0x564   :  { %v3088_v41 = vadd.f32 %v3087_v39, %v8041_v21  ;;  %3213 = vmatpush.bf16.msra.mxu3 %v8056_v12 }
 0x565   :  { %4545 = vst.msk [vmem:[%s7711_s4 + $0x28] sm:$0xff] %vm6259_vm4, %v2908_v53  ;;  %3246 = vmatmul.bf16.vlgmr.msrb.gmra.mxu2 %v3101_v29  ;;  %v4659_v29 = vor.u32 %v4907_v25, %v4656_v32  ;;  %v4651_v53 = vor.u32 %v4906_v15, %v4648_v30  ;;  %v4917_v15 = vld [vmem:[%s7707_s0 + $0x368] sm:$0xf0]  ;;  %v8347_v30 = vld [vmem:[#allocation94_spill] sm:$0xff] }
 0x566   :  { %3388 = vmatpush.bf16.msra.mxu2 %v4675_v6  ;;  %5016 = vtanh.f32 %v3088_v41  ;;  %v2893_v34 = vpop.f32.mrf.mxu2  ;;  %v4676_v6 = vld [vmem:[%s7707_s0 + $0x364] sm:$0xf0]  ;;  %3258 = vmatpush.bf16.msrb.mxu0 %v8121_v17  ;;  %v4915_v41 = vld [vmem:[%s7707_s0 + $0x35c] sm:$0xf] }
 0x567   :  { %v4679_v33 = vor.u32 %v4913_v59, %v4676_v6  ;;  %v4908_v6 = vld [vmem:[%s7707_s0 + $0x324] sm:$0xf] }
 0x568   :  { %3214 = vmatpush.bf16.msra.mxu3 %v8058_v19 }
 0x56a   :  { %3389 = vmatpush.bf16.msra.mxu2 %v4647_v48  ;;  %3401 = vmatpush.bf16.msra.mxu0 %v4679_v33 }
 0x56b   :  { %v3089_v60 = vpop.f32.mrf.mxu0 }
 0x56c   :  { %v5017_v35 = vpop.eup %5016  ;;  %3215 = vmatpush.bf16.msra.mxu3 %v8109_v26  ;;  %v8348_v60 = vld [vmem:[#allocation12_spill] sm:$0xff] }
 0x56d   :  { %v7499_v20 = vpack.c.bf16 %v5017_v35, %v5017_v35  ;;  %v8349_v35 = vld [vmem:[#allocation18_spill] sm:$0xff] }
 0x56e   :  { %3427 = vmatpush.bf16.msrb.mxu2 %v4687_v42  ;;  %v3061_v39 = vpop.f32.mrf.mxu2  ;;  %3402 = vmatpush.bf16.msra.mxu0 %v4651_v53  ;;  %v4692_v42 = vld [vmem:[%s7707_s0 + $0x374] sm:$0xf0]  ;;  %v8350_v53 = vld [vmem:[#allocation96_spill] sm:$0xff] }
 0x56f   :  { %v3062_v48 = vadd.f32 %v3061_v39, %v8041_v21  ;;  %4625 = vmatmul.msk.bf16.vlgmr.msrb.gmra.mxu3 %vm810_vm1, %v7499_v20  ;;  %v4695_v34 = vor.u32 %v4915_v41, %v4692_v42  ;;  %v8351_v39 = vld [vmem:[#allocation16_spill] sm:$0xff]  ;;  %v4698_v42 = vld [vmem:[%s7707_s0 + $0x360] sm:$0xf] }
 0x570   :  { %3216 = vmatpush.bf16.msra.mxu3 %v8167_v22  ;;  %v4918_v41 = vld [vmem:[%s7707_s0 + $0x370] sm:$0xf0] }
 0x571   :  { %5018 = vtanh.f32 %v3062_v48  ;;  %v8352_v48 = vld [vmem:[#allocation22_spill] sm:$0xff] }
 0x572   :  { %3428 = vmatpush.bf16.msrb.mxu2 %v4659_v29  ;;  %v4664_v29 = vld [vmem:[%s7707_s0 + $0x33c] sm:$0xf0] }
 0x573   :  { %v4667_v33 = vor.u32 %v4908_v6, %v4664_v29  ;;  %v4662_v29 = vld [vmem:[%s7707_s0 + $0x320] sm:$0xf] }
 0x574   :  { %3217 = vmatpush.bf16.msra.mxu3 %v8168_v8 }
 0x575   :  { %4700 = vmatmul.msk.bf16.vlgmr.msra.gmra.mxu2 %vm211_vm0, %v7120_v36 }
 0x576   :  { %v3063_v25 = vpop.f32.mrf.mxu2  ;;  %3490 = vmatpush.bf16.msra.mxu2 %v8172_v54  ;;  %v4682_v54 = vld [vmem:[%s7707_s0 + $0x350] sm:$0xf] }
 0x577   :  { %v5019_v32 = vpop.eup %5018  ;;  %v4919_v25 = vld [vmem:[%s7707_s0 + $0x378] sm:$0xf0] }
 0x578   :  { %v3102_v59 = vpack.c.bf16 %v5019_v32, %v5019_v32  ;;  %3218 = vmatpush.bf16.msra.mxu3 %v8169_v28  ;;  %v8355_v32 = vld [vmem:[#allocation27_spill] sm:$0xff] }
 0x57a   :  { %3168 = vmatmul.bf16.vlgmr.msra.gmra.mxu1 %v3102_v59  ;;  %3259 = vmatmul.bf16.vlgmr.msrb.gmra.mxu0 %v3102_v59  ;;  %v8357_v59 = vld [vmem:[#allocation28_spill] sm:$0xff] }
 0x57b   :  { %3453 = vmatpush.bf16.msrb.mxu0 %v4695_v34  ;;  %3284 = vmatpush.bf16.msra.mxu1 %v8118_v5  ;;  %v8356_v34 = vld [vmem:[#allocation98_spill] sm:$0xff] }
 0x57c   :  { %3219 = vmatpush.bf16.msra.mxu3 %v8170_v18  ;;  %3491 = vmatpush.bf16.msra.mxu2 %v5202_v58  ;;  %v4683_v58 = vor.u32 %v4917_v15, %v4682_v54  ;;  %v8358_v54 = vld [vmem:[#allocation24_spill] sm:$0xff]  ;;  %v4911_v15 = vld [vmem:[%s7707_s0 + $0x338] sm:$0xf0] }
 0x57f   :  { %3220 = vmatmul.bf16.vlgmr.msra.gmra.mxu3 %v7414_v44  ;;  %3454 = vmatpush.bf16.msrb.mxu0 %v4667_v33  ;;  %v4910_v44 = vld [vmem:[%s7707_s0 + $0x330] sm:$0xf0]  ;;  %v4699_v33 = vor.u32 %v4919_v25, %v4698_v42 }
 0x580   :  { %3264 = vmatpush.bf16.msrb.mxu3 %v8171_v13  ;;  %3492 = vmatpush.bf16.msra.mxu2 %v8288_v0  ;;  %v4654_v0 = vld [vmem:[%s7707_s0 + $0x318] sm:$0xf]  ;;  %v8366_v42 = vld [vmem:[#allocation4_spill] sm:$0xff] }
 0x581   :  { %v8367_v25 = vld [vmem:[#allocation44_spill] sm:$0xff] }
 0x584   :  { %3265 = vmatpush.bf16.msrb.mxu3 %v8287_v16  ;;  %3493 = vmatpush.bf16.msra.mxu2 %v8291_v52  ;;  %v4655_v52 = vor.u32 %v4910_v44, %v4654_v0  ;;  %v4912_v0 = vld [vmem:[%s7707_s0 + $0x340] sm:$0xf0]  ;;  %v8359_v44 = vld [vmem:[#allocation99_spill] sm:$0xff] }
 0x585   :  { %4703 = vmatmul.msk.bf16.vlgmr.msrb.gmra.mxu2 %vm211_vm0, %v7120_v36 }
 0x588   :  { %3266 = vmatpush.bf16.msrb.mxu3 %v8290_v55  ;;  %3494 = vmatpush.bf16.msra.mxu2 %v8294_v1  ;;  %v8353_v1 = vld [vmem:[#allocation97_spill] sm:$0xff] }
 0x58a   :  { %3233 = vmatmul.bf16.vlgmr.msrb.gmra.mxu1 %v7447_v3  ;;  %4701 = vmatmul.msk.bf16.vlgmr.msra.gmra.mxu0 %vm211_vm0, %v7120_v36  ;;  %v4690_v3 = vld [vmem:[%s7707_s0 + $0x358] sm:$0xf]  ;;  %v8354_v36 = vld [vmem:[#allocation20_spill] sm:$0xff] }
 0x58b   :  { %3414 = vmatpush.bf16.msrb.mxu1 %v4683_v58  ;;  %3516 = vmatpush.bf16.msra.mxu0 %v8348_v60  ;;  %v4691_v6 = vor.u32 %v4918_v41, %v4690_v3  ;;  %v4670_v58 = vld [vmem:[%s7707_s0 + $0x328] sm:$0xf]  ;;  %v5037_v60 = vld [vmem:[%s7708_s1] sm:$0xf]  ;;  %v8362_v3 = vld [vmem:[#allocation32_spill] sm:$0xff] }
 0x58c   :  { %3267 = vmatpush.bf16.msrb.mxu3 %v8347_v30  ;;  %3495 = vmatpush.bf16.msra.mxu2 %v8349_v35  ;;  %v4663_v35 = vor.u32 %v4911_v15, %v4662_v29  ;;  %v8365_v41 = vld [vmem:[#allocation37_spill] sm:$0xff]  ;;  %v8372_v29 = vld [vmem:[#allocation51_spill] sm:$0xff] }
 0x58d   :  { %v8375_v15 = vld [vmem:[#allocation49_spill] sm:$0xff] }
 0x58f   :  { %3415 = vmatpush.bf16.msrb.mxu1 %v4655_v52  ;;  %3517 = vmatpush.bf16.msra.mxu0 %v8351_v39  ;;  %v8360_v52 = vld [vmem:[#allocation30_spill] sm:$0xff]  ;;  %v4671_v39 = vor.u32 %v4912_v0, %v4670_v58  ;;  %v8376_v58 = vld [vmem:[#allocation8_spill] sm:$0xff]  ;;  %v8377_v0 = vld [vmem:[#allocation13_spill] sm:$0xff] }
 0x590   :  { %3268 = vmatpush.bf16.msrb.mxu3 %v8350_v53  ;;  %3496 = vmatpush.bf16.msra.mxu2 %v8352_v48  ;;  %v8361_v48 = vld [vmem:[#allocation36_spill] sm:$0xff] }
 0x593   :  { %3518 = vmatpush.bf16.msra.mxu0 %v8354_v36  ;;  %v8363_v36 = vld [vmem:[#allocation2_spill] sm:$0xff] }
 0x594   :  { %3269 = vmatpush.bf16.msrb.mxu3 %v8353_v1  ;;  %3497 = vmatpush.bf16.msra.mxu2 %v8355_v32  ;;  %v8368_v32 = vld [vmem:[#allocation41_spill] sm:$0xff] }
 0x597   :  { %3519 = vmatpush.bf16.msra.mxu0 %v8358_v54  ;;  %v8374_v54 = vld [vmem:[#allocation9_spill] sm:$0xff] }
 0x598   :  { %3270 = vmatpush.bf16.msrb.mxu3 %v8356_v34  ;;  %3542 = vmatpush.bf16.msrb.mxu2 %v8357_v59  ;;  %v8369_v59 = vld [vmem:[#allocation5_spill] sm:$0xff] }
 0x59a   :  { %4626 = vmatmul.msk.bf16.vlgmr.msra.gmra.mxu1 %vm810_vm1, %v7499_v20  ;;  %4705 = vmatmul.msk.bf16.vlgmr.msrb.gmra.mxu0 %vm211_vm0, %v5037_v60  ;;  %v8364_v20 = vld [vmem:[#allocation40_spill] sm:$0xff] }
 0x59b   :  { %3466 = vmatpush.bf16.msra.mxu1 %v4699_v33  ;;  %3520 = vmatpush.bf16.msra.mxu0 %v8361_v48  ;;  %v8373_v33 = vld [vmem:[#allocation6_spill] sm:$0xff]  ;;  %v8381_v48 = vld [vmem:[#allocation15_spill] sm:$0xff] }
 0x59c   :  { %3271 = vmatpush.bf16.msrb.mxu3 %v8359_v44  ;;  %3543 = vmatpush.bf16.msrb.mxu2 %v8360_v52  ;;  %v8378_v52 = vld [vmem:[#allocation52_spill] sm:$0xff] }
 0x59f   :  { %3272 = vmatmul.bf16.vlgmr.msrb.gmra.mxu3 %v7428_v51  ;;  %3467 = vmatpush.bf16.msra.mxu1 %v4671_v39  ;;  %v8370_v51 = vld [vmem:[#allocation48_spill] sm:$0xff]  ;;  %v8380_v39 = vld [vmem:[#allocation17_spill] sm:$0xff] }
 0x5a0   :  { %3440 = vmatpush.bf16.msra.mxu3 %v4691_v6  ;;  %3544 = vmatpush.bf16.msrb.mxu2 %v8362_v3  ;;  %v8371_v6 = vld [vmem:[#allocation45_spill] sm:$0xff] }
 0x5a1   :  { %3521 = vmatpush.bf16.msra.mxu0 %v8364_v20  ;;  %v8382_v3 = vld [vmem:[#allocation21_spill] sm:$0xff]  ;;  %v8383_v20 = vld [vmem:[#allocation19_spill] sm:$0xff] }
 0x5a4   :  { %3441 = vmatpush.bf16.msra.mxu3 %v4663_v35  ;;  %3545 = vmatpush.bf16.msrb.mxu2 %v8365_v41  ;;  %v8379_v35 = vld [vmem:[#allocation11_spill] sm:$0xff]  ;;  %v8384_v41 = vld [vmem:[#allocation25_spill] sm:$0xff] }
 0x5a5   :  { %3522 = vmatpush.bf16.msra.mxu0 %v8367_v25  ;;  %v8386_v25 = vld [vmem:[#allocation23_spill] sm:$0xff] }
 0x5a8   :  { %3503 = vmatpush.bf16.msrb.mxu3 %v8363_v36  ;;  %3546 = vmatpush.bf16.msrb.mxu2 %v8368_v32  ;;  %v8387_v32 = vld [vmem:[#allocation29_spill] sm:$0xff] }
 0x5a9   :  { %3523 = vmatpush.bf16.msra.mxu0 %v8370_v51  ;;  %v8388_v51 = vld [vmem:[#allocation35_spill] sm:$0xff] }
 0x5aa   :  { %4702 = vmatmul.msk.bf16.vlgmr.msrb.gmra.mxu1 %vm211_vm0, %v5037_v60 }
 0x5ab   :  { %3529 = vmatpush.bf16.msrb.mxu1 %v8373_v33 }
 0x5ac   :  { %3504 = vmatpush.bf16.msrb.mxu3 %v8366_v42  ;;  %3547 = vmatpush.bf16.msrb.mxu2 %v8371_v6  ;;  %v8385_v42 = vld [vmem:[#allocation26_spill] sm:$0xff]  ;;  %v8389_v6 = vld [vmem:[#allocation31_spill] sm:$0xff] }
 0x5ad   :  { %3575 = vmatpush.bf16.msrb.mxu0 %v8372_v29  ;;  %v8390_v29 = vld [vmem:[#allocation39_spill] sm:$0xff] }
 0x5af   :  { %4704 = vmatmul.msk.bf16.vlgmr.msra.gmra.mxu3 %vm211_vm0, %v5037_v60  ;;  %3530 = vmatpush.bf16.msrb.mxu1 %v8376_v58 }
 0x5b0   :  { %3505 = vmatpush.bf16.msrb.mxu3 %v8369_v59  ;;  %3548 = vmatpush.bf16.msrb.mxu2 %v8375_v15  ;;  %v8392_v15 = vld [vmem:[#allocation33_spill] sm:$0xff] }
 0x5b3   :  { %3531 = vmatpush.bf16.msrb.mxu1 %v8379_v35 }
 0x5b4   :  { %3506 = vmatpush.bf16.msrb.mxu3 %v8374_v54  ;;  %3549 = vmatpush.bf16.msrb.mxu2 %v8378_v52  ;;  %v8394_v52 = vld [vmem:[#allocation34_spill] sm:$0xff] }
 0x5b6   :  { %v3117_v36 = vpop.f32.mrf.mxu1 }
 0x5b7   :  { %3532 = vmatpush.bf16.msrb.mxu1 %v8381_v48  ;;  %v8396_v48 = vld [vmem:[#allocation38_spill] sm:$0xff] }
 0x5b8   :  { %3507 = vmatpush.bf16.msrb.mxu3 %v8377_v0  ;;  %v8393_v0 = vld [vmem:[#allocation46_spill] sm:$0xff] }
 0x5ba   :  { %4706 = vmatmul.msk.bf16.vlgmr.msra.gmra.mxu1 %vm211_vm0, %v5037_v60  ;;  %v8391_v60 = vld [vmem:[#allocation42_spill] sm:$0xff] }
 0x5bb   :  { %3533 = vmatpush.bf16.msrb.mxu1 %v8383_v20  ;;  %v8397_v20 = vld [vmem:[#allocation53_spill] sm:$0xff] }
 0x5bc   :  { %3508 = vmatpush.bf16.msrb.mxu3 %v8380_v39  ;;  %v8395_v39 = vld [vmem:[#allocation50_spill] sm:$0xff] }
 0x5be   :  { %v3119_v59 = vpop.f32.mrf.mxu1 }
 0x5bf   :  { %3534 = vmatpush.bf16.msrb.mxu1 %v8386_v25  ;;  %v8399_v25 = vld [vmem:[#allocation54_spill] sm:$0xff]  ;;  %v8401_v59 = vld [vmem:[#allocation55_spill] sm:$0xff] }
 0x5c0   :  { %3509 = vmatpush.bf16.msrb.mxu3 %v8382_v3 }
 0x5c3   :  { %3535 = vmatpush.bf16.msrb.mxu1 %v8388_v51 }
 0x5c4   :  { %3510 = vmatpush.bf16.msrb.mxu3 %v8384_v41  ;;  %v8398_v41 = vld [vmem:[#allocation43_spill] sm:$0xff] }
 0x5c6   :  { %v3156_v58 = vpop.f32.mrf.mxu0 }
 0x5c7   :  { %3536 = vmatpush.bf16.msrb.mxu1 %v8390_v29 }
 0x5c8   :  { %3555 = vmatpush.bf16.msra.mxu3 %v8385_v42  ;;  %v3130_v33 = vpop.f32.mrf.mxu2 }
 0x5c9   :  { %v3131_v54 = vadd.f32 %v3130_v33, %v3117_v36  ;;  %v8400_v36 = vld [vmem:[#allocation47_spill] sm:$0xff] }
 0x5cb   :  { %3581 = vmatpush.bf16.msra.mxu1 %v8391_v60 }
 0x5cc   :  { %3556 = vmatpush.bf16.msra.mxu3 %v8387_v32 }
 0x5ce   :  { %v3158_v3 = vpop.f32.mrf.mxu0 }
 0x5cf   :  { %3582 = vmatpush.bf16.msra.mxu1 %v8393_v0 }
 0x5d0   :  { %3557 = vmatpush.bf16.msra.mxu3 %v8389_v6  ;;  %v3132_v35 = vpop.f32.mrf.mxu2  ;;  %v8402_v6 = vld [vmem:[#allocation56_spill] sm:$0xff] }
 0x5d3   :  { %3583 = vmatpush.bf16.msra.mxu1 %v8395_v39 }
 0x5d4   :  { %3558 = vmatpush.bf16.msra.mxu3 %v8392_v15  ;;  %v8403_v15 = vld [vmem:[#allocation58_spill] sm:$0xff] }
 0x5d6   :  { %v3208_v32 = vpop.f32.mrf.mxu0 }
 0x5d7   :  { %3584 = vmatpush.bf16.msra.mxu1 %v8397_v20 }
 0x5d8   :  { %3559 = vmatpush.bf16.msra.mxu3 %v8394_v52  ;;  %v3182_v42 = vpop.f32.mrf.mxu2 }
 0x5db   :  { %3585 = vmatpush.bf16.msra.mxu1 %v8399_v25 }
 0x5dc   :  { %3560 = vmatpush.bf16.msra.mxu3 %v8396_v48 }
 0x5de   :  { %v3210_v60 = vpop.f32.mrf.mxu0 }
 0x5df   :  { %3586 = vmatpush.bf16.msra.mxu1 %v8401_v59 }
 0x5e0   :  { %3561 = vmatpush.bf16.msra.mxu3 %v8398_v41  ;;  %v3184_v51 = vpop.f32.mrf.mxu2 }
 0x5e2   :  { %v3143_v29 = vpop.f32.mrf.mxu3 }
 0x5e3   :  { %3587 = vmatpush.bf16.msra.mxu1 %v8402_v6  ;;  %v3144_v33 = vadd.f32 %v3143_v29, %v3131_v54 }
 0x5e4   :  { %3562 = vmatpush.bf16.msra.mxu3 %v8400_v36 }
 0x5e5   :  { %v3157_v0 = vadd.f32 %v3156_v58, %v3144_v33 }
 0x5e7   :  { %3588 = vmatpush.bf16.msra.mxu1 %v8403_v15 }
 0x5e8   :  { %v3247_v52 = vpop.f32.mrf.mxu2 }
 0x5ea   :  { %v3145_v35 = vpop.f32.mrf.mxu3 }
 0x5f0   :  { %v3249_v39 = vpop.f32.mrf.mxu2 }
 0x5f2   :  { %v7640_v48 = vpop.f32.mrf.mxu3 }
 0x5f7   :  { %v3169_v3 = vpop.f32.mrf.mxu1  ;;  %v3260_v20 = vpop.f32.mrf.mxu0 }
 0x5f8   :  { %v3170_v41 = vadd.f32 %v3169_v3, %v3157_v0  ;;  %v3391_v25 = vpop.f32.mrf.mxu2 }
 0x5f9   :  { %v3392_v36 = vadd.f32 %v3391_v25, %v8041_v21 }
 0x5fa   :  { %v3183_v59 = vadd.f32 %v3182_v42, %v3170_v41  ;;  %v3197_v51 = vpop.f32.mrf.mxu3 }
 0x5fb   :  { %5020 = vtanh.f32 %v3392_v36 }
 0x5ff   :  { %v3171_v6 = vpop.f32.mrf.mxu1  ;;  %v3262_v54 = vpop.f32.mrf.mxu0 }
 0x600   :  { %v3393_v29 = vpop.f32.mrf.mxu2 }
 0x601   :  { %v5021_v60 = vpop.eup %5020 }
 0x602   :  { %v3480_v15 = vpack.c.bf16 %v5021_v60, %v5021_v60  ;;  %v3221_v58 = vpop.f32.mrf.mxu3 }
 0x603   :  { %v3222_v29 = vadd.f32 %v3221_v58, %v3208_v32 }
 0x604   :  { %3498 = vmatmul.bf16.vlgmr.msra.gmra.mxu2 %v3480_v15 }
 0x605   :  { %3607 = vmatpush.bf16.msra.mxu2 %v8042_v9 }
 0x607   :  { %v3234_v33 = vpop.f32.mrf.mxu1  ;;  %v3404_v35 = vpop.f32.mrf.mxu0 }
 0x608   :  { %v3405_v39 = vadd.f32 %v3404_v35, %v8041_v21  ;;  %v3430_v0 = vpop.f32.mrf.mxu2 }
 0x609   :  { %v3431_v3 = vadd.f32 %v3430_v0, %v8041_v21  ;;  %3608 = vmatpush.bf16.msra.mxu2 %v8043_v62  ;;  %v3235_v62 = vadd.f32 %v3234_v33, %v3222_v29 }
 0x60a   :  { %5022 = vtanh.f32 %v3405_v39  ;;  %v3223_v42 = vpop.f32.mrf.mxu3 }
 0x60b   :  { %5024 = vtanh.f32 %v3431_v3 }
 0x60d   :  { %3609 = vmatpush.bf16.msra.mxu2 %v8044_v46 }
 0x60f   :  { %v3236_v41 = vpop.f32.mrf.mxu1  ;;  %v3406_v25 = vpop.f32.mrf.mxu0 }
 0x610   :  { %v5023_v36 = vpop.eup %5022  ;;  %v3432_v51 = vpop.f32.mrf.mxu2 }
 0x611   :  { %v5025_v6 = vpop.eup %5024  ;;  %v7648_v9 = vpack.c.bf16 %v5023_v36, %v5023_v36  ;;  %3610 = vmatpush.bf16.msra.mxu2 %v8047_v2  ;;  %v3248_v2 = vadd.f32 %v3247_v52, %v3235_v62 }
 0x612   :  { %v3483_v54 = vpack.c.bf16 %v5025_v6, %v5025_v6 }
 0x613   :  { %3511 = vmatmul.bf16.vlgmr.msrb.gmra.mxu3 %v7648_v9 }
 0x614   :  { %3537 = vmatmul.bf16.vlgmr.msrb.gmra.mxu1 %v3483_v54  ;;  %3620 = vmatpush.bf16.msrb.mxu3 %v8055_v38  ;;  %v3261_v38 = vadd.f32 %v3260_v20, %v3248_v2 }
 0x615   :  { %3633 = vmatpush.bf16.msrb.mxu1 %v8107_v24  ;;  %3611 = vmatpush.bf16.msra.mxu2 %v8108_v57 }
 0x617   :  { %v3286_v46 = vpop.f32.mrf.mxu1  ;;  %v3456_v60 = vpop.f32.mrf.mxu0 }
 0x618   :  { %v3457_v35 = vadd.f32 %v3456_v60, %v8041_v21  ;;  %3621 = vmatpush.bf16.msrb.mxu3 %v8057_v11 }
 0x619   :  { %3634 = vmatpush.bf16.msrb.mxu1 %v8110_v43  ;;  %3612 = vmatpush.bf16.msra.mxu2 %v8111_v47  ;;  %v3196_v43 = vadd.f32 %v7640_v48, %v3183_v59 }
 0x61a   :  { %5026 = vtanh.f32 %v3457_v35 }
 0x61c   :  { %3622 = vmatpush.bf16.msrb.mxu3 %v8059_v27 }
 0x61d   :  { %3635 = vmatpush.bf16.msrb.mxu1 %v8113_v63  ;;  %3613 = vmatpush.bf16.msra.mxu2 %v8114_v45 }
 0x61f   :  { %v3288_v57 = vpop.f32.mrf.mxu1  ;;  %v3458_v11 = vpop.f32.mrf.mxu0 }
 0x620   :  { %v5027_v32 = vpop.eup %5026  ;;  %3623 = vmatpush.bf16.msrb.mxu3 %v8061_v23 }
 0x621   :  { %v3485_v33 = vpack.c.bf16 %v5027_v32, %v5027_v32  ;;  %3636 = vmatpush.bf16.msrb.mxu1 %v8115_v31  ;;  %3614 = vmatpush.bf16.msra.mxu2 %v8116_v4 }
 0x622   :  { %v3273_v24 = vpop.f32.mrf.mxu3 }
 0x623   :  { %v3274_v58 = vadd.f32 %v3273_v24, %v3261_v38  ;;  %3563 = vmatmul.bf16.vlgmr.msra.gmra.mxu3 %v3485_v33 }
 0x624   :  { %3589 = vmatmul.bf16.vlgmr.msra.gmra.mxu1 %v3480_v15  ;;  %3624 = vmatpush.bf16.msrb.mxu3 %v8063_v14 }
 0x625   :  { %v3287_v27 = vadd.f32 %v3286_v46, %v3274_v58  ;;  %3637 = vmatpush.bf16.msrb.mxu1 %v8117_v10 }
 0x627   :  { %v3290_v47 = vpack.c.bf16 %v3287_v27, %v3196_v43  ;;  %v3417_v63 = vpop.f32.mrf.mxu1 }
 0x628   :  { %v3418_v45 = vadd.f32 %v3417_v63, %v8041_v21  ;;  %3625 = vmatpush.bf16.msrb.mxu3 %v8065_v56 }
 0x629   :  { %4627 = vst.msk [vmem:[%s7711_s4 + $0x30] sm:$0xff] %vm6259_vm4, %v3290_v47  ;;  %3638 = vmatpush.bf16.msrb.mxu1 %v8119_v37 }
 0x62a   :  { %v3275_v23 = vpop.f32.mrf.mxu3  ;;  %5028 = vtanh.f32 %v3418_v45 }
 0x62c   :  { %3626 = vmatpush.bf16.msrb.mxu3 %v8067_v61 }
 0x62d   :  { %3639 = vmatpush.bf16.msrb.mxu1 %v8120_v50 }
 0x62f   :  { %v3419_v31 = vpop.f32.mrf.mxu1 }
 0x630   :  { %v5029_v4 = vpop.eup %5028  ;;  %3627 = vmatpush.bf16.msrb.mxu3 %v8068_v40 }
 0x631   :  { %v3482_v52 = vpack.c.bf16 %v5029_v4, %v5029_v4  ;;  %3640 = vmatpush.bf16.msrb.mxu1 %v8121_v17 }
 0x632   :  { %v3443_v14 = vpop.f32.mrf.mxu3 }
 0x633   :  { %v3444_v10 = vadd.f32 %v3443_v14, %v8041_v21  ;;  %3524 = vmatmul.bf16.vlgmr.msra.gmra.mxu0 %v3482_v52  ;;  %3628 = vmatmul.bf16.vlgmr.msrb.gmra.mxu3 %v3483_v54 }
 0x634   :  { %3594 = vmatpush.bf16.msra.mxu0 %v8054_v7 }
 0x635   :  { %5030 = vtanh.f32 %v3444_v10 }
 0x637   :  { %v3469_v37 = vpop.f32.mrf.mxu1 }
 0x638   :  { %v3470_v50 = vadd.f32 %v3469_v37, %v8041_v21  ;;  %3595 = vmatpush.bf16.msra.mxu0 %v8056_v12 }
 0x63a   :  { %v3445_v56 = vpop.f32.mrf.mxu3  ;;  %5032 = vtanh.f32 %v3470_v50 }
 0x63b   :  { %v5031_v61 = vpop.eup %5030 }
 0x63c   :  { %v3484_v48 = vpack.c.bf16 %v5031_v61, %v5031_v61  ;;  %3596 = vmatpush.bf16.msra.mxu0 %v8058_v19 }
 0x63e   :  { %3550 = vmatmul.bf16.vlgmr.msrb.gmra.mxu2 %v3484_v48  ;;  %3641 = vmatmul.bf16.vlgmr.msrb.gmra.mxu1 %v3484_v48 }
 0x63f   :  { %3666 = vmatpush.bf16.msrb.mxu2 %v8118_v5  ;;  %v3471_v17 = vpop.f32.mrf.mxu1 }
 0x640   :  { %v5033_v40 = vpop.eup %5032  ;;  %3597 = vmatpush.bf16.msra.mxu0 %v8109_v26 }
 0x641   :  { %v3486_v7 = vpack.c.bf16 %v5033_v40, %v5033_v40 }
 0x643   :  { %4707 = vmatmul.msk.bf16.vlgmr.msrb.gmra.mxu0 %vm810_vm1, %v3486_v7 }
 0x644   :  { %3598 = vmatpush.bf16.msra.mxu0 %v8167_v22 }
 0x648   :  { %3599 = vmatpush.bf16.msra.mxu0 %v8168_v8 }
 0x64c   :  { %3600 = vmatpush.bf16.msra.mxu0 %v8169_v28 }
 0x64e   :  { %3615 = vmatmul.bf16.vlgmr.msra.gmra.mxu2 %v3482_v52 }
 0x650   :  { %3601 = vmatpush.bf16.msra.mxu0 %v8170_v18 }
 0x653   :  { %3602 = vmatmul.bf16.vlgmr.msra.gmra.mxu0 %v7648_v9 }
 0x654   :  { %3646 = vmatpush.bf16.msrb.mxu0 %v8171_v13 }
 0x658   :  { %3647 = vmatpush.bf16.msrb.mxu0 %v8287_v16 }
 0x65c   :  { %3648 = vmatpush.bf16.msrb.mxu0 %v8290_v55 }
 0x65e   :  { %4708 = vmatmul.msk.bf16.vlgmr.msrb.gmra.mxu2 %vm810_vm1, %v3486_v7 }
 0x660   :  { %3649 = vmatpush.bf16.msrb.mxu0 %v8347_v30 }
 0x664   :  { %3650 = vmatpush.bf16.msrb.mxu0 %v8350_v53 }
 0x668   :  { %3651 = vmatpush.bf16.msrb.mxu0 %v8353_v1 }
 0x66c   :  { %3652 = vmatpush.bf16.msrb.mxu0 %v8356_v34 }
 0x670   :  { %3653 = vmatpush.bf16.msrb.mxu0 %v8359_v44 }
 0x673   :  { %3654 = vmatmul.bf16.vlgmr.msrb.gmra.mxu0 %v3485_v33 }
 0x687   :  { %v3499_v21 = vpop.f32.mrf.mxu2 }
 0x68f   :  { %v3501_v12 = vpop.f32.mrf.mxu2 }
 0x691   :  { %v3538_v19 = vpop.f32.mrf.mxu1 }
 0x696   :  { %v3512_v26 = vpop.f32.mrf.mxu3 }
 0x697   :  { %v3513_v5 = vadd.f32 %v3512_v26, %v3499_v21 }
 0x699   :  { %v3540_v22 = vpop.f32.mrf.mxu1 }
 0x69e   :  { %v3514_v8 = vpop.f32.mrf.mxu3 }
 0x6a1   :  { %v3590_v28 = vpop.f32.mrf.mxu1 }
 0x6a6   :  { %v3564_v18 = vpop.f32.mrf.mxu3 }
 0x6a9   :  { %v3592_v13 = vpop.f32.mrf.mxu1 }
 0x6ae   :  { %v3566_v16 = vpop.f32.mrf.mxu3 }
 0x6b0   :  { %v3525_v55 = vpop.f32.mrf.mxu0 }
 0x6b1   :  { %v3526_v30 = vadd.f32 %v3525_v55, %v3513_v5 }
 0x6b3   :  { %v3539_v53 = vadd.f32 %v3538_v19, %v3526_v30 }
 0x6b6   :  { %v3629_v1 = vpop.f32.mrf.mxu3 }
 0x6b8   :  { %v3527_v34 = vpop.f32.mrf.mxu0 }
 0x6bb   :  { %v3642_v20 = vpop.f32.mrf.mxu1 }
 0x6be   :  { %v3631_v44 = vpop.f32.mrf.mxu3 }
 0x6c0   :  { %v3577_v0 = vpop.f32.mrf.mxu0 }
 0x6c1   :  { %v3551_v59 = vpop.f32.mrf.mxu2 }
 0x6c2   :  { %v3552_v15 = vadd.f32 %v3551_v59, %v3539_v53 }
 0x6c3   :  { %v3644_v39 = vpop.f32.mrf.mxu1 }
 0x6c4   :  { %v3565_v3 = vadd.f32 %v3564_v18, %v3552_v15 }
 0x6c6   :  { %v3578_v38 = vadd.f32 %v3577_v0, %v3565_v3 }
 0x6c8   :  { %v3579_v41 = vpop.f32.mrf.mxu0 }
 0x6c9   :  { %v3553_v42 = vpop.f32.mrf.mxu2 }
 0x6d0   :  { %v3603_v36 = vpop.f32.mrf.mxu0 }
 0x6d1   :  { %v3616_v25 = vpop.f32.mrf.mxu2  ;;  %v3604_v54 = vadd.f32 %v3603_v36, %v3590_v28 }
 0x6d3   :  { %v3617_v29 = vadd.f32 %v3616_v25, %v3604_v54 }
 0x6d5   :  { %v3630_v46 = vadd.f32 %v3629_v1, %v3617_v29 }
 0x6d7   :  { %v3643_v60 = vadd.f32 %v3642_v20, %v3630_v46 }
 0x6d8   :  { %v3605_v6 = vpop.f32.mrf.mxu0 }
 0x6d9   :  { %v3618_v51 = vpop.f32.mrf.mxu2 }
 0x6e1   :  { %v3668_v9 = vpop.f32.mrf.mxu2 }
 0x6e9   :  { %v3670_v62 = vpop.f32.mrf.mxu2 }
 0x6f0   :  { %v3655_v35 = vpop.f32.mrf.mxu0 }
 0x6f1   :  { %v3656_v2 = vadd.f32 %v3655_v35, %v3643_v60 }
 0x6f3   :  { %v3669_v24 = vadd.f32 %v3668_v9, %v3656_v2 }
 0x6f5   :  { %v3672_v57 = vpack.c.bf16 %v3669_v24, %v3578_v38 }
 0x6f7   :  { %4709 = vst.msk [vmem:[%s7711_s4 + $0x38] sm:$0xff] %vm6259_vm4, %v3672_v57 }
 0x6f8   :  { %v3657_v32 = vpop.f32.mrf.mxu0 }

// kernel: lenet5_forward.4
= control target key start
LH: loop header
LB: loop body
LE: loop exit
PB: predicated region body
PF: predicated region fallthrough
CT: control target
= control target key end

     0   :  { %v1767_v5 = vmov 0   ;;  %vm134_vm0 = vcmask 1043456   ;;  %vm130_vm1 = vcmask 195584   ;;  %vm212_vm2 = vcmask 1041408   ;;  %s2270_s0 = inlined_call_operand.vmem [shape: bf16[8,152,100], index: 0, kind: input, shape index: {}]   ;;  %s2271_s2 = inlined_call_operand.vmem [shape: f32[16,1], index: 2, kind: input, shape index: {}]   ;;  %s2272_s1 = inlined_call_operand.vmem [shape: bf16[16,152], index: 1, kind: input, shape index: {}]   ;;  %s2273_s3 = inlined_call_operand.vmem [shape: bf16[100,25], index: 3, kind: input, shape index: {}]   ;;  %s2274_s4 = inlined_call_operand.vmem [shape: bf16[8,16,25], index: 4, kind: output, shape index: {}]  }
   0x1   :  { %v1668_v0 = vld [vmem:[%s2270_s0 + $0x38] sm:$0xff]  ;;  %v1677_v1 = vld [vmem:[%s2270_s0 + $0x84] sm:$0xff]  ;;  %v1667_v2 = vld [vmem:[%s2270_s0 + $0x30] sm:$0xff]  ;;  %1734 = vset.pattern.permute.xlu0 %v1767_v5  ;;  %vm208_vm3 = vcmask 818176   ;;  %vm232_vm4 = vcmask 199680  }
   0x2   :  { %138 = vmatpush.bf16.msra.mxu0 %v1668_v0  ;;  %315 = vmatpush.bf16.msra.mxu3 %v1677_v1  ;;  %v1676_v3 = vld [vmem:[%s2270_s0 + $0x7c] sm:$0xff]  ;;  %v53_v4 = vld [vmem:[%s2270_s0 + $0x48] sm:$0xf]  ;;  %v1675_v8 = vld [vmem:[%s2270_s0 + $0x74] sm:$0xff] }
   0x3   :  { %v110_v6 = vunpack.c.l.b16 %v53_v4  ;;  %v1666_v7 = vld [vmem:[%s2270_s0 + $0x28] sm:$0xff]  ;;  %v1258_v10 = vld [vmem:[%s2270_s0 + $0x94] sm:$0xf]  ;;  %v20_v13 = vld [vmem:[%s2271_s2] sm:$0xff] }
   0x4   :  { %v292_v12 = vunpack.c.l.b16 %v1258_v10  ;;  %v1669_v14 = vld [vmem:[%s2270_s0 + $0x40] sm:$0xff]  ;;  %v1174_v16 = vld [vmem:[%s2272_s1 + $0x8] sm:$0xf0]  ;;  %56 = vperm.xlu0 %1734, %v20_v13   ;;  %v1664_v22 = vld [vmem:[%s2270_s0 + $0x18] sm:$0xff] }
   0x5   :  { %v120_v9 = vpack.c.b16 %v110_v6, %v110_v6  ;;  %v1653_v15 = vld [vmem:[%s2272_s1 + $0x4] sm:$0xf]  ;;  %v1674_v18 = vld [vmem:[%s2270_s0 + $0x6c] sm:$0xff]  ;;  %v1317_v26 = vld [vmem:[%s2270_s0 + $0xe0] sm:$0xf] }
   0x6   :  { %139 = vmatpush.bf16.msra.mxu0 %v1667_v2  ;;  %316 = vmatpush.bf16.msra.mxu3 %v1676_v3  ;;  %v1665_v17 = vld [vmem:[%s2270_s0 + $0x20] sm:$0xff]  ;;  %v302_v19 = vpack.c.b16 %v292_v12, %v292_v12  ;;  %v1836_v20 = vor.u32 %v1653_v15, %v1174_v16  ;;  %v21_v24 = vld [vmem:[%s2271_s2 + $0x8] sm:$0xff]  ;;  %v1663_v27 = vld [vmem:[%s2270_s0 + $0x10] sm:$0xff]  ;;  %v425_v29 = vunpack.c.l.b16 %v1317_v26 }
   0x7   :  { %v136_v11 = vsel %vm134_vm0, %v120_v9, 0  ;;  %v1673_v23 = vld [vmem:[%s2270_s0 + $0x64] sm:$0xff]  ;;  %v1678_v25 = vld [vmem:[%s2270_s0 + $0x8c] sm:$0xff]  ;;  %v1672_v28 = vld [vmem:[%s2270_s0 + $0x5c] sm:$0xff] }
   0x8   :  { %158 = vmatpush.bf16.msra.mxu1 %v136_v11  ;;  %v313_v21 = vsel %vm134_vm0, %v302_v19, 0  ;;  %v1662_v30 = vld [vmem:[%s2270_s0 + $0x8] sm:$0xff]  ;;  %v1671_v31 = vld [vmem:[%s2270_s0 + $0x54] sm:$0xff]  ;;  %v435_v32 = vpack.c.b16 %v425_v29, %v425_v29  ;;  %v1661_v33 = vld [vmem:[%s2270_s0] sm:$0xff] }
   0x9   :  { %v1670_v34 = vld [vmem:[%s2270_s0 + $0x4c] sm:$0xff]  ;;  %v1172_v35 = vld [vmem:[%s2272_s1] sm:$0xf]  ;;  %v1654_v36 = vld [vmem:[%s2272_s1 + $0x4] sm:$0xf0] }
   0xa   :  { %140 = vmatpush.bf16.msra.mxu0 %v1666_v7  ;;  %317 = vmatpush.bf16.msra.mxu3 %v1675_v8  ;;  %v446_v37 = vsel %vm134_vm0, %v435_v32, 0  ;;  %v1881_v38 = vor.u32 %v1654_v36, %v1172_v35  ;;  %v1687_v39 = vld [vmem:[%s2270_s0 + $0xd8] sm:$0xff]  ;;  %v34_v41 = vld [vmem:[%s2273_s3 + $0x30] sm:$0x3]  ;;  %v1908_v47 = vld [vmem:[%s2273_s3 + $0x28] sm:$0xff] }
   0xb   :  { %v1695_v40 = vld [vmem:[%s2270_s0 + $0x11c] sm:$0xff]  ;;  %v1694_v42 = vld [vmem:[%s2270_s0 + $0x114] sm:$0xff]  ;;  %v194_v43 = vunpack.c.l.b16 %v34_v41  ;;  %v1693_v45 = vld [vmem:[%s2270_s0 + $0x10c] sm:$0xff] }
   0xc   :  { %159 = vmatpush.bf16.msra.mxu1 %v1669_v14  ;;  %61 = vperm.xlu0 %1734, %v21_v24   ;;  %v1692_v48 = vld [vmem:[%s2270_s0 + $0x104] sm:$0xff]  ;;  %v1691_v50 = vld [vmem:[%s2270_s0 + $0xfc] sm:$0xff]  ;;  %v1690_v51 = vld [vmem:[%s2270_s0 + $0xf4] sm:$0xff] }
   0xd   :  { %v201_v44 = vpack.c.b16 %v194_v43, %v194_v43  ;;  %v1919_v49 = vld [vmem:[%s2273_s3 + $0x20] sm:$0xff]  ;;  %v1689_v52 = vld [vmem:[%s2270_s0 + $0xec] sm:$0xff]  ;;  %v1947_v54 = vld [vmem:[%s2273_s3 + $0x18] sm:$0xff] }
   0xe   :  { %141 = vmatpush.bf16.msra.mxu0 %v1665_v17  ;;  %318 = vmatpush.bf16.msra.mxu3 %v1674_v18  ;;  %v1688_v53 = vld [vmem:[%s2270_s0 + $0xe4] sm:$0xff]  ;;  %v1953_v55 = vld [vmem:[%s2273_s3 + $0x10] sm:$0xff]  ;;  %v1683_v62 = vld [vmem:[%s2270_s0 + $0xb8] sm:$0xff] }
   0xf   :  { %1214 = vmatmul.msk.bf16.vlgmr.msra.gmra.mxu1 %vm130_vm1, %v1836_v20  ;;  %v1902_v46 = vsel %vm212_vm2, %v201_v44, 0  ;;  %v1965_v56 = vld [vmem:[%s2273_s3 + $0x8] sm:$0xff]  ;;  %v1974_v57 = vld [vmem:[%s2273_s3] sm:$0xff]  ;;  %v1686_v58 = vld [vmem:[%s2270_s0 + $0xd0] sm:$0xff] }
  0x10   :  { %335 = vmatpush.bf16.msrb.mxu1 %v313_v21  ;;  %217 = vmatpush.bf16.msra.mxu2 %v1902_v46  ;;  %v1685_v59 = vld [vmem:[%s2270_s0 + $0xc8] sm:$0xff]  ;;  %v1684_v60 = vld [vmem:[%s2270_s0 + $0xc0] sm:$0xff]  ;;  %v1682_v63 = vld [vmem:[%s2270_s0 + $0xb0] sm:$0xff] }
  0x11   :  { %v1681_v0 = vld [vmem:[%s2270_s0 + $0xa8] sm:$0xff]  ;;  %v1680_v2 = vld [vmem:[%s2270_s0 + $0xa0] sm:$0xff]  ;;  %v1679_v8 = vld [vmem:[%s2270_s0 + $0x98] sm:$0xff] }
  0x12   :  { %142 = vmatpush.bf16.msra.mxu0 %v1664_v22  ;;  %319 = vmatpush.bf16.msra.mxu3 %v1673_v23  ;;  %v1376_v3 = vld [vmem:[%s2270_s0 + $0x12c] sm:$0xf]  ;;  %v1696_v12 = vld [vmem:[%s2270_s0 + $0x124] sm:$0xff]  ;;  %v1705_v36 = vld [vmem:[%s2270_s0 + $0x170] sm:$0xff] }
  0x13   :  { %v558_v5 = vunpack.c.l.b16 %v1376_v3  ;;  %v1710_v41 = vld [vmem:[%s2270_s0 + $0x19c] sm:$0xff]  ;;  %v1708_v43 = vld [vmem:[%s2270_s0 + $0x18c] sm:$0xff]  ;;  %v1707_v44 = vld [vmem:[%s2270_s0 + $0x184] sm:$0xff] }
  0x14   :  { %336 = vmatpush.bf16.msrb.mxu1 %v1678_v25  ;;  %218 = vmatpush.bf16.msra.mxu2 %v1908_v47  ;;  %v1435_v25 = vld [vmem:[%s2270_s0 + $0x178] sm:$0xf]  ;;  %v1718_v3 = vld [vmem:[%s2270_s0 + $0x1e0] sm:$0xff] }
  0x15   :  { %v568_v7 = vpack.c.b16 %v558_v5, %v558_v5  ;;  %v1700_v5 = vld [vmem:[%s2270_s0 + $0x148] sm:$0xff] }
  0x16   :  { %143 = vmatpush.bf16.msra.mxu0 %v1663_v27  ;;  %320 = vmatpush.bf16.msra.mxu3 %v1672_v28  ;;  %v691_v28 = vunpack.c.l.b16 %v1435_v25 }
  0x17   :  { %v579_v9 = vsel %vm134_vm0, %v568_v7, 0 }
  0x18   :  { %350 = vmatpush.bf16.msra.mxu1 %v1902_v46  ;;  %219 = vmatpush.bf16.msra.mxu2 %v1919_v49 }
  0x1a   :  { %144 = vmatpush.bf16.msra.mxu0 %v1662_v30  ;;  %321 = vmatpush.bf16.msra.mxu3 %v1671_v31  ;;  %v701_v31 = vpack.c.b16 %v691_v28, %v691_v28 }
  0x1c   :  { %351 = vmatpush.bf16.msra.mxu1 %v1908_v47  ;;  %220 = vmatpush.bf16.msra.mxu2 %v1947_v54  ;;  %v712_v35 = vsel %vm134_vm0, %v701_v31, 0 }
  0x1e   :  { %145 = vmatpush.bf16.msra.mxu0 %v1661_v33  ;;  %322 = vmatpush.bf16.msra.mxu3 %v1670_v34 }
  0x1f   :  { %1295 = vmatmul.msk.bf16.vlgmr.msrb.gmra.mxu1 %vm130_vm1, %v1836_v20 }
  0x20   :  { %352 = vmatpush.bf16.msra.mxu1 %v1919_v49  ;;  %221 = vmatpush.bf16.msra.mxu2 %v1953_v55 }
  0x21   :  { %146 = vmatmul.bf16.vlgmr.msra.gmra.mxu0 %v1881_v38  ;;  %323 = vmatmul.bf16.vlgmr.msra.gmra.mxu3 %v1881_v38 }
  0x22   :  { %468 = vmatpush.bf16.msrb.mxu0 %v446_v37  ;;  %483 = vmatpush.bf16.msrb.mxu3 %v1902_v46  ;;  %v1713_v37 = vld [vmem:[%s2270_s0 + $0x1b4] sm:$0xff] }
  0x24   :  { %353 = vmatpush.bf16.msra.mxu1 %v1947_v54  ;;  %222 = vmatpush.bf16.msra.mxu2 %v1965_v56 }
  0x26   :  { %469 = vmatpush.bf16.msrb.mxu0 %v1687_v39  ;;  %484 = vmatpush.bf16.msrb.mxu3 %v1908_v47  ;;  %v1712_v39 = vld [vmem:[%s2270_s0 + $0x1ac] sm:$0xff] }
  0x28   :  { %354 = vmatpush.bf16.msra.mxu1 %v1953_v55  ;;  %223 = vmatpush.bf16.msra.mxu2 %v1974_v57 }
  0x2a   :  { %581 = vmatpush.bf16.msra.mxu0 %v1695_v40  ;;  %485 = vmatpush.bf16.msrb.mxu3 %v1919_v49  ;;  %v1711_v40 = vld [vmem:[%s2270_s0 + $0x1a4] sm:$0xff] }
  0x2c   :  { %355 = vmatpush.bf16.msra.mxu1 %v1965_v56  ;;  %448 = vmatpush.bf16.msrb.mxu2 %v1686_v58  ;;  %v1720_v58 = vld [vmem:[%s2270_s0 + $0x1f0] sm:$0xff] }
  0x2e   :  { %582 = vmatpush.bf16.msra.mxu0 %v1694_v42  ;;  %486 = vmatpush.bf16.msrb.mxu3 %v1947_v54  ;;  %v1709_v42 = vld [vmem:[%s2270_s0 + $0x194] sm:$0xff] }
  0x30   :  { %356 = vmatpush.bf16.msra.mxu1 %v1974_v57  ;;  %449 = vmatpush.bf16.msrb.mxu2 %v1685_v59  ;;  %v1702_v59 = vld [vmem:[%s2270_s0 + $0x158] sm:$0xff] }
  0x31   :  { %1354 = vmatmul.msk.bf16.vlgmr.msrb.gmra.mxu0 %vm130_vm1, %v1836_v20 }
  0x32   :  { %583 = vmatpush.bf16.msra.mxu0 %v1693_v45  ;;  %487 = vmatpush.bf16.msrb.mxu3 %v1953_v55  ;;  %v1706_v45 = vld [vmem:[%s2270_s0 + $0x17c] sm:$0xff] }
  0x34   :  { %450 = vmatpush.bf16.msrb.mxu2 %v1684_v60  ;;  %601 = vmatpush.bf16.msrb.mxu1 %v579_v9  ;;  %v1699_v9 = vld [vmem:[%s2270_s0 + $0x140] sm:$0xff] }
  0x36   :  { %584 = vmatpush.bf16.msra.mxu0 %v1692_v48  ;;  %488 = vmatpush.bf16.msrb.mxu3 %v1965_v56  ;;  %v1722_v48 = vld [vmem:[%s2270_s0 + $0x200] sm:$0xff] }
  0x38   :  { %451 = vmatpush.bf16.msrb.mxu2 %v1683_v62  ;;  %602 = vmatpush.bf16.msrb.mxu1 %v1696_v12 }
  0x3a   :  { %585 = vmatpush.bf16.msra.mxu0 %v1691_v50  ;;  %489 = vmatpush.bf16.msrb.mxu3 %v1974_v57 }
  0x3c   :  { %452 = vmatpush.bf16.msrb.mxu2 %v1682_v63  ;;  %v1719_v63 = vld [vmem:[%s2270_s0 + $0x1e8] sm:$0xff] }
  0x3e   :  { %586 = vmatpush.bf16.msra.mxu0 %v1690_v51  ;;  %v1704_v51 = vld [vmem:[%s2270_s0 + $0x168] sm:$0xff] }
  0x3f   :  { %714 = vmatpush.bf16.msra.mxu3 %v1704_v51 }
  0x40   :  { %453 = vmatpush.bf16.msrb.mxu2 %v1681_v0 }
  0x42   :  { %587 = vmatpush.bf16.msra.mxu0 %v1689_v52  ;;  %v1721_v52 = vld [vmem:[%s2270_s0 + $0x1f8] sm:$0xff] }
  0x44   :  { %454 = vmatpush.bf16.msrb.mxu2 %v1680_v2  ;;  %v1701_v2 = vld [vmem:[%s2270_s0 + $0x150] sm:$0xff] }
  0x46   :  { %588 = vmatpush.bf16.msra.mxu0 %v1688_v53  ;;  %v1703_v53 = vld [vmem:[%s2270_s0 + $0x160] sm:$0xff] }
  0x47   :  { %715 = vmatpush.bf16.msra.mxu3 %v1703_v53 }
  0x48   :  { %455 = vmatpush.bf16.msrb.mxu2 %v1679_v8  ;;  %v1717_v8 = vld [vmem:[%s2270_s0 + $0x1d8] sm:$0xff] }
  0x49   :  { %589 = vmatmul.bf16.vlgmr.msra.gmra.mxu0 %v1881_v38 }
  0x4a   :  { %749 = vmatpush.bf16.msrb.mxu0 %v1902_v46 }
  0x4b   :  { %716 = vmatpush.bf16.msra.mxu3 %v1702_v59 }
  0x4e   :  { %750 = vmatpush.bf16.msrb.mxu0 %v1908_v47 }
  0x4f   :  { %717 = vmatpush.bf16.msra.mxu3 %v1701_v2 }
  0x52   :  { %751 = vmatpush.bf16.msrb.mxu0 %v1919_v49 }
  0x53   :  { %718 = vmatpush.bf16.msra.mxu3 %v1700_v5  ;;  %v1731_v5 = vld [vmem:[%s2270_s0 + $0x24c] sm:$0xff] }
  0x56   :  { %752 = vmatpush.bf16.msrb.mxu0 %v1947_v54 }
  0x57   :  { %719 = vmatpush.bf16.msra.mxu3 %v1699_v9  ;;  %v1728_v9 = vld [vmem:[%s2270_s0 + $0x234] sm:$0xff] }
  0x5a   :  { %753 = vmatpush.bf16.msrb.mxu0 %v1953_v55 }
  0x5e   :  { %754 = vmatpush.bf16.msrb.mxu0 %v1965_v56 }
  0x62   :  { %755 = vmatpush.bf16.msrb.mxu0 %v1974_v57 }
  0x76   :  { %v2004_v4 = vpop.permute.xlu0 %56 }
  0x7e   :  { %v2014_v14 = vpop.permute.xlu0 %61 }
  0x8c   :  { %v161_v61 = vpop.f32.mrf.mxu1 }
  0x94   :  { %v163_v1 = vpop.f32.mrf.mxu1 }
  0x9c   :  { %v338_v11 = vpop.f32.mrf.mxu1 }
  0x9e   :  { %v147_v6 = vpop.f32.mrf.mxu0 }
  0x9f   :  { %v148_v10 = vadd.f32 %v147_v6, %v2004_v4 }
  0xa1   :  { %v162_v15 = vadd.f32 %v161_v61, %v148_v10 }
  0xa3   :  { %1735 = vtanh.f32 %v162_v15  ;;  %v1698_v15 = vld [vmem:[%s2270_s0 + $0x138] sm:$0xff] }
  0xa4   :  { %v324_v13 = vpop.f32.mrf.mxu3  ;;  %v340_v23 = vpop.f32.mrf.mxu1  ;;  %720 = vmatpush.bf16.msra.mxu3 %v1698_v15  ;;  %v1612_v15 = vld [vmem:[%s2270_s0 + $0x25c] sm:$0xf] }
  0xa5   :  { %v325_v18 = vadd.f32 %v324_v13, %v2004_v4  ;;  %v1716_v13 = vld [vmem:[%s2270_s0 + $0x1d0] sm:$0xff] }
  0xa6   :  { %v149_v16 = vpop.f32.mrf.mxu0 }
  0xa7   :  { %v150_v17 = vadd.f32 %v149_v16, %v2014_v14  ;;  %v339_v21 = vadd.f32 %v338_v11, %v325_v18  ;;  %v1715_v18 = vld [vmem:[%s2270_s0 + $0x1c8] sm:$0xff] }
  0xa9   :  { %v164_v19 = vadd.f32 %v163_v1, %v150_v17  ;;  %v1736_v27 = vpop.eup %1735 }
  0xab   :  { %1737 = vtanh.f32 %v164_v19  ;;  %v1697_v19 = vld [vmem:[%s2270_s0 + $0x130] sm:$0xff] }
  0xac   :  { %v326_v22 = vpop.f32.mrf.mxu3  ;;  %1739 = vtanh.f32 %v339_v21  ;;  %721 = vmatpush.bf16.msra.mxu3 %v1697_v19 }
  0xad   :  { %v327_v24 = vadd.f32 %v326_v22, %v2014_v14 }
  0xae   :  { %v471_v50 = vpop.f32.mrf.mxu0 }
  0xaf   :  { %v341_v26 = vadd.f32 %v340_v23, %v327_v24 }
  0xb1   :  { %v1738_v29 = vpop.eup %1737  ;;  %1741 = vtanh.f32 %v341_v26 }
  0xb2   :  { %v168_v30 = vpack.c.bf16 %v1738_v29, %v1736_v27  ;;  %v1740_v32 = vpop.eup %1739 }
  0xb4   :  { %1239 = vmatmul.msk.bf16.vlgmr.msra.gmra.mxu2 %vm208_vm3, %v168_v30 }
  0xb5   :  { %616 = vmatpush.bf16.msra.mxu2 %v1902_v46 }
  0xb6   :  { %v473_v60 = vpop.f32.mrf.mxu0 }
  0xb7   :  { %v1742_v33 = vpop.eup %1741 }
  0xb8   :  { %v345_v34 = vpack.c.bf16 %v1742_v33, %v1740_v32 }
  0xb9   :  { %617 = vmatpush.bf16.msra.mxu2 %v1908_v47 }
  0xba   :  { %1296 = vmatmul.msk.bf16.vlgmr.msra.gmra.mxu1 %vm208_vm3, %v345_v34 }
  0xbb   :  { %734 = vmatpush.bf16.msra.mxu1 %v712_v35 }
  0xbd   :  { %618 = vmatpush.bf16.msra.mxu2 %v1919_v49 }
  0xbf   :  { %735 = vmatpush.bf16.msra.mxu1 %v1705_v36 }
  0xc1   :  { %619 = vmatpush.bf16.msra.mxu2 %v1947_v54 }
  0xc4   :  { %456 = vmatmul.bf16.vlgmr.msrb.gmra.mxu2 %v1881_v38 }
  0xc5   :  { %620 = vmatpush.bf16.msra.mxu2 %v1953_v55 }
  0xc6   :  { %v590_v12 = vpop.f32.mrf.mxu0 }
  0xc7   :  { %v591_v21 = vadd.f32 %v590_v12, %v2004_v4 }
  0xc9   :  { %621 = vmatpush.bf16.msra.mxu2 %v1965_v56 }
  0xca   :  { %1413 = vmatmul.msk.bf16.vlgmr.msrb.gmra.mxu1 %vm130_vm1, %v1836_v20 }
  0xcb   :  { %847 = vmatpush.bf16.msrb.mxu1 %v1713_v37 }
  0xcd   :  { %622 = vmatpush.bf16.msra.mxu2 %v1974_v57 }
  0xce   :  { %v592_v22 = vpop.f32.mrf.mxu0 }
  0xcf   :  { %848 = vmatpush.bf16.msrb.mxu1 %v1712_v39  ;;  %v593_v25 = vadd.f32 %v592_v22, %v2014_v14 }
  0xd1   :  { %980 = vmatpush.bf16.msrb.mxu2 %v1722_v48 }
  0xd3   :  { %849 = vmatpush.bf16.msrb.mxu1 %v1711_v40 }
  0xd5   :  { %981 = vmatpush.bf16.msrb.mxu2 %v1721_v52 }
  0xd7   :  { %850 = vmatpush.bf16.msrb.mxu1 %v1710_v41 }
  0xd9   :  { %982 = vmatpush.bf16.msrb.mxu2 %v1720_v58  ;;  %v1553_v58 = vld [vmem:[%s2270_s0 + $0x210] sm:$0xf] }
  0xda   :  { %1472 = vmatmul.msk.bf16.vlgmr.msra.gmra.mxu1 %vm130_vm1, %v1836_v20 }
  0xdb   :  { %851 = vmatpush.bf16.msrb.mxu1 %v1709_v42 }
  0xdd   :  { %983 = vmatpush.bf16.msrb.mxu2 %v1719_v63 }
  0xdf   :  { %852 = vmatpush.bf16.msrb.mxu1 %v1708_v43 }
  0xe1   :  { %984 = vmatpush.bf16.msrb.mxu2 %v1718_v3  ;;  %v1723_v3 = vld [vmem:[%s2270_s0 + $0x208] sm:$0xff] }
  0xe3   :  { %853 = vmatpush.bf16.msrb.mxu1 %v1707_v44  ;;  %v1714_v44 = vld [vmem:[%s2270_s0 + $0x1bc] sm:$0xff] }
  0xe5   :  { %985 = vmatpush.bf16.msrb.mxu2 %v1717_v8 }
  0xe7   :  { %854 = vmatpush.bf16.msrb.mxu1 %v1706_v45 }
  0xe9   :  { %986 = vmatpush.bf16.msrb.mxu2 %v1716_v13  ;;  %v1726_v13 = vld [vmem:[%s2270_s0 + $0x224] sm:$0xff] }
  0xea   :  { %855 = vmatmul.bf16.vlgmr.msrb.gmra.mxu1 %v1881_v38 }
  0xeb   :  { %1015 = vmatpush.bf16.msra.mxu1 %v1902_v46 }
  0xed   :  { %987 = vmatpush.bf16.msrb.mxu2 %v1715_v18 }
  0xef   :  { %1016 = vmatpush.bf16.msra.mxu1 %v1908_v47 }
  0xf3   :  { %1017 = vmatpush.bf16.msra.mxu1 %v1919_v49 }
  0xf7   :  { %1018 = vmatpush.bf16.msra.mxu1 %v1947_v54 }
  0xfb   :  { %1019 = vmatpush.bf16.msra.mxu1 %v1953_v55 }
  0xff   :  { %1020 = vmatpush.bf16.msra.mxu1 %v1965_v56 }
 0x103   :  { %1021 = vmatpush.bf16.msra.mxu1 %v1974_v57 }
 0x137   :  { %v225_v61 = vpop.f32.mrf.mxu2  ;;  %v358_v62 = vpop.f32.mrf.mxu1 }
 0x138   :  { %v230_v0 = vpack.c.bf16 %v225_v61, %v225_v61  ;;  %v363_v1 = vpack.c.bf16 %v358_v62, %v358_v62  ;;  %v957_v61 = vunpack.c.l.b16 %v1553_v58 }
 0x13a   :  { %233 = vst.msk [vmem:[%s2274_s4] sm:$0xf] %vm232_vm4, %v230_v0  ;;  %v967_v62 = vpack.c.b16 %v957_v61, %v957_v61 }
 0x13b   :  { %1297 = vst.msk [vmem:[%s2274_s4 + $0x8] sm:$0xf] %vm232_vm4, %v363_v1 }
 0x13c   :  { %v978_v2 = vsel %vm134_vm0, %v967_v62, 0 }
 0x13f   :  { %v227_v6 = vpop.f32.mrf.mxu2  ;;  %v360_v7 = vpop.f32.mrf.mxu1 }
 0x140   :  { %v231_v10 = vpack.c.bf16 %v227_v6, %v227_v6  ;;  %v364_v11 = vpack.c.bf16 %v360_v7, %v360_v7  ;;  %v1730_v6 = vld [vmem:[%s2270_s0 + $0x244] sm:$0xff]  ;;  %v1729_v7 = vld [vmem:[%s2270_s0 + $0x23c] sm:$0xff] }
 0x142   :  { %234 = vst.msk [vmem:[%s2274_s4 + $0x4] sm:$0xf] %vm232_vm4, %v231_v10 }
 0x143   :  { %1298 = vst.msk [vmem:[%s2274_s4 + $0xc] sm:$0xf] %vm232_vm4, %v364_v11  ;;  %v1727_v11 = vld [vmem:[%s2270_s0 + $0x22c] sm:$0xff] }
 0x147   :  { %v457_v16 = vpop.f32.mrf.mxu2  ;;  %v604_v17 = vpop.f32.mrf.mxu1 }
 0x148   :  { %v458_v23 = vadd.f32 %v457_v16, %v2004_v4  ;;  %v605_v24 = vadd.f32 %v604_v17, %v591_v21  ;;  %v1090_v17 = vunpack.c.l.b16 %v1612_v15  ;;  %v1725_v21 = vld [vmem:[%s2270_s0 + $0x21c] sm:$0xff] }
 0x14a   :  { %v472_v26 = vadd.f32 %v471_v50, %v458_v23  ;;  %1743 = vtanh.f32 %v605_v24  ;;  %v1100_v19 = vpack.c.b16 %v1090_v17, %v1090_v17  ;;  %v1724_v24 = vld [vmem:[%s2270_s0 + $0x214] sm:$0xff] }
 0x14c   :  { %v1111_v22 = vsel %vm134_vm0, %v1100_v19, 0 }
 0x14f   :  { %v459_v27 = vpop.f32.mrf.mxu2  ;;  %v606_v28 = vpop.f32.mrf.mxu1 }
 0x150   :  { %v460_v29 = vadd.f32 %v459_v27, %v2014_v14  ;;  %v607_v30 = vadd.f32 %v606_v28, %v593_v25  ;;  %v1744_v32 = vpop.eup %1743  ;;  %v1732_v25 = vld [vmem:[%s2270_s0 + $0x254] sm:$0xff] }
 0x152   :  { %v474_v31 = vadd.f32 %v473_v60, %v460_v29  ;;  %1745 = vtanh.f32 %v607_v30 }
 0x153   :  { %1747 = vtanh.f32 %v472_v26 }
 0x154   :  { %1749 = vtanh.f32 %v474_v31 }
 0x157   :  { %v737_v45 = vpop.f32.mrf.mxu1 }
 0x158   :  { %v1746_v33 = vpop.eup %1745 }
 0x159   :  { %v1748_v34 = vpop.eup %1747  ;;  %v611_v35 = vpack.c.bf16 %v1746_v33, %v1744_v32 }
 0x15a   :  { %v1750_v36 = vpop.eup %1749 }
 0x15b   :  { %1414 = vmatmul.msk.bf16.vlgmr.msra.gmra.mxu2 %vm208_vm3, %v611_v35  ;;  %v478_v37 = vpack.c.bf16 %v1750_v36, %v1748_v34 }
 0x15c   :  { %1148 = vmatpush.bf16.msra.mxu2 %v1902_v46 }
 0x15d   :  { %1355 = vmatmul.msk.bf16.vlgmr.msrb.gmra.mxu3 %vm208_vm3, %v478_v37 }
 0x15e   :  { %882 = vmatpush.bf16.msrb.mxu3 %v1902_v46 }
 0x15f   :  { %v739_v59 = vpop.f32.mrf.mxu1 }
 0x160   :  { %1149 = vmatpush.bf16.msra.mxu2 %v1908_v47 }
 0x162   :  { %883 = vmatpush.bf16.msrb.mxu3 %v1908_v47 }
 0x164   :  { %1150 = vmatpush.bf16.msra.mxu2 %v1919_v49 }
 0x166   :  { %884 = vmatpush.bf16.msrb.mxu3 %v1919_v49 }
 0x167   :  { %v856_v18 = vpop.f32.mrf.mxu1 }
 0x168   :  { %1151 = vmatpush.bf16.msra.mxu2 %v1947_v54  ;;  %v857_v26 = vadd.f32 %v856_v18, %v2004_v4 }
 0x16a   :  { %885 = vmatpush.bf16.msrb.mxu3 %v1947_v54 }
 0x16b   :  { %988 = vmatmul.bf16.vlgmr.msrb.gmra.mxu2 %v1881_v38 }
 0x16c   :  { %1152 = vmatpush.bf16.msra.mxu2 %v1953_v55 }
 0x16d   :  { %722 = vmatmul.bf16.vlgmr.msra.gmra.mxu3 %v1881_v38 }
 0x16e   :  { %886 = vmatpush.bf16.msrb.mxu3 %v1953_v55 }
 0x16f   :  { %v858_v27 = vpop.f32.mrf.mxu1 }
 0x170   :  { %1153 = vmatpush.bf16.msra.mxu2 %v1965_v56  ;;  %v859_v29 = vadd.f32 %v858_v27, %v2014_v14 }
 0x172   :  { %887 = vmatpush.bf16.msrb.mxu3 %v1965_v56  ;;  %v1494_v56 = vld [vmem:[%s2270_s0 + $0x1c4] sm:$0xf] }
 0x173   :  { %v824_v39 = vunpack.c.l.b16 %v1494_v56 }
 0x174   :  { %1154 = vmatpush.bf16.msra.mxu2 %v1974_v57 }
 0x175   :  { %v834_v42 = vpack.c.b16 %v824_v39, %v824_v39 }
 0x176   :  { %888 = vmatpush.bf16.msrb.mxu3 %v1974_v57 }
 0x177   :  { %v845_v43 = vsel %vm134_vm0, %v834_v42, 0 }
 0x178   :  { %867 = vmatpush.bf16.msra.mxu0 %v845_v43 }
 0x17a   :  { %1113 = vmatpush.bf16.msra.mxu3 %v1731_v5 }
 0x17c   :  { %868 = vmatpush.bf16.msra.mxu0 %v1714_v44 }
 0x17e   :  { %1114 = vmatpush.bf16.msra.mxu3 %v1730_v6 }
 0x182   :  { %1115 = vmatpush.bf16.msra.mxu3 %v1729_v7 }
 0x186   :  { %1116 = vmatpush.bf16.msra.mxu3 %v1728_v9 }
 0x18a   :  { %1117 = vmatpush.bf16.msra.mxu3 %v1727_v11 }
 0x18e   :  { %1118 = vmatpush.bf16.msra.mxu3 %v1726_v13 }
 0x192   :  { %1119 = vmatpush.bf16.msra.mxu3 %v1725_v21 }
 0x196   :  { %1120 = vmatpush.bf16.msra.mxu3 %v1724_v24 }
 0x1de   :  { %v624_v46 = vpop.f32.mrf.mxu2 }
 0x1df   :  { %v629_v47 = vpack.c.bf16 %v624_v46, %v624_v46 }
 0x1e0   :  { %v491_v49 = vpop.f32.mrf.mxu3 }
 0x1e1   :  { %1415 = vst.msk [vmem:[%s2274_s4 + $0x18] sm:$0xf] %vm232_vm4, %v629_v47  ;;  %v496_v54 = vpack.c.bf16 %v491_v49, %v491_v49 }
 0x1e3   :  { %1356 = vst.msk [vmem:[%s2274_s4 + $0x10] sm:$0xf] %vm232_vm4, %v496_v54 }
 0x1e6   :  { %v626_v55 = vpop.f32.mrf.mxu2 }
 0x1e7   :  { %v630_v57 = vpack.c.bf16 %v626_v55, %v626_v55 }
 0x1e8   :  { %v493_v40 = vpop.f32.mrf.mxu3 }
 0x1e9   :  { %1416 = vst.msk [vmem:[%s2274_s4 + $0x1c] sm:$0xf] %vm232_vm4, %v630_v57  ;;  %v497_v41 = vpack.c.bf16 %v493_v40, %v493_v40 }
 0x1eb   :  { %1357 = vst.msk [vmem:[%s2274_s4 + $0x14] sm:$0xf] %vm232_vm4, %v497_v41 }
 0x1ee   :  { %v989_v32 = vpop.f32.mrf.mxu2 }
 0x1ef   :  { %v990_v37 = vadd.f32 %v989_v32, %v2004_v4 }
 0x1f0   :  { %v723_v48 = vpop.f32.mrf.mxu3 }
 0x1f1   :  { %v724_v50 = vadd.f32 %v723_v48, %v2004_v4 }
 0x1f3   :  { %v738_v51 = vadd.f32 %v737_v45, %v724_v50 }
 0x1f5   :  { %1751 = vtanh.f32 %v738_v51 }
 0x1f6   :  { %v991_v46 = vpop.f32.mrf.mxu2 }
 0x1f8   :  { %v725_v52 = vpop.f32.mrf.mxu3 }
 0x1f9   :  { %v726_v53 = vadd.f32 %v725_v52, %v2014_v14 }
 0x1fb   :  { %v740_v60 = vadd.f32 %v739_v59, %v726_v53  ;;  %v1752_v63 = vpop.eup %1751 }
 0x1fd   :  { %1753 = vtanh.f32 %v740_v60 }
 0x203   :  { %v1754_v0 = vpop.eup %1753 }
 0x204   :  { %v744_v1 = vpack.c.bf16 %v1754_v0, %v1752_v63 }
 0x206   :  { %1473 = vmatmul.msk.bf16.vlgmr.msrb.gmra.mxu0 %vm208_vm3, %v744_v1 }
 0x207   :  { %1000 = vmatpush.bf16.msrb.mxu0 %v978_v2 }
 0x20b   :  { %1001 = vmatpush.bf16.msrb.mxu0 %v1723_v3 }
 0x216   :  { %1531 = vmatmul.msk.bf16.vlgmr.msra.gmra.mxu0 %vm130_vm1, %v1836_v20 }
 0x217   :  { %1133 = vmatpush.bf16.msra.mxu0 %v1111_v22 }
 0x21b   :  { %1134 = vmatpush.bf16.msra.mxu0 %v1732_v25 }
 0x226   :  { %1590 = vmatmul.msk.bf16.vlgmr.msrb.gmra.mxu0 %vm130_vm1, %v1836_v20 }
 0x236   :  { %1649 = vmatmul.msk.bf16.vlgmr.msra.gmra.mxu0 %vm130_vm1, %v1836_v20  ;;  %v992_v20 = vadd.f32 %v991_v46, %v2014_v14 }
 0x283   :  { %v757_v8 = vpop.f32.mrf.mxu0 }
 0x284   :  { %v762_v10 = vpack.c.bf16 %v757_v8, %v757_v8 }
 0x286   :  { %1474 = vst.msk [vmem:[%s2274_s4 + $0x20] sm:$0xf] %vm232_vm4, %v762_v10 }
 0x28b   :  { %v759_v12 = vpop.f32.mrf.mxu0 }
 0x28c   :  { %v763_v16 = vpack.c.bf16 %v759_v12, %v759_v12 }
 0x28e   :  { %1475 = vst.msk [vmem:[%s2274_s4 + $0x24] sm:$0xf] %vm232_vm4, %v763_v16 }
 0x293   :  { %v870_v23 = vpop.f32.mrf.mxu0 }
 0x294   :  { %v871_v28 = vadd.f32 %v870_v23, %v857_v26 }
 0x296   :  { %1755 = vtanh.f32 %v871_v28 }
 0x29b   :  { %v872_v30 = vpop.f32.mrf.mxu0 }
 0x29c   :  { %v873_v31 = vadd.f32 %v872_v30, %v859_v29  ;;  %v1756_v33 = vpop.eup %1755 }
 0x29e   :  { %1757 = vtanh.f32 %v873_v31 }
 0x2a3   :  { %v1003_v34 = vpop.f32.mrf.mxu0 }
 0x2a4   :  { %v1758_v35 = vpop.eup %1757  ;;  %v1004_v47 = vadd.f32 %v1003_v34, %v990_v37 }
 0x2a5   :  { %v877_v36 = vpack.c.bf16 %v1758_v35, %v1756_v33 }
 0x2a6   :  { %1759 = vtanh.f32 %v1004_v47 }
 0x2a7   :  { %1532 = vmatmul.msk.bf16.vlgmr.msrb.gmra.mxu3 %vm208_vm3, %v877_v36 }
 0x2ab   :  { %v1005_v49 = vpop.f32.mrf.mxu0 }
 0x2ac   :  { %v1006_v54 = vadd.f32 %v1005_v49, %v992_v20  ;;  %v1760_v55 = vpop.eup %1759 }
 0x2ae   :  { %1761 = vtanh.f32 %v1006_v54 }
 0x2b4   :  { %v1762_v56 = vpop.eup %1761 }
 0x2b5   :  { %v1010_v57 = vpack.c.bf16 %v1762_v56, %v1760_v55 }
 0x2b7   :  { %1591 = vmatmul.msk.bf16.vlgmr.msra.gmra.mxu1 %vm208_vm3, %v1010_v57  ;;  %1121 = vmatmul.bf16.vlgmr.msra.gmra.mxu3 %v1881_v38  ;;  %v1136_v38 = vpop.f32.mrf.mxu0 }
 0x2bf   :  { %v1138_v59 = vpop.f32.mrf.mxu0 }
 0x32a   :  { %v890_v39 = vpop.f32.mrf.mxu3 }
 0x32b   :  { %v895_v40 = vpack.c.bf16 %v890_v39, %v890_v39 }
 0x32d   :  { %1533 = vst.msk [vmem:[%s2274_s4 + $0x28] sm:$0xf] %vm232_vm4, %v895_v40 }
 0x332   :  { %v892_v41 = vpop.f32.mrf.mxu3 }
 0x333   :  { %v896_v42 = vpack.c.bf16 %v892_v41, %v892_v41 }
 0x334   :  { %v1023_v43 = vpop.f32.mrf.mxu1 }
 0x335   :  { %1534 = vst.msk [vmem:[%s2274_s4 + $0x2c] sm:$0xf] %vm232_vm4, %v896_v42  ;;  %v1028_v44 = vpack.c.bf16 %v1023_v43, %v1023_v43 }
 0x337   :  { %1592 = vst.msk [vmem:[%s2274_s4 + $0x30] sm:$0xf] %vm232_vm4, %v1028_v44 }
 0x33a   :  { %v1122_v45 = vpop.f32.mrf.mxu3 }
 0x33b   :  { %v1123_v51 = vadd.f32 %v1122_v45, %v2004_v4 }
 0x33c   :  { %v1025_v48 = vpop.f32.mrf.mxu1 }
 0x33d   :  { %v1029_v50 = vpack.c.bf16 %v1025_v48, %v1025_v48  ;;  %v1137_v52 = vadd.f32 %v1136_v38, %v1123_v51 }
 0x33f   :  { %1593 = vst.msk [vmem:[%s2274_s4 + $0x34] sm:$0xf] %vm232_vm4, %v1029_v50  ;;  %1763 = vtanh.f32 %v1137_v52 }
 0x342   :  { %v1124_v53 = vpop.f32.mrf.mxu3 }
 0x343   :  { %v1125_v58 = vadd.f32 %v1124_v53, %v2014_v14 }
 0x345   :  { %v1139_v60 = vadd.f32 %v1138_v59, %v1125_v58  ;;  %v1764_v61 = vpop.eup %1763 }
 0x347   :  { %1765 = vtanh.f32 %v1139_v60 }
 0x34d   :  { %v1766_v62 = vpop.eup %1765 }
 0x34e   :  { %v1143_v63 = vpack.c.bf16 %v1766_v62, %v1764_v61 }
 0x350   :  { %1650 = vmatmul.msk.bf16.vlgmr.msra.gmra.mxu2 %vm208_vm3, %v1143_v63 }
 0x3d3   :  { %v1156_v0 = vpop.f32.mrf.mxu2 }
 0x3d4   :  { %v1161_v4 = vpack.c.bf16 %v1156_v0, %v1156_v0 }
 0x3d6   :  { %1651 = vst.msk [vmem:[%s2274_s4 + $0x38] sm:$0xf] %vm232_vm4, %v1161_v4 }
 0x3db   :  { %v1158_v1 = vpop.f32.mrf.mxu2 }
 0x3dc   :  { %v1162_v2 = vpack.c.bf16 %v1158_v1, %v1158_v1 }
 0x3de   :  { %1652 = vst.msk [vmem:[%s2274_s4 + $0x3c] sm:$0xf] %vm232_vm4, %v1162_v2 }

// kernel: lenet5_forward.5
= control target key start
LH: loop header
LB: loop body
LE: loop exit
PB: predicated region body
PF: predicated region fallthrough
CT: control target
= control target key end

     0   :  { %vm246_vm0 = vcmask 130048   ;;  %s897_s1 = inlined_call_operand.vmem [shape: bf16[400,128], index: 1, kind: input, shape index: {}]   ;;  %s898_s0 = inlined_call_operand.vmem [shape: bf16[8,400], index: 0, kind: input, shape index: {}]   ;;  %s899_s3 = inlined_call_operand.vmem [shape: bf16[128,128], index: 3, kind: input, shape index: {}]   ;;  %s900_s2 = inlined_call_operand.vmem [shape: f32[1,128], index: 2, kind: input, shape index: {}]   ;;  %s901_s4 = inlined_call_operand.vmem [shape: f32[1,128], index: 4, kind: input, shape index: {}]   ;;  %s902_s5 = inlined_call_operand.vmem [shape: bf16[128,128], index: 5, kind: input, shape index: {}]   ;;  %s903_s6 = inlined_call_operand.vmem [shape: f32[1,128], index: 6, kind: input, shape index: {}]   ;;  %s904_s7 = inlined_call_operand.vmem [shape: f32[8,128], index: 7, kind: output, shape index: {}]  }
   0x1   :  { %v671_v0 = vld [vmem:[%s897_s1 + $0x38] sm:$0xff]  ;;  %v670_v3 = vld [vmem:[%s897_s1 + $0x30] sm:$0xff]  ;;  %v669_v6 = vld [vmem:[%s897_s1 + $0x28] sm:$0xff] }
   0x2   :  { %v679_v1 = vld [vmem:[%s897_s1 + $0x78] sm:$0xff]  ;;  %250 = vmatpush.bf16.msra.mxu0 %v671_v0  ;;  %v678_v4 = vld [vmem:[%s897_s1 + $0x70] sm:$0xff]  ;;  %v677_v7 = vld [vmem:[%s897_s1 + $0x68] sm:$0xff] }
   0x3   :  { %v687_v2 = vld [vmem:[%s897_s1 + $0xb8] sm:$0xff]  ;;  %263 = vmatpush.bf16.msra.mxu1 %v679_v1  ;;  %v686_v5 = vld [vmem:[%s897_s1 + $0xb0] sm:$0xff]  ;;  %v688_v8 = vld [vmem:[%s897_s1 + $0xc0] sm:$0xff] }
   0x4   :  { %276 = vmatpush.bf16.msra.mxu2 %v687_v2  ;;  %v685_v9 = vld [vmem:[%s897_s1 + $0xa8] sm:$0xff]  ;;  %296 = vmatpush.bf16.msra.mxu3 %v688_v8  ;;  %v696_v12 = vld [vmem:[%s899_s3 + $0x38] sm:$0xff]  ;;  %v668_v13 = vld [vmem:[%s897_s1 + $0x20] sm:$0xff]  ;;  %v468_v8 = vlaneseq }
   0x5   :  { %v28_v10 = vld [vmem:[%s898_s0 + $0x8] sm:$0xff]  ;;  %v676_v14 = vld [vmem:[%s897_s1 + $0x60] sm:$0xff]  ;;  %v695_v17 = vld [vmem:[%s899_s3 + $0x30] sm:$0xff] }
   0x6   :  { %251 = vmatpush.bf16.msra.mxu0 %v670_v3  ;;  %v88_v11 = vunpack.c.h.b16 %v28_v10  ;;  %v684_v16 = vld [vmem:[%s897_s1 + $0xa0] sm:$0xff]  ;;  %v667_v18 = vld [vmem:[%s897_s1 + $0x18] sm:$0xff]  ;;  %v694_v21 = vld [vmem:[%s899_s3 + $0x28] sm:$0xff]  ;;  %v87_v33 = vunpack.c.l.b16 %v28_v10 }
   0x7   :  { %264 = vmatpush.bf16.msra.mxu1 %v678_v4  ;;  %v675_v19 = vld [vmem:[%s897_s1 + $0x58] sm:$0xff]  ;;  %v666_v22 = vld [vmem:[%s897_s1 + $0x10] sm:$0xff]  ;;  %v665_v25 = vld [vmem:[%s897_s1 + $0x8] sm:$0xff] }
   0x8   :  { %277 = vmatpush.bf16.msra.mxu2 %v686_v5  ;;  %v92_v15 = vpack.c.b16 %v88_v11, %v88_v11  ;;  %372 = vmatpush.bf16.msrb.mxu3 %v696_v12  ;;  %v683_v20 = vld [vmem:[%s897_s1 + $0x98] sm:$0xff]  ;;  %v674_v23 = vld [vmem:[%s897_s1 + $0x50] sm:$0xff]  ;;  %v673_v26 = vld [vmem:[%s897_s1 + $0x48] sm:$0xff]  ;;  %v91_v37 = vpack.c.b16 %v87_v33, %v87_v33 }
   0x9   :  { %v682_v24 = vld [vmem:[%s897_s1 + $0x90] sm:$0xff]  ;;  %v27_v27 = vld [vmem:[%s898_s0] sm:$0xff]  ;;  %v681_v28 = vld [vmem:[%s897_s1 + $0x88] sm:$0xff] }
   0xa   :  { %252 = vmatpush.bf16.msra.mxu0 %v669_v6  ;;  %599 = vmatmul.msk.bf16.vlgmr.msra.gmra.mxu3 %vm246_vm0, %v92_v15  ;;  %v85_v29 = vunpack.c.l.b16 %v27_v27  ;;  %v86_v30 = vunpack.c.h.b16 %v27_v27  ;;  %v664_v31 = vld [vmem:[%s897_s1] sm:$0xff]  ;;  %v692_v39 = vld [vmem:[%s899_s3 + $0x18] sm:$0xff]  ;;  %v691_v40 = vld [vmem:[%s899_s3 + $0x10] sm:$0xff] }
   0xb   :  { %265 = vmatpush.bf16.msra.mxu1 %v677_v7  ;;  %v672_v32 = vld [vmem:[%s897_s1 + $0x40] sm:$0xff]  ;;  %v690_v41 = vld [vmem:[%s899_s3 + $0x8] sm:$0xff]  ;;  %v704_v44 = vld [vmem:[%s902_s5 + $0x38] sm:$0xff] }
   0xc   :  { %278 = vmatpush.bf16.msra.mxu2 %v685_v9  ;;  %373 = vmatpush.bf16.msrb.mxu3 %v695_v17  ;;  %v680_v34 = vld [vmem:[%s897_s1 + $0x80] sm:$0xff]  ;;  %v89_v35 = vpack.c.b16 %v85_v29, %v85_v29  ;;  %v90_v36 = vpack.c.b16 %v86_v30, %v86_v30  ;;  %v703_v45 = vld [vmem:[%s902_s5 + $0x30] sm:$0xff]  ;;  %v702_v47 = vld [vmem:[%s902_s5 + $0x28] sm:$0xff]  ;;  %v469_v9 = vand.u32 127, %v468_v8 }
   0xd   :  { %v693_v38 = vld [vmem:[%s899_s3 + $0x20] sm:$0xff]  ;;  %v700_v53 = vld [vmem:[%s902_s5 + $0x18] sm:$0xff]  ;;  %v699_v63 = vld [vmem:[%s902_s5 + $0x10] sm:$0xff] }
   0xe   :  { %253 = vmatpush.bf16.msra.mxu0 %v668_v13  ;;  %v689_v42 = vld [vmem:[%s899_s3] sm:$0xff]  ;;  %v698_v0 = vld [vmem:[%s902_s5 + $0x8] sm:$0xff]  ;;  %vm470_vm1 = vcmp.lt.s32.totalorder %v469_v9, 10 }
   0xf   :  { %266 = vmatpush.bf16.msra.mxu1 %v676_v14  ;;  %v705_v48 = vld [vmem:[%s900_s2] ss:$0 sm:$0xff] }
  0x10   :  { %279 = vmatpush.bf16.msra.mxu2 %v684_v16  ;;  %374 = vmatpush.bf16.msrb.mxu3 %v694_v21  ;;  %v701_v49 = vld [vmem:[%s902_s5 + $0x20] sm:$0xff] }
  0x11   :  { %v697_v1 = vld [vmem:[%s902_s5] sm:$0xff] }
  0x12   :  { %254 = vmatpush.bf16.msra.mxu0 %v667_v18  ;;  %v706_v2 = vld [vmem:[%s901_s4] ss:$0 sm:$0xff] }
  0x13   :  { %267 = vmatpush.bf16.msra.mxu1 %v675_v19  ;;  %v707_v10 = vld [vmem:[%s903_s6] ss:$0 sm:$0xff] }
  0x14   :  { %280 = vmatpush.bf16.msra.mxu2 %v683_v20  ;;  %375 = vmatpush.bf16.msrb.mxu3 %v693_v38 }
  0x16   :  { %255 = vmatpush.bf16.msra.mxu0 %v666_v22 }
  0x17   :  { %268 = vmatpush.bf16.msra.mxu1 %v674_v23 }
  0x18   :  { %281 = vmatpush.bf16.msra.mxu2 %v682_v24  ;;  %376 = vmatpush.bf16.msrb.mxu3 %v692_v39 }
  0x1a   :  { %256 = vmatpush.bf16.msra.mxu0 %v665_v25 }
  0x1b   :  { %269 = vmatpush.bf16.msra.mxu1 %v673_v26 }
  0x1c   :  { %282 = vmatpush.bf16.msra.mxu2 %v681_v28  ;;  %377 = vmatpush.bf16.msrb.mxu3 %v691_v40 }
  0x1e   :  { %257 = vmatpush.bf16.msra.mxu0 %v664_v31 }
  0x1f   :  { %270 = vmatpush.bf16.msra.mxu1 %v672_v32 }
  0x20   :  { %283 = vmatpush.bf16.msra.mxu2 %v680_v34  ;;  %378 = vmatpush.bf16.msrb.mxu3 %v690_v41 }
  0x21   :  { %258 = vmatmul.bf16.vlgmr.msra.gmra.mxu0 %v89_v35 }
  0x22   :  { %271 = vmatmul.bf16.vlgmr.msra.gmra.mxu1 %v90_v36  ;;  %455 = vmatpush.bf16.msrb.mxu0 %v704_v44 }
  0x23   :  { %284 = vmatmul.bf16.vlgmr.msra.gmra.mxu2 %v91_v37 }
  0x24   :  { %379 = vmatpush.bf16.msrb.mxu3 %v689_v42 }
  0x26   :  { %456 = vmatpush.bf16.msrb.mxu0 %v703_v45 }
  0x2a   :  { %457 = vmatpush.bf16.msrb.mxu0 %v702_v47 }
  0x2e   :  { %458 = vmatpush.bf16.msrb.mxu0 %v701_v49 }
  0x32   :  { %459 = vmatpush.bf16.msrb.mxu0 %v700_v53 }
  0x36   :  { %460 = vmatpush.bf16.msrb.mxu0 %v699_v63 }
  0x3a   :  { %461 = vmatpush.bf16.msrb.mxu0 %v698_v0 }
  0x3e   :  { %462 = vmatpush.bf16.msrb.mxu0 %v697_v1 }
  0x8d   :  { %v298_v43 = vpop.f32.mrf.mxu3 }
  0x95   :  { %v300_v46 = vpop.f32.mrf.mxu3 }
  0x9e   :  { %v259_v50 = vpop.f32.mrf.mxu0 }
  0x9f   :  { %v272_v51 = vpop.f32.mrf.mxu1  ;;  %v260_v52 = vadd.f32 %v705_v48, %v259_v50 }
  0xa1   :  { %v273_v54 = vadd.f32 %v272_v51, %v260_v52 }
  0xa6   :  { %v285_v55 = vpop.f32.mrf.mxu2  ;;  %v261_v57 = vpop.f32.mrf.mxu0 }
  0xa7   :  { %v286_v56 = vadd.f32 %v285_v55, %v273_v54  ;;  %v274_v58 = vpop.f32.mrf.mxu1 }
  0xa9   :  { %v299_v59 = vadd.f32 %v298_v43, %v286_v56 }
  0xab   :  { %708 = vtanh.f32 %v299_v59 }
  0xae   :  { %v287_v60 = vpop.f32.mrf.mxu2 }
  0xb1   :  { %v709_v61 = vpop.eup %708 }
  0xb2   :  { %v303_v62 = vpack.c.bf16 %v709_v61, %v709_v61 }
  0xb4   :  { %380 = vmatmul.bf16.vlgmr.msrb.gmra.mxu3 %v303_v62 }
 0x137   :  { %v381_v3 = vpop.f32.mrf.mxu3 }
 0x138   :  { %v382_v4 = vadd.f32 %v706_v2, %v381_v3 }
 0x13a   :  { %710 = vtanh.f32 %v382_v4 }
 0x13f   :  { %v383_v5 = vpop.f32.mrf.mxu3 }
 0x140   :  { %v711_v6 = vpop.eup %710 }
 0x141   :  { %v386_v7 = vpack.c.bf16 %v711_v6, %v711_v6 }
 0x143   :  { %463 = vmatmul.bf16.vlgmr.msrb.gmra.mxu0 %v386_v7 }
 0x1c0   :  { %v464_v11 = vpop.f32.mrf.mxu0 }
 0x1c1   :  { %v465_v12 = vadd.f32 %v707_v10, %v464_v11 }
 0x1c3   :  { %v471_v13 = vsel %vm470_vm1, %v465_v12, -1e+30 }
 0x1c4   :  { %472 = vmax.xlane.f32.xlu0 %v471_v13 }
 0x1c8   :  { %v466_v14 = vpop.f32.mrf.mxu0 }
 0x237   :  { %v473_v15 = vpop.xlane.xlu0 %472 }
 0x238   :  { %v474_v16 = vsub.f32 %v471_v13, %v473_v15 }
 0x23a   :  { %v475_v17 = vmul.f32 1.442695, %v474_v16 }
 0x23c   :  { %712 = vpow2.f32 %v475_v17 }
 0x242   :  { %v713_v18 = vpop.eup %712 }
 0x243   :  { %477 = vadd.xlane.f32.xlu0 %v713_v18 }
 0x2b6   :  { %v478_v19 = vpop.xlane.xlu0 %477 }
 0x2b7   :  { %714 = vrcp.f32 %v478_v19  ;;  %v490_v23 = vand.u32 2147483648, %v478_v19  ;;  %v488_v25 = vand.u32 2147483647, %v478_v19  ;;  %vm484_vm3 = vweird.f32 %v478_v19 }
 0x2b9   :  { %v491_v27 = vor.u32 1.1754944e-38, %v490_v23  ;;  %vm489_vm5 = vcmp.eq.f32.partialorder %v488_v25, 8.507059e+37 }
 0x2bd   :  { %v715_v20 = vpop.eup %714 }
 0x2be   :  { %v480_v21 = vmul.f32 %v715_v20, %v478_v19  ;;  %vm485_vm2 = vweird.f32 %v715_v20 }
 0x2bf   :  { %vm486_vm4 = vmor %vm484_vm3, %vm485_vm2 }
 0x2c0   :  { %v481_v22 = vsub.f32 1.0, %v480_v21 }
 0x2c2   :  { %v482_v24 = vmul.f32 %v715_v20, %v481_v22 }
 0x2c4   :  { %v483_v26 = vadd.f32 %v715_v20, %v482_v24 }
 0x2c6   :  { %v487_v28 = vsel %vm486_vm4, %v715_v20, %v483_v26 }
 0x2c7   :  { %v492_v29 = vsel %vm489_vm5, %v491_v27, %v487_v28 }
 0x2c8   :  { %v493_v30 = vmul.f32 %v713_v18, %v492_v29 }
 0x2ca   :  { %494 = vst [vmem:[%s904_s7] sm:$0xff] %v493_v30 }

</bundles_post_ra>
